<compile_context>
chip_gen: v7x
topology: tpu7x:2x2x1
jax: 0.10.0
libtpu: 0.0.40
codegen_flags: <defaults>
</compile_context>

<pallas_src>
import functools

import jax
import jax.numpy as jnp
from jax import lax
from jax.experimental import pallas as pl
from jax.experimental.pallas import tpu as pltpu

# ---- scaled-down deterministic config (structure mirrors the BERT config) ----
NUM_LAYERS = 2
NUM_HEADS = 4
VOCAB_SIZE = 100
HIDDEN = 32
HEAD_DIM = HIDDEN // NUM_HEADS
MLP_DIM = 4 * HIDDEN
MAX_SEQ = 64
TYPE_VOCAB = 2
LN_EPS = 1e-12
HEADS_PAD = 128  # lane-dense classifier output: cols 0-1 sentiment, col 2 stars


# --------------------------- in-kernel helpers --------------------------------
def _ln(x, g, b, eps):
    mean = jnp.mean(x, axis=-1, keepdims=True)
    xc = x - mean
    var = jnp.mean(xc * xc, axis=-1, keepdims=True)
    return xc * lax.rsqrt(var + eps) * g + b


def _gelu_exact(x):
    # exact (erf) GELU, matching torch.nn.functional.gelu default
    return 0.5 * x * (1.0 + lax.erf(x * 0.7071067811865475))


# ------------------------------ fused kernel ----------------------------------
def _bert_fused_kernel(emb_ref, mask_ref, embg_ref, embb_ref,
                       wqh_ref, wkh_ref, wvh_ref, bqh_ref, bkh_ref, bvh_ref,
                       woh_ref, bo_ref, ln1g_ref, ln1b_ref,
                       w1_ref, b1_ref, w2_ref, b2_ref, ln2g_ref, ln2b_ref,
                       wh_ref, bh_ref, out_ref,
                       *, batch, seq, num_heads, head_dim, mlp_dim,
                       num_layers, eps):
    hidden = num_heads * head_dim
    groups = batch * num_heads           # group g = b * num_heads + h
    scale = 1.0 / (head_dim ** 0.5)
    bf16 = jnp.bfloat16

    def rep_b(w):
        # per-head operand (NH, X, Y) -> (B*NH, X, Y), batch-major groups
        return jnp.broadcast_to(w[None], (batch,) + w.shape).reshape(
            (groups,) + w.shape[1:])

    def rep_heads(a):
        # per-batch operand (B, X, Y) -> (B*NH, X, Y), batch-major groups
        return jnp.broadcast_to(a[:, None], (batch, num_heads) + a.shape[1:]
                                ).reshape((groups,) + a.shape[1:])

    # ---- embedding layer-norm (residual-free), f32 ----
    x = _ln(emb_ref[...].astype(jnp.float32), embg_ref[...], embb_ref[...],
            eps)                                                    # (B, S, H)

    # ---- additive attention mask, hoisted out of the layer loop ----
    neg = (1.0 - mask_ref[...].astype(jnp.float32)) * (-10000.0)    # (B, 1, S)
    add_mask = rep_heads(neg)                                       # (G, 1, S)

    for l in range(num_layers):                                     # static unroll
        # ---- per-head QKV as head-batched matmuls (no lane slicing) ----
        xg = rep_heads(x.astype(bf16))                              # (G, S, H)
        q = jnp.einsum('gsh,ghd->gsd', xg, rep_b(wqh_ref[l]),
                       preferred_element_type=jnp.float32) + rep_b(bqh_ref[l])
        k = jnp.einsum('gsh,ghd->gsd', xg, rep_b(wkh_ref[l]),
                       preferred_element_type=jnp.float32) + rep_b(bkh_ref[l])
        v = jnp.einsum('gsh,ghd->gsd', xg, rep_b(wvh_ref[l]),
                       preferred_element_type=jnp.float32) + rep_b(bvh_ref[l])

        # ---- scores + softmax (f32, EUP reciprocal) ----
        s = jnp.einsum('gqd,gkd->gqk', q.astype(bf16), k.astype(bf16),
                       preferred_element_type=jnp.float32) * scale + add_mask
        s = s - jnp.max(s, axis=-1, keepdims=True)
        p = jnp.exp(s)
        p = p * pl.reciprocal(jnp.sum(p, axis=-1, keepdims=True), approx=True)
        o = jnp.einsum('gqk,gkd->gqd', p.astype(bf16), v.astype(bf16),
                       preferred_element_type=jnp.float32)          # (G, S, Dh)

        # ---- per-head output projection; head merge = sum over head axis ----
        ctx_g = jnp.einsum('gsd,gdh->gsh', o.astype(bf16), rep_b(woh_ref[l]),
                           preferred_element_type=jnp.float32)      # (G, S, H)
        ctx4 = ctx_g.reshape(batch, num_heads, seq, hidden)
        ctx = ctx4[:, 0]
        for h in range(1, num_heads):
            ctx = ctx + ctx4[:, h]                                  # (B, S, H)
        x1 = _ln(ctx + bo_ref[l] + x, ln1g_ref[l], ln1b_ref[l], eps)

        # ---- FFN: W1 + exact GELU + W2 + residual + LN2 ----
        w1b = jnp.broadcast_to(w1_ref[l][None], (batch, hidden, mlp_dim))
        h1 = jnp.einsum('bsh,bhm->bsm', x1.astype(bf16), w1b,
                        preferred_element_type=jnp.float32) + b1_ref[l]
        h1 = _gelu_exact(h1)
        w2b = jnp.broadcast_to(w2_ref[l][None], (batch, mlp_dim, hidden))
        y = jnp.einsum('bsm,bmh->bsh', h1.astype(bf16), w2b,
                       preferred_element_type=jnp.float32) + b2_ref[l]
        x = _ln(y + x1, ln2g_ref[l], ln2b_ref[l], eps)

    # ---- classifier heads on every row; lane-dense (B, S, 128) store ----
    whb = jnp.broadcast_to(wh_ref[...][None], (batch, hidden, HEADS_PAD))
    z = jnp.einsum('bsh,bhp->bsp', x.astype(bf16), whb,
                   preferred_element_type=jnp.float32) + bh_ref[...]
    # cols 0,1 = sentiment logits ; col 2 = stars with the 5*x + 5 affine
    col = lax.broadcasted_iota(jnp.int32, z.shape, 2)
    out_ref[...] = jnp.where(col == 2, 5.0 * z + 5.0, z).astype(out_ref.dtype)


# ------------------------------ pallas wrapper ---------------------------------
def _full_spec(x):
    nd = x.ndim
    return pl.BlockSpec(x.shape, lambda i, nd=nd: (0,) * nd)


def _cost_estimate(batch, seq, operands, out_bytes):
    m = batch * seq
    per_layer = (2 * m * HIDDEN * 3 * HIDDEN                 # QKV projections
                 + 4 * batch * NUM_HEADS * seq * seq * HEAD_DIM  # scores + PV
                 + 2 * m * HIDDEN * HIDDEN                    # output projection
                 + 4 * m * HIDDEN * MLP_DIM)                  # FFN
    flops = NUM_LAYERS * per_layer + 2 * m * HIDDEN * HEADS_PAD
    transcendentals = (NUM_LAYERS * (batch * NUM_HEADS * seq * seq
                                     + m * MLP_DIM + 2 * m) + m)
    bytes_accessed = out_bytes + sum(
        int(op.size) * jnp.dtype(op.dtype).itemsize for op in operands)
    return pl.CostEstimate(flops=flops, transcendentals=transcendentals,
                           bytes_accessed=bytes_accessed)


def bert_fused_forward(emb, mask3, p):
    """emb: (B, S, H) f32 embedding sum; mask3: (B, 1, S) with 1=keep / 0=pad."""
    batch, seq, _ = emb.shape
    operands = [
        emb, mask3,
        p["emb_ln_g"], p["emb_ln_b"],
        p["wqh"], p["wkh"], p["wvh"], p["bqh"], p["bkh"], p["bvh"],
        p["woh"], p["bo"], p["ln1_g"], p["ln1_b"],
        p["w1"], p["b1"], p["w2"], p["b2"], p["ln2_g"], p["ln2_b"],
        p["w_heads"], p["b_heads"],
    ]
    return pl.pallas_call(
        functools.partial(_bert_fused_kernel, batch=batch, seq=seq,
                          num_heads=NUM_HEADS, head_dim=HEAD_DIM,
                          mlp_dim=MLP_DIM, num_layers=NUM_LAYERS, eps=LN_EPS),
        grid=(1,),
        in_specs=[_full_spec(op) for op in operands],
        out_specs=pl.BlockSpec((batch, seq, HEADS_PAD), lambda i: (0, 0, 0)),
        out_shape=jax.ShapeDtypeStruct((batch, seq, HEADS_PAD), jnp.float32),
        compiler_params=pltpu.CompilerParams(
            dimension_semantics=("arbitrary",)),
        cost_estimate=_cost_estimate(batch, seq, operands,
                                     batch * seq * HEADS_PAD * 4),
    )(*operands)


# ------------------------------- parameters ------------------------------------
def init_params(seed=0):
    key = jax.random.PRNGKey(seed)
    keys = iter(jax.random.split(key, 64))

    def nrm(shape, scale=0.02):
        return scale * jax.random.normal(next(keys), shape, jnp.float32)

    params = {
        "tok_emb": nrm((VOCAB_SIZE, HIDDEN)),
        "pos_emb": nrm((MAX_SEQ, HIDDEN)),
        "type_emb": nrm((TYPE_VOCAB, HIDDEN)),
        "emb_ln_g": jnp.ones((HIDDEN,), jnp.float32),
        "emb_ln_b": jnp.zeros((HIDDEN,), jnp.float32),
        "w_sent": nrm((HIDDEN, 2)), "b_sent": jnp.zeros((2,), jnp.float32),
        "w_star": nrm((HIDDEN, 1)), "b_star": jnp.zeros((1,), jnp.float32),
        # token_embedding_bias (tied LM-head bias) unused by this forward pass.
        "layers": [],
    }
    for _ in range(NUM_LAYERS):
        params["layers"].append({
            "wq": nrm((HIDDEN, HIDDEN)), "bq": jnp.zeros((HIDDEN,), jnp.float32),
            "wk": nrm((HIDDEN, HIDDEN)), "bk": jnp.zeros((HIDDEN,), jnp.float32),
            "wv": nrm((HIDDEN, HIDDEN)), "bv": jnp.zeros((HIDDEN,), jnp.float32),
            "wo": nrm((HIDDEN, HIDDEN)), "bo": jnp.zeros((HIDDEN,), jnp.float32),
            "ln1_g": jnp.ones((HIDDEN,), jnp.float32),
            "ln1_b": jnp.zeros((HIDDEN,), jnp.float32),
            "w1": nrm((HIDDEN, MLP_DIM)), "b1": jnp.zeros((MLP_DIM,), jnp.float32),
            "w2": nrm((MLP_DIM, HIDDEN)), "b2": jnp.zeros((HIDDEN,), jnp.float32),
            "ln2_g": jnp.ones((HIDDEN,), jnp.float32),
            "ln2_b": jnp.zeros((HIDDEN,), jnp.float32),
        })
    return params


def fuse_params(params):
    """One-time host-side re-layout: per-head weights, layer stacking, bf16,
    padded lane-dense classifier head."""
    H, NH, Dh, M = HIDDEN, NUM_HEADS, HEAD_DIM, MLP_DIM
    L = params["layers"]

    def heads_in(w):      # (H, H) -> (NH, H, Dh)
        return jnp.transpose(w.reshape(H, NH, Dh), (1, 0, 2))

    def heads_bias(b):    # (H,) -> (NH, 1, Dh)
        return b.reshape(NH, 1, Dh)

    def heads_out(w):     # (H, H) -> (NH, Dh, H)
        return w.reshape(NH, Dh, H)

    def stack(fn, key):
        return jnp.stack([fn(lp[key]) for lp in L], axis=0)

    w_heads = jnp.concatenate([params["w_sent"], params["w_star"]], axis=1)
    w_heads = jnp.pad(w_heads, ((0, 0), (0, HEADS_PAD - 3)))
    b_heads = jnp.concatenate([params["b_sent"], params["b_star"]], axis=0)
    b_heads = jnp.pad(b_heads, (0, HEADS_PAD - 3)).reshape(1, 1, HEADS_PAD)

    return {
        "tok_emb": params["tok_emb"],
        "pos_emb": params["pos_emb"],
        "type_emb": params["type_emb"],
        "emb_ln_g": params["emb_ln_g"].reshape(1, 1, H),
        "emb_ln_b": params["emb_ln_b"].reshape(1, 1, H),
        "wqh": stack(heads_in, "wq").astype(jnp.bfloat16),
        "wkh": stack(heads_in, "wk").astype(jnp.bfloat16),
        "wvh": stack(heads_in, "wv").astype(jnp.bfloat16),
        "bqh": stack(heads_bias, "bq"),
        "bkh": stack(heads_bias, "bk"),
        "bvh": stack(heads_bias, "bv"),
        "woh": stack(heads_out, "wo").astype(jnp.bfloat16),
        "bo": jnp.stack([lp["bo"].reshape(1, 1, H) for lp in L]),
        "ln1_g": jnp.stack([lp["ln1_g"].reshape(1, 1, H) for lp in L]),
        "ln1_b": jnp.stack([lp["ln1_b"].reshape(1, 1, H) for lp in L]),
        "w1": jnp.stack([lp["w1"] for lp in L]).astype(jnp.bfloat16),
        "b1": jnp.stack([lp["b1"].reshape(1, 1, M) for lp in L]),
        "w2": jnp.stack([lp["w2"] for lp in L]).astype(jnp.bfloat16),
        "b2": jnp.stack([lp["b2"].reshape(1, 1, H) for lp in L]),
        "ln2_g": jnp.stack([lp["ln2_g"].reshape(1, 1, H) for lp in L]),
        "ln2_b": jnp.stack([lp["ln2_b"].reshape(1, 1, H) for lp in L]),
        "w_heads": w_heads.astype(jnp.bfloat16),
        "b_heads": b_heads,
    }


# ------------------------------- model forward ----------------------------------
def bert_imdb_forward(params, token_ids, one_zero_attention_mask=None,
                      token_type_ids=None):
    batch, seq = token_ids.shape
    if one_zero_attention_mask is None:
        one_zero_attention_mask = jnp.ones((batch, seq), jnp.float32)
    if token_type_ids is None:
        token_type_ids = jnp.zeros((batch, seq), jnp.int32)

    # embedding gathers are plain-JAX glue (dynamic gathers stay outside Pallas)
    emb = (params["tok_emb"][token_ids]
           + params["pos_emb"][:seq][None, :, :]
           + params["type_emb"][token_type_ids]).astype(jnp.float32)
    mask3 = one_zero_attention_mask.astype(jnp.float32).reshape(batch, 1, seq)

    # dropout layers -> identity (eval semantics)
    out = bert_fused_forward(emb, mask3, params)        # (B, S, 128)
    cls = out[:, 0, :]                                  # x[:, 0, :]
    sentiment = cls[:, 0:2]
    stars = cls[:, 2:3]
    return sentiment, stars


# ----------------------------------- main ---------------------------------------
if __name__ == "__main__":
    BATCH, SEQ = 2, 8
    key = jax.random.PRNGKey(0)
    k_tok, _ = jax.random.split(key)

    token_ids = jax.random.randint(k_tok, (BATCH, SEQ), 0, VOCAB_SIZE, jnp.int32)
    attn_mask = jnp.array([[1, 1, 1, 1, 1, 1, 1, 1],
                           [1, 1, 1, 1, 1, 1, 0, 0]], jnp.float32)
    type_ids = jnp.zeros((BATCH, SEQ), jnp.int32)

    params = fuse_params(init_params(seed=0))

    fwd = jax.jit(bert_imdb_forward)
    sentiment, stars = fwd(params, token_ids, attn_mask, type_ids)
    jax.block_until_ready((sentiment, stars))

    assert sentiment.shape == (BATCH, 2) and stars.shape == (BATCH, 1)
    assert bool(jnp.all(jnp.isfinite(sentiment))) and bool(jnp.all(jnp.isfinite(stars)))
    print("KERNEL_OK")
</pallas_src>

<mosaic_0001>
module attributes {stable_mosaic.version = 11 : i64} {
  func.func @_bert_fused_kernel(%arg0: i32, %arg1: memref<2x8x32xf32, #tpu.memory_space<vmem>>, %arg2: memref<2x1x8xf32, #tpu.memory_space<vmem>>, %arg3: memref<1x1x32xf32, #tpu.memory_space<vmem>>, %arg4: memref<1x1x32xf32, #tpu.memory_space<vmem>>, %arg5: memref<2x4x32x8xbf16, #tpu.memory_space<vmem>>, %arg6: memref<2x4x32x8xbf16, #tpu.memory_space<vmem>>, %arg7: memref<2x4x32x8xbf16, #tpu.memory_space<vmem>>, %arg8: memref<2x4x1x8xf32, #tpu.memory_space<vmem>>, %arg9: memref<2x4x1x8xf32, #tpu.memory_space<vmem>>, %arg10: memref<2x4x1x8xf32, #tpu.memory_space<vmem>>, %arg11: memref<2x4x8x32xbf16, #tpu.memory_space<vmem>>, %arg12: memref<2x1x1x32xf32, #tpu.memory_space<vmem>>, %arg13: memref<2x1x1x32xf32, #tpu.memory_space<vmem>>, %arg14: memref<2x1x1x32xf32, #tpu.memory_space<vmem>>, %arg15: memref<2x32x128xbf16, #tpu.memory_space<vmem>>, %arg16: memref<2x1x1x128xf32, #tpu.memory_space<vmem>>, %arg17: memref<2x128x32xbf16, #tpu.memory_space<vmem>>, %arg18: memref<2x1x1x32xf32, #tpu.memory_space<vmem>>, %arg19: memref<2x1x1x32xf32, #tpu.memory_space<vmem>>, %arg20: memref<2x1x1x32xf32, #tpu.memory_space<vmem>>, %arg21: memref<32x128xbf16, #tpu.memory_space<vmem>>, %arg22: memref<1x1x128xf32, #tpu.memory_space<vmem>>, %arg23: memref<2x8x128xf32, #tpu.memory_space<vmem>>) attributes {dimension_semantics = [#tpu.dimension_semantics<arbitrary>], iteration_bounds = array<i64: 1>, scalar_prefetch = 0 : i64, scratch_operands = 0 : i64, tpu.core_type = #tpu.core_type<tc>, window_params = [{pipeline_mode = #tpu.pipeline_mode<synchronous>, transform_indices = @transform_0, window_bounds = array<i64: 2, 8, 32>}, {pipeline_mode = #tpu.pipeline_mode<synchronous>, transform_indices = @transform_1, window_bounds = array<i64: 2, 1, 8>}, {pipeline_mode = #tpu.pipeline_mode<synchronous>, transform_indices = @transform_2, window_bounds = array<i64: 1, 1, 32>}, {pipeline_mode = #tpu.pipeline_mode<synchronous>, transform_indices = @transform_3, window_bounds = array<i64: 1, 1, 32>}, {pipeline_mode = #tpu.pipeline_mode<synchronous>, transform_indices = @transform_4, window_bounds = array<i64: 2, 4, 32, 8>}, {pipeline_mode = #tpu.pipeline_mode<synchronous>, transform_indices = @transform_5, window_bounds = array<i64: 2, 4, 32, 8>}, {pipeline_mode = #tpu.pipeline_mode<synchronous>, transform_indices = @transform_6, window_bounds = array<i64: 2, 4, 32, 8>}, {pipeline_mode = #tpu.pipeline_mode<synchronous>, transform_indices = @transform_7, window_bounds = array<i64: 2, 4, 1, 8>}, {pipeline_mode = #tpu.pipeline_mode<synchronous>, transform_indices = @transform_8, window_bounds = array<i64: 2, 4, 1, 8>}, {pipeline_mode = #tpu.pipeline_mode<synchronous>, transform_indices = @transform_9, window_bounds = array<i64: 2, 4, 1, 8>}, {pipeline_mode = #tpu.pipeline_mode<synchronous>, transform_indices = @transform_10, window_bounds = array<i64: 2, 4, 8, 32>}, {pipeline_mode = #tpu.pipeline_mode<synchronous>, transform_indices = @transform_11, window_bounds = array<i64: 2, 1, 1, 32>}, {pipeline_mode = #tpu.pipeline_mode<synchronous>, transform_indices = @transform_12, window_bounds = array<i64: 2, 1, 1, 32>}, {pipeline_mode = #tpu.pipeline_mode<synchronous>, transform_indices = @transform_13, window_bounds = array<i64: 2, 1, 1, 32>}, {pipeline_mode = #tpu.pipeline_mode<synchronous>, transform_indices = @transform_14, window_bounds = array<i64: 2, 32, 128>}, {pipeline_mode = #tpu.pipeline_mode<synchronous>, transform_indices = @transform_15, window_bounds = array<i64: 2, 1, 1, 128>}, {pipeline_mode = #tpu.pipeline_mode<synchronous>, transform_indices = @transform_16, window_bounds = array<i64: 2, 128, 32>}, {pipeline_mode = #tpu.pipeline_mode<synchronous>, transform_indices = @transform_17, window_bounds = array<i64: 2, 1, 1, 32>}, {pipeline_mode = #tpu.pipeline_mode<synchronous>, transform_indices = @transform_18, window_bounds = array<i64: 2, 1, 1, 32>}, {pipeline_mode = #tpu.pipeline_mode<synchronous>, transform_indices = @transform_19, window_bounds = array<i64: 2, 1, 1, 32>}, {pipeline_mode = #tpu.pipeline_mode<synchronous>, transform_indices = @transform_20, window_bounds = array<i64: 32, 128>}, {pipeline_mode = #tpu.pipeline_mode<synchronous>, transform_indices = @transform_21, window_bounds = array<i64: 1, 1, 128>}, {pipeline_mode = #tpu.pipeline_mode<synchronous>, transform_indices = @transform_22, window_bounds = array<i64: 2, 8, 128>}]} {
    %c0 = arith.constant 0 : index
    %c0_0 = arith.constant 0 : index
    %c0_1 = arith.constant 0 : index
    %0 = vector.load %arg1[%c0, %c0_0, %c0_1] : memref<2x8x32xf32, #tpu.memory_space<vmem>>, vector<2x8x32xf32>
    %c0_2 = arith.constant 0 : index
    %c0_3 = arith.constant 0 : index
    %c0_4 = arith.constant 0 : index
    %1 = vector.load %arg3[%c0_2, %c0_3, %c0_4] : memref<1x1x32xf32, #tpu.memory_space<vmem>>, vector<1x1x32xf32>
    %c0_5 = arith.constant 0 : index
    %c0_6 = arith.constant 0 : index
    %c0_7 = arith.constant 0 : index
    %2 = vector.load %arg4[%c0_5, %c0_6, %c0_7] : memref<1x1x32xf32, #tpu.memory_space<vmem>>, vector<1x1x32xf32>
    %cst = arith.constant dense<0.000000e+00> : vector<2x8xf32>
    %3 = vector.multi_reduction <add>, %0, %cst [2] : vector<2x8x32xf32> to vector<2x8xf32>
    %4 = vector.shape_cast %3 : vector<2x8xf32> to vector<2x8x1xf32>
    %cst_8 = arith.constant 3.200000e+01 : f32
    %5 = vector.broadcast %cst_8 : f32 to vector<2x8x1xf32>
    %6 = arith.divf %4, %5 : vector<2x8x1xf32>
    %7 = vector.broadcast %6 : vector<2x8x1xf32> to vector<2x8x32xf32>
    %8 = arith.subf %0, %7 : vector<2x8x32xf32>
    %9 = arith.mulf %8, %8 : vector<2x8x32xf32>
    %cst_9 = arith.constant dense<0.000000e+00> : vector<2x8xf32>
    %10 = vector.multi_reduction <add>, %9, %cst_9 [2] : vector<2x8x32xf32> to vector<2x8xf32>
    %11 = vector.shape_cast %10 : vector<2x8xf32> to vector<2x8x1xf32>
    %cst_10 = arith.constant 3.200000e+01 : f32
    %12 = vector.broadcast %cst_10 : f32 to vector<2x8x1xf32>
    %13 = arith.divf %11, %12 : vector<2x8x1xf32>
    %cst_11 = arith.constant 9.99999996E-13 : f32
    %14 = vector.broadcast %cst_11 : f32 to vector<2x8x1xf32>
    %15 = arith.addf %13, %14 : vector<2x8x1xf32>
    %16 = math.rsqrt %15 : vector<2x8x1xf32>
    %17 = vector.broadcast %16 : vector<2x8x1xf32> to vector<2x8x32xf32>
    %18 = arith.mulf %8, %17 : vector<2x8x32xf32>
    %19 = vector.broadcast %1 : vector<1x1x32xf32> to vector<2x8x32xf32>
    %20 = arith.mulf %18, %19 : vector<2x8x32xf32>
    %21 = vector.broadcast %2 : vector<1x1x32xf32> to vector<2x8x32xf32>
    %22 = arith.addf %20, %21 : vector<2x8x32xf32>
    %c0_12 = arith.constant 0 : index
    %c0_13 = arith.constant 0 : index
    %c0_14 = arith.constant 0 : index
    %23 = vector.load %arg2[%c0_12, %c0_13, %c0_14] : memref<2x1x8xf32, #tpu.memory_space<vmem>>, vector<2x1x8xf32>
    %cst_15 = arith.constant 1.000000e+00 : f32
    %24 = vector.broadcast %cst_15 : f32 to vector<2x1x8xf32>
    %25 = arith.subf %24, %23 : vector<2x1x8xf32>
    %cst_16 = arith.constant -1.000000e+04 : f32
    %26 = vector.broadcast %cst_16 : f32 to vector<2x1x8xf32>
    %27 = arith.mulf %25, %26 : vector<2x1x8xf32>
    %28 = vector.shape_cast %27 : vector<2x1x8xf32> to vector<2x1x1x8xf32>
    %29 = vector.shape_cast %28 : vector<2x1x1x8xf32> to vector<2x1x1x8xf32>
    %30 = vector.broadcast %29 : vector<2x1x1x8xf32> to vector<2x4x1x8xf32>
    %31 = vector.shape_cast %30 : vector<2x4x1x8xf32> to vector<8x1x8xf32>
    %32 = arith.truncf %22 : vector<2x8x32xf32> to vector<2x8x32xbf16>
    %33 = vector.shape_cast %32 : vector<2x8x32xbf16> to vector<2x1x8x32xbf16>
    %34 = vector.shape_cast %33 : vector<2x1x8x32xbf16> to vector<2x1x8x32xbf16>
    %35 = vector.broadcast %34 : vector<2x1x8x32xbf16> to vector<2x4x8x32xbf16>
    %36 = vector.shape_cast %35 : vector<2x4x8x32xbf16> to vector<8x8x32xbf16>
    %c0_17 = arith.constant 0 : index
    %c0_18 = arith.constant 0 : index
    %c0_19 = arith.constant 0 : index
    %c0_20 = arith.constant 0 : index
    %37 = vector.load %arg5[%c0_17, %c0_18, %c0_19, %c0_20] : memref<2x4x32x8xbf16, #tpu.memory_space<vmem>>, vector<1x4x32x8xbf16>
    %38 = vector.shape_cast %37 : vector<1x4x32x8xbf16> to vector<4x32x8xbf16>
    %39 = vector.shape_cast %38 : vector<4x32x8xbf16> to vector<1x4x32x8xbf16>
    %40 = vector.shape_cast %39 : vector<1x4x32x8xbf16> to vector<1x4x32x8xbf16>
    %41 = vector.broadcast %40 : vector<1x4x32x8xbf16> to vector<2x4x32x8xbf16>
    %42 = vector.shape_cast %41 : vector<2x4x32x8xbf16> to vector<8x32x8xbf16>
    "tpu.trace_start"() <{level = 10 : i32, message = "gsh,ghd->gsd"}> : () -> ()
    %cst_21 = arith.constant dense<0.000000e+00> : vector<8x8x8xf32>
    %43 = tpu.matmul %36, %42, %cst_21 {dimension_numbers = #tpu.dot_dimension_numbers<[2], [1], [1], [2], [0, 0, 0, 1, 1, 2], [0], [0]>} : vector<8x8x32xbf16>, vector<8x32x8xbf16>, vector<8x8x8xf32> -> vector<8x8x8xf32>
    "tpu.trace_stop"() : () -> ()
    %c0_22 = arith.constant 0 : index
    %c0_23 = arith.constant 0 : index
    %c0_24 = arith.constant 0 : index
    %c0_25 = arith.constant 0 : index
    %44 = vector.load %arg8[%c0_22, %c0_23, %c0_24, %c0_25] : memref<2x4x1x8xf32, #tpu.memory_space<vmem>>, vector<1x4x1x8xf32>
    %45 = vector.shape_cast %44 : vector<1x4x1x8xf32> to vector<4x1x8xf32>
    %46 = vector.shape_cast %45 : vector<4x1x8xf32> to vector<1x4x1x8xf32>
    %47 = vector.shape_cast %46 : vector<1x4x1x8xf32> to vector<1x4x1x8xf32>
    %48 = vector.broadcast %47 : vector<1x4x1x8xf32> to vector<2x4x1x8xf32>
    %49 = vector.shape_cast %48 : vector<2x4x1x8xf32> to vector<8x1x8xf32>
    %50 = vector.broadcast %49 : vector<8x1x8xf32> to vector<8x8x8xf32>
    %51 = arith.addf %43, %50 : vector<8x8x8xf32>
    %c0_26 = arith.constant 0 : index
    %c0_27 = arith.constant 0 : index
    %c0_28 = arith.constant 0 : index
    %c0_29 = arith.constant 0 : index
    %52 = vector.load %arg6[%c0_26, %c0_27, %c0_28, %c0_29] : memref<2x4x32x8xbf16, #tpu.memory_space<vmem>>, vector<1x4x32x8xbf16>
    %53 = vector.shape_cast %52 : vector<1x4x32x8xbf16> to vector<4x32x8xbf16>
    %54 = vector.shape_cast %53 : vector<4x32x8xbf16> to vector<1x4x32x8xbf16>
    %55 = vector.shape_cast %54 : vector<1x4x32x8xbf16> to vector<1x4x32x8xbf16>
    %56 = vector.broadcast %55 : vector<1x4x32x8xbf16> to vector<2x4x32x8xbf16>
    %57 = vector.shape_cast %56 : vector<2x4x32x8xbf16> to vector<8x32x8xbf16>
    "tpu.trace_start"() <{level = 10 : i32, message = "gsh,ghd->gsd"}> : () -> ()
    %cst_30 = arith.constant dense<0.000000e+00> : vector<8x8x8xf32>
    %58 = tpu.matmul %36, %57, %cst_30 {dimension_numbers = #tpu.dot_dimension_numbers<[2], [1], [1], [2], [0, 0, 0, 1, 1, 2], [0], [0]>} : vector<8x8x32xbf16>, vector<8x32x8xbf16>, vector<8x8x8xf32> -> vector<8x8x8xf32>
    "tpu.trace_stop"() : () -> ()
    %c0_31 = arith.constant 0 : index
    %c0_32 = arith.constant 0 : index
    %c0_33 = arith.constant 0 : index
    %c0_34 = arith.constant 0 : index
    %59 = vector.load %arg9[%c0_31, %c0_32, %c0_33, %c0_34] : memref<2x4x1x8xf32, #tpu.memory_space<vmem>>, vector<1x4x1x8xf32>
    %60 = vector.shape_cast %59 : vector<1x4x1x8xf32> to vector<4x1x8xf32>
    %61 = vector.shape_cast %60 : vector<4x1x8xf32> to vector<1x4x1x8xf32>
    %62 = vector.shape_cast %61 : vector<1x4x1x8xf32> to vector<1x4x1x8xf32>
    %63 = vector.broadcast %62 : vector<1x4x1x8xf32> to vector<2x4x1x8xf32>
    %64 = vector.shape_cast %63 : vector<2x4x1x8xf32> to vector<8x1x8xf32>
    %65 = vector.broadcast %64 : vector<8x1x8xf32> to vector<8x8x8xf32>
    %66 = arith.addf %58, %65 : vector<8x8x8xf32>
    %c0_35 = arith.constant 0 : index
    %c0_36 = arith.constant 0 : index
    %c0_37 = arith.constant 0 : index
    %c0_38 = arith.constant 0 : index
    %67 = vector.load %arg7[%c0_35, %c0_36, %c0_37, %c0_38] : memref<2x4x32x8xbf16, #tpu.memory_space<vmem>>, vector<1x4x32x8xbf16>
    %68 = vector.shape_cast %67 : vector<1x4x32x8xbf16> to vector<4x32x8xbf16>
    %69 = vector.shape_cast %68 : vector<4x32x8xbf16> to vector<1x4x32x8xbf16>
    %70 = vector.shape_cast %69 : vector<1x4x32x8xbf16> to vector<1x4x32x8xbf16>
    %71 = vector.broadcast %70 : vector<1x4x32x8xbf16> to vector<2x4x32x8xbf16>
    %72 = vector.shape_cast %71 : vector<2x4x32x8xbf16> to vector<8x32x8xbf16>
    "tpu.trace_start"() <{level = 10 : i32, message = "gsh,ghd->gsd"}> : () -> ()
    %cst_39 = arith.constant dense<0.000000e+00> : vector<8x8x8xf32>
    %73 = tpu.matmul %36, %72, %cst_39 {dimension_numbers = #tpu.dot_dimension_numbers<[2], [1], [1], [2], [0, 0, 0, 1, 1, 2], [0], [0]>} : vector<8x8x32xbf16>, vector<8x32x8xbf16>, vector<8x8x8xf32> -> vector<8x8x8xf32>
    "tpu.trace_stop"() : () -> ()
    %c0_40 = arith.constant 0 : index
    %c0_41 = arith.constant 0 : index
    %c0_42 = arith.constant 0 : index
    %c0_43 = arith.constant 0 : index
    %74 = vector.load %arg10[%c0_40, %c0_41, %c0_42, %c0_43] : memref<2x4x1x8xf32, #tpu.memory_space<vmem>>, vector<1x4x1x8xf32>
    %75 = vector.shape_cast %74 : vector<1x4x1x8xf32> to vector<4x1x8xf32>
    %76 = vector.shape_cast %75 : vector<4x1x8xf32> to vector<1x4x1x8xf32>
    %77 = vector.shape_cast %76 : vector<1x4x1x8xf32> to vector<1x4x1x8xf32>
    %78 = vector.broadcast %77 : vector<1x4x1x8xf32> to vector<2x4x1x8xf32>
    %79 = vector.shape_cast %78 : vector<2x4x1x8xf32> to vector<8x1x8xf32>
    %80 = vector.broadcast %79 : vector<8x1x8xf32> to vector<8x8x8xf32>
    %81 = arith.addf %73, %80 : vector<8x8x8xf32>
    %82 = arith.truncf %51 : vector<8x8x8xf32> to vector<8x8x8xbf16>
    %83 = arith.truncf %66 : vector<8x8x8xf32> to vector<8x8x8xbf16>
    "tpu.trace_start"() <{level = 10 : i32, message = "gqd,gkd->gqk"}> : () -> ()
    %cst_44 = arith.constant dense<0.000000e+00> : vector<8x8x8xf32>
    %84 = tpu.matmul %82, %83, %cst_44 {dimension_numbers = #tpu.dot_dimension_numbers<[2], [2], [1], [1], [0, 0, 0, 1, 1, 1], [0], [0]>} : vector<8x8x8xbf16>, vector<8x8x8xbf16>, vector<8x8x8xf32> -> vector<8x8x8xf32>
    "tpu.trace_stop"() : () -> ()
    %cst_45 = arith.constant 0.353553385 : f32
    %85 = vector.broadcast %cst_45 : f32 to vector<8x8x8xf32>
    %86 = arith.mulf %84, %85 : vector<8x8x8xf32>
    %87 = vector.broadcast %31 : vector<8x1x8xf32> to vector<8x8x8xf32>
    %88 = arith.addf %86, %87 : vector<8x8x8xf32>
    %cst_46 = arith.constant dense<0xFF800000> : vector<8x8xf32>
    %89 = vector.multi_reduction <maximumf>, %88, %cst_46 [2] : vector<8x8x8xf32> to vector<8x8xf32>
    %90 = vector.shape_cast %89 : vector<8x8xf32> to vector<8x8x1xf32>
    %91 = vector.broadcast %90 : vector<8x8x1xf32> to vector<8x8x8xf32>
    %92 = arith.subf %88, %91 : vector<8x8x8xf32>
    %93 = math.exp %92 : vector<8x8x8xf32>
    %cst_47 = arith.constant dense<0.000000e+00> : vector<8x8xf32>
    %94 = vector.multi_reduction <add>, %93, %cst_47 [2] : vector<8x8x8xf32> to vector<8x8xf32>
    %95 = vector.shape_cast %94 : vector<8x8xf32> to vector<8x8x1xf32>
    %96 = tpu.reciprocal %95 {approx = true} : vector<8x8x1xf32> -> vector<8x8x1xf32>
    %97 = vector.broadcast %96 : vector<8x8x1xf32> to vector<8x8x8xf32>
    %98 = arith.mulf %93, %97 : vector<8x8x8xf32>
    %99 = arith.truncf %98 : vector<8x8x8xf32> to vector<8x8x8xbf16>
    %100 = arith.truncf %81 : vector<8x8x8xf32> to vector<8x8x8xbf16>
    "tpu.trace_start"() <{level = 10 : i32, message = "gqk,gkd->gqd"}> : () -> ()
    %cst_48 = arith.constant dense<0.000000e+00> : vector<8x8x8xf32>
    %101 = tpu.matmul %99, %100, %cst_48 {dimension_numbers = #tpu.dot_dimension_numbers<[2], [1], [1], [2], [0, 0, 0, 1, 1, 2], [0], [0]>} : vector<8x8x8xbf16>, vector<8x8x8xbf16>, vector<8x8x8xf32> -> vector<8x8x8xf32>
    "tpu.trace_stop"() : () -> ()
    %102 = arith.truncf %101 : vector<8x8x8xf32> to vector<8x8x8xbf16>
    %c0_49 = arith.constant 0 : index
    %c0_50 = arith.constant 0 : index
    %c0_51 = arith.constant 0 : index
    %c0_52 = arith.constant 0 : index
    %103 = vector.load %arg11[%c0_49, %c0_50, %c0_51, %c0_52] : memref<2x4x8x32xbf16, #tpu.memory_space<vmem>>, vector<1x4x8x32xbf16>
    %104 = vector.shape_cast %103 : vector<1x4x8x32xbf16> to vector<4x8x32xbf16>
    %105 = vector.shape_cast %104 : vector<4x8x32xbf16> to vector<1x4x8x32xbf16>
    %106 = vector.shape_cast %105 : vector<1x4x8x32xbf16> to vector<1x4x8x32xbf16>
    %107 = vector.broadcast %106 : vector<1x4x8x32xbf16> to vector<2x4x8x32xbf16>
    %108 = vector.shape_cast %107 : vector<2x4x8x32xbf16> to vector<8x8x32xbf16>
    "tpu.trace_start"() <{level = 10 : i32, message = "gsd,gdh->gsh"}> : () -> ()
    %cst_53 = arith.constant dense<0.000000e+00> : vector<8x8x32xf32>
    %109 = tpu.matmul %102, %108, %cst_53 {dimension_numbers = #tpu.dot_dimension_numbers<[2], [1], [1], [2], [0, 0, 0, 1, 1, 2], [0], [0]>} : vector<8x8x8xbf16>, vector<8x8x32xbf16>, vector<8x8x32xf32> -> vector<8x8x32xf32>
    "tpu.trace_stop"() : () -> ()
    %110 = vector.shape_cast %109 : vector<8x8x32xf32> to vector<2x4x8x32xf32>
    %111 = vector.extract_strided_slice %110 {offsets = [0, 0, 0, 0], sizes = [2, 1, 8, 32], strides = [1, 1, 1, 1]} : vector<2x4x8x32xf32> to vector<2x1x8x32xf32>
    %112 = vector.shape_cast %111 : vector<2x1x8x32xf32> to vector<2x8x32xf32>
    %113 = vector.extract_strided_slice %110 {offsets = [0, 1, 0, 0], sizes = [2, 1, 8, 32], strides = [1, 1, 1, 1]} : vector<2x4x8x32xf32> to vector<2x1x8x32xf32>
    %114 = vector.shape_cast %113 : vector<2x1x8x32xf32> to vector<2x8x32xf32>
    %115 = arith.addf %112, %114 : vector<2x8x32xf32>
    %116 = vector.extract_strided_slice %110 {offsets = [0, 2, 0, 0], sizes = [2, 1, 8, 32], strides = [1, 1, 1, 1]} : vector<2x4x8x32xf32> to vector<2x1x8x32xf32>
    %117 = vector.shape_cast %116 : vector<2x1x8x32xf32> to vector<2x8x32xf32>
    %118 = arith.addf %115, %117 : vector<2x8x32xf32>
    %119 = vector.extract_strided_slice %110 {offsets = [0, 3, 0, 0], sizes = [2, 1, 8, 32], strides = [1, 1, 1, 1]} : vector<2x4x8x32xf32> to vector<2x1x8x32xf32>
    %120 = vector.shape_cast %119 : vector<2x1x8x32xf32> to vector<2x8x32xf32>
    %121 = arith.addf %118, %120 : vector<2x8x32xf32>
    %c0_54 = arith.constant 0 : index
    %c0_55 = arith.constant 0 : index
    %c0_56 = arith.constant 0 : index
    %c0_57 = arith.constant 0 : index
    %122 = vector.load %arg12[%c0_54, %c0_55, %c0_56, %c0_57] : memref<2x1x1x32xf32, #tpu.memory_space<vmem>>, vector<1x1x1x32xf32>
    %123 = vector.shape_cast %122 : vector<1x1x1x32xf32> to vector<1x1x32xf32>
    %124 = vector.broadcast %123 : vector<1x1x32xf32> to vector<2x8x32xf32>
    %125 = arith.addf %121, %124 : vector<2x8x32xf32>
    %126 = arith.addf %125, %22 : vector<2x8x32xf32>
    %c0_58 = arith.constant 0 : index
    %c0_59 = arith.constant 0 : index
    %c0_60 = arith.constant 0 : index
    %c0_61 = arith.constant 0 : index
    %127 = vector.load %arg13[%c0_58, %c0_59, %c0_60, %c0_61] : memref<2x1x1x32xf32, #tpu.memory_space<vmem>>, vector<1x1x1x32xf32>
    %128 = vector.shape_cast %127 : vector<1x1x1x32xf32> to vector<1x1x32xf32>
    %c0_62 = arith.constant 0 : index
    %c0_63 = arith.constant 0 : index
    %c0_64 = arith.constant 0 : index
    %c0_65 = arith.constant 0 : index
    %129 = vector.load %arg14[%c0_62, %c0_63, %c0_64, %c0_65] : memref<2x1x1x32xf32, #tpu.memory_space<vmem>>, vector<1x1x1x32xf32>
    %130 = vector.shape_cast %129 : vector<1x1x1x32xf32> to vector<1x1x32xf32>
    %cst_66 = arith.constant dense<0.000000e+00> : vector<2x8xf32>
    %131 = vector.multi_reduction <add>, %126, %cst_66 [2] : vector<2x8x32xf32> to vector<2x8xf32>
    %132 = vector.shape_cast %131 : vector<2x8xf32> to vector<2x8x1xf32>
    %cst_67 = arith.constant 3.200000e+01 : f32
    %133 = vector.broadcast %cst_67 : f32 to vector<2x8x1xf32>
    %134 = arith.divf %132, %133 : vector<2x8x1xf32>
    %135 = vector.broadcast %134 : vector<2x8x1xf32> to vector<2x8x32xf32>
    %136 = arith.subf %126, %135 : vector<2x8x32xf32>
    %137 = arith.mulf %136, %136 : vector<2x8x32xf32>
    %cst_68 = arith.constant dense<0.000000e+00> : vector<2x8xf32>
    %138 = vector.multi_reduction <add>, %137, %cst_68 [2] : vector<2x8x32xf32> to vector<2x8xf32>
    %139 = vector.shape_cast %138 : vector<2x8xf32> to vector<2x8x1xf32>
    %cst_69 = arith.constant 3.200000e+01 : f32
    %140 = vector.broadcast %cst_69 : f32 to vector<2x8x1xf32>
    %141 = arith.divf %139, %140 : vector<2x8x1xf32>
    %cst_70 = arith.constant 9.99999996E-13 : f32
    %142 = vector.broadcast %cst_70 : f32 to vector<2x8x1xf32>
    %143 = arith.addf %141, %142 : vector<2x8x1xf32>
    %144 = math.rsqrt %143 : vector<2x8x1xf32>
    %145 = vector.broadcast %144 : vector<2x8x1xf32> to vector<2x8x32xf32>
    %146 = arith.mulf %136, %145 : vector<2x8x32xf32>
    %147 = vector.broadcast %128 : vector<1x1x32xf32> to vector<2x8x32xf32>
    %148 = arith.mulf %146, %147 : vector<2x8x32xf32>
    %149 = vector.broadcast %130 : vector<1x1x32xf32> to vector<2x8x32xf32>
    %150 = arith.addf %148, %149 : vector<2x8x32xf32>
    %c0_71 = arith.constant 0 : index
    %c0_72 = arith.constant 0 : index
    %c0_73 = arith.constant 0 : index
    %151 = vector.load %arg15[%c0_71, %c0_72, %c0_73] : memref<2x32x128xbf16, #tpu.memory_space<vmem>>, vector<1x32x128xbf16>
    %152 = vector.shape_cast %151 : vector<1x32x128xbf16> to vector<32x128xbf16>
    %153 = vector.shape_cast %152 : vector<32x128xbf16> to vector<1x32x128xbf16>
    %154 = vector.shape_cast %153 : vector<1x32x128xbf16> to vector<1x32x128xbf16>
    %155 = vector.broadcast %154 : vector<1x32x128xbf16> to vector<2x32x128xbf16>
    %156 = arith.truncf %150 : vector<2x8x32xf32> to vector<2x8x32xbf16>
    "tpu.trace_start"() <{level = 10 : i32, message = "bsh,bhm->bsm"}> : () -> ()
    %cst_74 = arith.constant dense<0.000000e+00> : vector<2x8x128xf32>
    %157 = tpu.matmul %156, %155, %cst_74 {dimension_numbers = #tpu.dot_dimension_numbers<[2], [1], [1], [2], [0, 0, 0, 1, 1, 2], [0], [0]>} : vector<2x8x32xbf16>, vector<2x32x128xbf16>, vector<2x8x128xf32> -> vector<2x8x128xf32>
    "tpu.trace_stop"() : () -> ()
    %c0_75 = arith.constant 0 : index
    %c0_76 = arith.constant 0 : index
    %c0_77 = arith.constant 0 : index
    %c0_78 = arith.constant 0 : index
    %158 = vector.load %arg16[%c0_75, %c0_76, %c0_77, %c0_78] : memref<2x1x1x128xf32, #tpu.memory_space<vmem>>, vector<1x1x1x128xf32>
    %159 = vector.shape_cast %158 : vector<1x1x1x128xf32> to vector<1x1x128xf32>
    %160 = vector.broadcast %159 : vector<1x1x128xf32> to vector<2x8x128xf32>
    %161 = arith.addf %157, %160 : vector<2x8x128xf32>
    %cst_79 = arith.constant 5.000000e-01 : f32
    %162 = vector.broadcast %cst_79 : f32 to vector<2x8x128xf32>
    %163 = arith.mulf %162, %161 : vector<2x8x128xf32>
    %cst_80 = arith.constant 0.707106769 : f32
    %164 = vector.broadcast %cst_80 : f32 to vector<2x8x128xf32>
    %165 = arith.mulf %161, %164 : vector<2x8x128xf32>
    %166 = math.erf %165 : vector<2x8x128xf32>
    %cst_81 = arith.constant 1.000000e+00 : f32
    %167 = vector.broadcast %cst_81 : f32 to vector<2x8x128xf32>
    %168 = arith.addf %167, %166 : vector<2x8x128xf32>
    %169 = arith.mulf %163, %168 : vector<2x8x128xf32>
    %c0_82 = arith.constant 0 : index
    %c0_83 = arith.constant 0 : index
    %c0_84 = arith.constant 0 : index
    %170 = vector.load %arg17[%c0_82, %c0_83, %c0_84] : memref<2x128x32xbf16, #tpu.memory_space<vmem>>, vector<1x128x32xbf16>
    %171 = vector.shape_cast %170 : vector<1x128x32xbf16> to vector<128x32xbf16>
    %172 = vector.shape_cast %171 : vector<128x32xbf16> to vector<1x128x32xbf16>
    %173 = vector.shape_cast %172 : vector<1x128x32xbf16> to vector<1x128x32xbf16>
    %174 = vector.broadcast %173 : vector<1x128x32xbf16> to vector<2x128x32xbf16>
    %175 = arith.truncf %169 : vector<2x8x128xf32> to vector<2x8x128xbf16>
    "tpu.trace_start"() <{level = 10 : i32, message = "bsm,bmh->bsh"}> : () -> ()
    %cst_85 = arith.constant dense<0.000000e+00> : vector<2x8x32xf32>
    %176 = tpu.matmul %175, %174, %cst_85 {dimension_numbers = #tpu.dot_dimension_numbers<[2], [1], [1], [2], [0, 0, 0, 1, 1, 2], [0], [0]>} : vector<2x8x128xbf16>, vector<2x128x32xbf16>, vector<2x8x32xf32> -> vector<2x8x32xf32>
    "tpu.trace_stop"() : () -> ()
    %c0_86 = arith.constant 0 : index
    %c0_87 = arith.constant 0 : index
    %c0_88 = arith.constant 0 : index
    %c0_89 = arith.constant 0 : index
    %177 = vector.load %arg18[%c0_86, %c0_87, %c0_88, %c0_89] : memref<2x1x1x32xf32, #tpu.memory_space<vmem>>, vector<1x1x1x32xf32>
    %178 = vector.shape_cast %177 : vector<1x1x1x32xf32> to vector<1x1x32xf32>
    %179 = vector.broadcast %178 : vector<1x1x32xf32> to vector<2x8x32xf32>
    %180 = arith.addf %176, %179 : vector<2x8x32xf32>
    %181 = arith.addf %180, %150 : vector<2x8x32xf32>
    %c0_90 = arith.constant 0 : index
    %c0_91 = arith.constant 0 : index
    %c0_92 = arith.constant 0 : index
    %c0_93 = arith.constant 0 : index
    %182 = vector.load %arg19[%c0_90, %c0_91, %c0_92, %c0_93] : memref<2x1x1x32xf32, #tpu.memory_space<vmem>>, vector<1x1x1x32xf32>
    %183 = vector.shape_cast %182 : vector<1x1x1x32xf32> to vector<1x1x32xf32>
    %c0_94 = arith.constant 0 : index
    %c0_95 = arith.constant 0 : index
    %c0_96 = arith.constant 0 : index
    %c0_97 = arith.constant 0 : index
    %184 = vector.load %arg20[%c0_94, %c0_95, %c0_96, %c0_97] : memref<2x1x1x32xf32, #tpu.memory_space<vmem>>, vector<1x1x1x32xf32>
    %185 = vector.shape_cast %184 : vector<1x1x1x32xf32> to vector<1x1x32xf32>
    %cst_98 = arith.constant dense<0.000000e+00> : vector<2x8xf32>
    %186 = vector.multi_reduction <add>, %181, %cst_98 [2] : vector<2x8x32xf32> to vector<2x8xf32>
    %187 = vector.shape_cast %186 : vector<2x8xf32> to vector<2x8x1xf32>
    %cst_99 = arith.constant 3.200000e+01 : f32
    %188 = vector.broadcast %cst_99 : f32 to vector<2x8x1xf32>
    %189 = arith.divf %187, %188 : vector<2x8x1xf32>
    %190 = vector.broadcast %189 : vector<2x8x1xf32> to vector<2x8x32xf32>
    %191 = arith.subf %181, %190 : vector<2x8x32xf32>
    %192 = arith.mulf %191, %191 : vector<2x8x32xf32>
    %cst_100 = arith.constant dense<0.000000e+00> : vector<2x8xf32>
    %193 = vector.multi_reduction <add>, %192, %cst_100 [2] : vector<2x8x32xf32> to vector<2x8xf32>
    %194 = vector.shape_cast %193 : vector<2x8xf32> to vector<2x8x1xf32>
    %cst_101 = arith.constant 3.200000e+01 : f32
    %195 = vector.broadcast %cst_101 : f32 to vector<2x8x1xf32>
    %196 = arith.divf %194, %195 : vector<2x8x1xf32>
    %cst_102 = arith.constant 9.99999996E-13 : f32
    %197 = vector.broadcast %cst_102 : f32 to vector<2x8x1xf32>
    %198 = arith.addf %196, %197 : vector<2x8x1xf32>
    %199 = math.rsqrt %198 : vector<2x8x1xf32>
    %200 = vector.broadcast %199 : vector<2x8x1xf32> to vector<2x8x32xf32>
    %201 = arith.mulf %191, %200 : vector<2x8x32xf32>
    %202 = vector.broadcast %183 : vector<1x1x32xf32> to vector<2x8x32xf32>
    %203 = arith.mulf %201, %202 : vector<2x8x32xf32>
    %204 = vector.broadcast %185 : vector<1x1x32xf32> to vector<2x8x32xf32>
    %205 = arith.addf %203, %204 : vector<2x8x32xf32>
    %206 = arith.truncf %205 : vector<2x8x32xf32> to vector<2x8x32xbf16>
    %207 = vector.shape_cast %206 : vector<2x8x32xbf16> to vector<2x1x8x32xbf16>
    %208 = vector.shape_cast %207 : vector<2x1x8x32xbf16> to vector<2x1x8x32xbf16>
    %209 = vector.broadcast %208 : vector<2x1x8x32xbf16> to vector<2x4x8x32xbf16>
    %210 = vector.shape_cast %209 : vector<2x4x8x32xbf16> to vector<8x8x32xbf16>
    %c1 = arith.constant 1 : index
    %c0_103 = arith.constant 0 : index
    %c0_104 = arith.constant 0 : index
    %c0_105 = arith.constant 0 : index
    %211 = vector.load %arg5[%c1, %c0_103, %c0_104, %c0_105] : memref<2x4x32x8xbf16, #tpu.memory_space<vmem>>, vector<1x4x32x8xbf16>
    %212 = vector.shape_cast %211 : vector<1x4x32x8xbf16> to vector<4x32x8xbf16>
    %213 = vector.shape_cast %212 : vector<4x32x8xbf16> to vector<1x4x32x8xbf16>
    %214 = vector.shape_cast %213 : vector<1x4x32x8xbf16> to vector<1x4x32x8xbf16>
    %215 = vector.broadcast %214 : vector<1x4x32x8xbf16> to vector<2x4x32x8xbf16>
    %216 = vector.shape_cast %215 : vector<2x4x32x8xbf16> to vector<8x32x8xbf16>
    "tpu.trace_start"() <{level = 10 : i32, message = "gsh,ghd->gsd"}> : () -> ()
    %cst_106 = arith.constant dense<0.000000e+00> : vector<8x8x8xf32>
    %217 = tpu.matmul %210, %216, %cst_106 {dimension_numbers = #tpu.dot_dimension_numbers<[2], [1], [1], [2], [0, 0, 0, 1, 1, 2], [0], [0]>} : vector<8x8x32xbf16>, vector<8x32x8xbf16>, vector<8x8x8xf32> -> vector<8x8x8xf32>
    "tpu.trace_stop"() : () -> ()
    %c1_107 = arith.constant 1 : index
    %c0_108 = arith.constant 0 : index
    %c0_109 = arith.constant 0 : index
    %c0_110 = arith.constant 0 : index
    %218 = vector.load %arg8[%c1_107, %c0_108, %c0_109, %c0_110] : memref<2x4x1x8xf32, #tpu.memory_space<vmem>>, vector<1x4x1x8xf32>
    %219 = vector.shape_cast %218 : vector<1x4x1x8xf32> to vector<4x1x8xf32>
    %220 = vector.shape_cast %219 : vector<4x1x8xf32> to vector<1x4x1x8xf32>
    %221 = vector.shape_cast %220 : vector<1x4x1x8xf32> to vector<1x4x1x8xf32>
    %222 = vector.broadcast %221 : vector<1x4x1x8xf32> to vector<2x4x1x8xf32>
    %223 = vector.shape_cast %222 : vector<2x4x1x8xf32> to vector<8x1x8xf32>
    %224 = vector.broadcast %223 : vector<8x1x8xf32> to vector<8x8x8xf32>
    %225 = arith.addf %217, %224 : vector<8x8x8xf32>
    %c1_111 = arith.constant 1 : index
    %c0_112 = arith.constant 0 : index
    %c0_113 = arith.constant 0 : index
    %c0_114 = arith.constant 0 : index
    %226 = vector.load %arg6[%c1_111, %c0_112, %c0_113, %c0_114] : memref<2x4x32x8xbf16, #tpu.memory_space<vmem>>, vector<1x4x32x8xbf16>
    %227 = vector.shape_cast %226 : vector<1x4x32x8xbf16> to vector<4x32x8xbf16>
    %228 = vector.shape_cast %227 : vector<4x32x8xbf16> to vector<1x4x32x8xbf16>
    %229 = vector.shape_cast %228 : vector<1x4x32x8xbf16> to vector<1x4x32x8xbf16>
    %230 = vector.broadcast %229 : vector<1x4x32x8xbf16> to vector<2x4x32x8xbf16>
    %231 = vector.shape_cast %230 : vector<2x4x32x8xbf16> to vector<8x32x8xbf16>
    "tpu.trace_start"() <{level = 10 : i32, message = "gsh,ghd->gsd"}> : () -> ()
    %cst_115 = arith.constant dense<0.000000e+00> : vector<8x8x8xf32>
    %232 = tpu.matmul %210, %231, %cst_115 {dimension_numbers = #tpu.dot_dimension_numbers<[2], [1], [1], [2], [0, 0, 0, 1, 1, 2], [0], [0]>} : vector<8x8x32xbf16>, vector<8x32x8xbf16>, vector<8x8x8xf32> -> vector<8x8x8xf32>
    "tpu.trace_stop"() : () -> ()
    %c1_116 = arith.constant 1 : index
    %c0_117 = arith.constant 0 : index
    %c0_118 = arith.constant 0 : index
    %c0_119 = arith.constant 0 : index
    %233 = vector.load %arg9[%c1_116, %c0_117, %c0_118, %c0_119] : memref<2x4x1x8xf32, #tpu.memory_space<vmem>>, vector<1x4x1x8xf32>
    %234 = vector.shape_cast %233 : vector<1x4x1x8xf32> to vector<4x1x8xf32>
    %235 = vector.shape_cast %234 : vector<4x1x8xf32> to vector<1x4x1x8xf32>
    %236 = vector.shape_cast %235 : vector<1x4x1x8xf32> to vector<1x4x1x8xf32>
    %237 = vector.broadcast %236 : vector<1x4x1x8xf32> to vector<2x4x1x8xf32>
    %238 = vector.shape_cast %237 : vector<2x4x1x8xf32> to vector<8x1x8xf32>
    %239 = vector.broadcast %238 : vector<8x1x8xf32> to vector<8x8x8xf32>
    %240 = arith.addf %232, %239 : vector<8x8x8xf32>
    %c1_120 = arith.constant 1 : index
    %c0_121 = arith.constant 0 : index
    %c0_122 = arith.constant 0 : index
    %c0_123 = arith.constant 0 : index
    %241 = vector.load %arg7[%c1_120, %c0_121, %c0_122, %c0_123] : memref<2x4x32x8xbf16, #tpu.memory_space<vmem>>, vector<1x4x32x8xbf16>
    %242 = vector.shape_cast %241 : vector<1x4x32x8xbf16> to vector<4x32x8xbf16>
    %243 = vector.shape_cast %242 : vector<4x32x8xbf16> to vector<1x4x32x8xbf16>
    %244 = vector.shape_cast %243 : vector<1x4x32x8xbf16> to vector<1x4x32x8xbf16>
    %245 = vector.broadcast %244 : vector<1x4x32x8xbf16> to vector<2x4x32x8xbf16>
    %246 = vector.shape_cast %245 : vector<2x4x32x8xbf16> to vector<8x32x8xbf16>
    "tpu.trace_start"() <{level = 10 : i32, message = "gsh,ghd->gsd"}> : () -> ()
    %cst_124 = arith.constant dense<0.000000e+00> : vector<8x8x8xf32>
    %247 = tpu.matmul %210, %246, %cst_124 {dimension_numbers = #tpu.dot_dimension_numbers<[2], [1], [1], [2], [0, 0, 0, 1, 1, 2], [0], [0]>} : vector<8x8x32xbf16>, vector<8x32x8xbf16>, vector<8x8x8xf32> -> vector<8x8x8xf32>
    "tpu.trace_stop"() : () -> ()
    %c1_125 = arith.constant 1 : index
    %c0_126 = arith.constant 0 : index
    %c0_127 = arith.constant 0 : index
    %c0_128 = arith.constant 0 : index
    %248 = vector.load %arg10[%c1_125, %c0_126, %c0_127, %c0_128] : memref<2x4x1x8xf32, #tpu.memory_space<vmem>>, vector<1x4x1x8xf32>
    %249 = vector.shape_cast %248 : vector<1x4x1x8xf32> to vector<4x1x8xf32>
    %250 = vector.shape_cast %249 : vector<4x1x8xf32> to vector<1x4x1x8xf32>
    %251 = vector.shape_cast %250 : vector<1x4x1x8xf32> to vector<1x4x1x8xf32>
    %252 = vector.broadcast %251 : vector<1x4x1x8xf32> to vector<2x4x1x8xf32>
    %253 = vector.shape_cast %252 : vector<2x4x1x8xf32> to vector<8x1x8xf32>
    %254 = vector.broadcast %253 : vector<8x1x8xf32> to vector<8x8x8xf32>
    %255 = arith.addf %247, %254 : vector<8x8x8xf32>
    %256 = arith.truncf %225 : vector<8x8x8xf32> to vector<8x8x8xbf16>
    %257 = arith.truncf %240 : vector<8x8x8xf32> to vector<8x8x8xbf16>
    "tpu.trace_start"() <{level = 10 : i32, message = "gqd,gkd->gqk"}> : () -> ()
    %cst_129 = arith.constant dense<0.000000e+00> : vector<8x8x8xf32>
    %258 = tpu.matmul %256, %257, %cst_129 {dimension_numbers = #tpu.dot_dimension_numbers<[2], [2], [1], [1], [0, 0, 0, 1, 1, 1], [0], [0]>} : vector<8x8x8xbf16>, vector<8x8x8xbf16>, vector<8x8x8xf32> -> vector<8x8x8xf32>
    "tpu.trace_stop"() : () -> ()
    %cst_130 = arith.constant 0.353553385 : f32
    %259 = vector.broadcast %cst_130 : f32 to vector<8x8x8xf32>
    %260 = arith.mulf %258, %259 : vector<8x8x8xf32>
    %261 = vector.broadcast %31 : vector<8x1x8xf32> to vector<8x8x8xf32>
    %262 = arith.addf %260, %261 : vector<8x8x8xf32>
    %cst_131 = arith.constant dense<0xFF800000> : vector<8x8xf32>
    %263 = vector.multi_reduction <maximumf>, %262, %cst_131 [2] : vector<8x8x8xf32> to vector<8x8xf32>
    %264 = vector.shape_cast %263 : vector<8x8xf32> to vector<8x8x1xf32>
    %265 = vector.broadcast %264 : vector<8x8x1xf32> to vector<8x8x8xf32>
    %266 = arith.subf %262, %265 : vector<8x8x8xf32>
    %267 = math.exp %266 : vector<8x8x8xf32>
    %cst_132 = arith.constant dense<0.000000e+00> : vector<8x8xf32>
    %268 = vector.multi_reduction <add>, %267, %cst_132 [2] : vector<8x8x8xf32> to vector<8x8xf32>
    %269 = vector.shape_cast %268 : vector<8x8xf32> to vector<8x8x1xf32>
    %270 = tpu.reciprocal %269 {approx = true} : vector<8x8x1xf32> -> vector<8x8x1xf32>
    %271 = vector.broadcast %270 : vector<8x8x1xf32> to vector<8x8x8xf32>
    %272 = arith.mulf %267, %271 : vector<8x8x8xf32>
    %273 = arith.truncf %272 : vector<8x8x8xf32> to vector<8x8x8xbf16>
    %274 = arith.truncf %255 : vector<8x8x8xf32> to vector<8x8x8xbf16>
    "tpu.trace_start"() <{level = 10 : i32, message = "gqk,gkd->gqd"}> : () -> ()
    %cst_133 = arith.constant dense<0.000000e+00> : vector<8x8x8xf32>
    %275 = tpu.matmul %273, %274, %cst_133 {dimension_numbers = #tpu.dot_dimension_numbers<[2], [1], [1], [2], [0, 0, 0, 1, 1, 2], [0], [0]>} : vector<8x8x8xbf16>, vector<8x8x8xbf16>, vector<8x8x8xf32> -> vector<8x8x8xf32>
    "tpu.trace_stop"() : () -> ()
    %276 = arith.truncf %275 : vector<8x8x8xf32> to vector<8x8x8xbf16>
    %c1_134 = arith.constant 1 : index
    %c0_135 = arith.constant 0 : index
    %c0_136 = arith.constant 0 : index
    %c0_137 = arith.constant 0 : index
    %277 = vector.load %arg11[%c1_134, %c0_135, %c0_136, %c0_137] : memref<2x4x8x32xbf16, #tpu.memory_space<vmem>>, vector<1x4x8x32xbf16>
    %278 = vector.shape_cast %277 : vector<1x4x8x32xbf16> to vector<4x8x32xbf16>
    %279 = vector.shape_cast %278 : vector<4x8x32xbf16> to vector<1x4x8x32xbf16>
    %280 = vector.shape_cast %279 : vector<1x4x8x32xbf16> to vector<1x4x8x32xbf16>
    %281 = vector.broadcast %280 : vector<1x4x8x32xbf16> to vector<2x4x8x32xbf16>
    %282 = vector.shape_cast %281 : vector<2x4x8x32xbf16> to vector<8x8x32xbf16>
    "tpu.trace_start"() <{level = 10 : i32, message = "gsd,gdh->gsh"}> : () -> ()
    %cst_138 = arith.constant dense<0.000000e+00> : vector<8x8x32xf32>
    %283 = tpu.matmul %276, %282, %cst_138 {dimension_numbers = #tpu.dot_dimension_numbers<[2], [1], [1], [2], [0, 0, 0, 1, 1, 2], [0], [0]>} : vector<8x8x8xbf16>, vector<8x8x32xbf16>, vector<8x8x32xf32> -> vector<8x8x32xf32>
    "tpu.trace_stop"() : () -> ()
    %284 = vector.shape_cast %283 : vector<8x8x32xf32> to vector<2x4x8x32xf32>
    %285 = vector.extract_strided_slice %284 {offsets = [0, 0, 0, 0], sizes = [2, 1, 8, 32], strides = [1, 1, 1, 1]} : vector<2x4x8x32xf32> to vector<2x1x8x32xf32>
    %286 = vector.shape_cast %285 : vector<2x1x8x32xf32> to vector<2x8x32xf32>
    %287 = vector.extract_strided_slice %284 {offsets = [0, 1, 0, 0], sizes = [2, 1, 8, 32], strides = [1, 1, 1, 1]} : vector<2x4x8x32xf32> to vector<2x1x8x32xf32>
    %288 = vector.shape_cast %287 : vector<2x1x8x32xf32> to vector<2x8x32xf32>
    %289 = arith.addf %286, %288 : vector<2x8x32xf32>
    %290 = vector.extract_strided_slice %284 {offsets = [0, 2, 0, 0], sizes = [2, 1, 8, 32], strides = [1, 1, 1, 1]} : vector<2x4x8x32xf32> to vector<2x1x8x32xf32>
    %291 = vector.shape_cast %290 : vector<2x1x8x32xf32> to vector<2x8x32xf32>
    %292 = arith.addf %289, %291 : vector<2x8x32xf32>
    %293 = vector.extract_strided_slice %284 {offsets = [0, 3, 0, 0], sizes = [2, 1, 8, 32], strides = [1, 1, 1, 1]} : vector<2x4x8x32xf32> to vector<2x1x8x32xf32>
    %294 = vector.shape_cast %293 : vector<2x1x8x32xf32> to vector<2x8x32xf32>
    %295 = arith.addf %292, %294 : vector<2x8x32xf32>
    %c1_139 = arith.constant 1 : index
    %c0_140 = arith.constant 0 : index
    %c0_141 = arith.constant 0 : index
    %c0_142 = arith.constant 0 : index
    %296 = vector.load %arg12[%c1_139, %c0_140, %c0_141, %c0_142] : memref<2x1x1x32xf32, #tpu.memory_space<vmem>>, vector<1x1x1x32xf32>
    %297 = vector.shape_cast %296 : vector<1x1x1x32xf32> to vector<1x1x32xf32>
    %298 = vector.broadcast %297 : vector<1x1x32xf32> to vector<2x8x32xf32>
    %299 = arith.addf %295, %298 : vector<2x8x32xf32>
    %300 = arith.addf %299, %205 : vector<2x8x32xf32>
    %c1_143 = arith.constant 1 : index
    %c0_144 = arith.constant 0 : index
    %c0_145 = arith.constant 0 : index
    %c0_146 = arith.constant 0 : index
    %301 = vector.load %arg13[%c1_143, %c0_144, %c0_145, %c0_146] : memref<2x1x1x32xf32, #tpu.memory_space<vmem>>, vector<1x1x1x32xf32>
    %302 = vector.shape_cast %301 : vector<1x1x1x32xf32> to vector<1x1x32xf32>
    %c1_147 = arith.constant 1 : index
    %c0_148 = arith.constant 0 : index
    %c0_149 = arith.constant 0 : index
    %c0_150 = arith.constant 0 : index
    %303 = vector.load %arg14[%c1_147, %c0_148, %c0_149, %c0_150] : memref<2x1x1x32xf32, #tpu.memory_space<vmem>>, vector<1x1x1x32xf32>
    %304 = vector.shape_cast %303 : vector<1x1x1x32xf32> to vector<1x1x32xf32>
    %cst_151 = arith.constant dense<0.000000e+00> : vector<2x8xf32>
    %305 = vector.multi_reduction <add>, %300, %cst_151 [2] : vector<2x8x32xf32> to vector<2x8xf32>
    %306 = vector.shape_cast %305 : vector<2x8xf32> to vector<2x8x1xf32>
    %cst_152 = arith.constant 3.200000e+01 : f32
    %307 = vector.broadcast %cst_152 : f32 to vector<2x8x1xf32>
    %308 = arith.divf %306, %307 : vector<2x8x1xf32>
    %309 = vector.broadcast %308 : vector<2x8x1xf32> to vector<2x8x32xf32>
    %310 = arith.subf %300, %309 : vector<2x8x32xf32>
    %311 = arith.mulf %310, %310 : vector<2x8x32xf32>
    %cst_153 = arith.constant dense<0.000000e+00> : vector<2x8xf32>
    %312 = vector.multi_reduction <add>, %311, %cst_153 [2] : vector<2x8x32xf32> to vector<2x8xf32>
    %313 = vector.shape_cast %312 : vector<2x8xf32> to vector<2x8x1xf32>
    %cst_154 = arith.constant 3.200000e+01 : f32
    %314 = vector.broadcast %cst_154 : f32 to vector<2x8x1xf32>
    %315 = arith.divf %313, %314 : vector<2x8x1xf32>
    %cst_155 = arith.constant 9.99999996E-13 : f32
    %316 = vector.broadcast %cst_155 : f32 to vector<2x8x1xf32>
    %317 = arith.addf %315, %316 : vector<2x8x1xf32>
    %318 = math.rsqrt %317 : vector<2x8x1xf32>
    %319 = vector.broadcast %318 : vector<2x8x1xf32> to vector<2x8x32xf32>
    %320 = arith.mulf %310, %319 : vector<2x8x32xf32>
    %321 = vector.broadcast %302 : vector<1x1x32xf32> to vector<2x8x32xf32>
    %322 = arith.mulf %320, %321 : vector<2x8x32xf32>
    %323 = vector.broadcast %304 : vector<1x1x32xf32> to vector<2x8x32xf32>
    %324 = arith.addf %322, %323 : vector<2x8x32xf32>
    %c1_156 = arith.constant 1 : index
    %c0_157 = arith.constant 0 : index
    %c0_158 = arith.constant 0 : index
    %325 = vector.load %arg15[%c1_156, %c0_157, %c0_158] : memref<2x32x128xbf16, #tpu.memory_space<vmem>>, vector<1x32x128xbf16>
    %326 = vector.shape_cast %325 : vector<1x32x128xbf16> to vector<32x128xbf16>
    %327 = vector.shape_cast %326 : vector<32x128xbf16> to vector<1x32x128xbf16>
    %328 = vector.shape_cast %327 : vector<1x32x128xbf16> to vector<1x32x128xbf16>
    %329 = vector.broadcast %328 : vector<1x32x128xbf16> to vector<2x32x128xbf16>
    %330 = arith.truncf %324 : vector<2x8x32xf32> to vector<2x8x32xbf16>
    "tpu.trace_start"() <{level = 10 : i32, message = "bsh,bhm->bsm"}> : () -> ()
    %cst_159 = arith.constant dense<0.000000e+00> : vector<2x8x128xf32>
    %331 = tpu.matmul %330, %329, %cst_159 {dimension_numbers = #tpu.dot_dimension_numbers<[2], [1], [1], [2], [0, 0, 0, 1, 1, 2], [0], [0]>} : vector<2x8x32xbf16>, vector<2x32x128xbf16>, vector<2x8x128xf32> -> vector<2x8x128xf32>
    "tpu.trace_stop"() : () -> ()
    %c1_160 = arith.constant 1 : index
    %c0_161 = arith.constant 0 : index
    %c0_162 = arith.constant 0 : index
    %c0_163 = arith.constant 0 : index
    %332 = vector.load %arg16[%c1_160, %c0_161, %c0_162, %c0_163] : memref<2x1x1x128xf32, #tpu.memory_space<vmem>>, vector<1x1x1x128xf32>
    %333 = vector.shape_cast %332 : vector<1x1x1x128xf32> to vector<1x1x128xf32>
    %334 = vector.broadcast %333 : vector<1x1x128xf32> to vector<2x8x128xf32>
    %335 = arith.addf %331, %334 : vector<2x8x128xf32>
    %cst_164 = arith.constant 5.000000e-01 : f32
    %336 = vector.broadcast %cst_164 : f32 to vector<2x8x128xf32>
    %337 = arith.mulf %336, %335 : vector<2x8x128xf32>
    %cst_165 = arith.constant 0.707106769 : f32
    %338 = vector.broadcast %cst_165 : f32 to vector<2x8x128xf32>
    %339 = arith.mulf %335, %338 : vector<2x8x128xf32>
    %340 = math.erf %339 : vector<2x8x128xf32>
    %cst_166 = arith.constant 1.000000e+00 : f32
    %341 = vector.broadcast %cst_166 : f32 to vector<2x8x128xf32>
    %342 = arith.addf %341, %340 : vector<2x8x128xf32>
    %343 = arith.mulf %337, %342 : vector<2x8x128xf32>
    %c1_167 = arith.constant 1 : index
    %c0_168 = arith.constant 0 : index
    %c0_169 = arith.constant 0 : index
    %344 = vector.load %arg17[%c1_167, %c0_168, %c0_169] : memref<2x128x32xbf16, #tpu.memory_space<vmem>>, vector<1x128x32xbf16>
    %345 = vector.shape_cast %344 : vector<1x128x32xbf16> to vector<128x32xbf16>
    %346 = vector.shape_cast %345 : vector<128x32xbf16> to vector<1x128x32xbf16>
    %347 = vector.shape_cast %346 : vector<1x128x32xbf16> to vector<1x128x32xbf16>
    %348 = vector.broadcast %347 : vector<1x128x32xbf16> to vector<2x128x32xbf16>
    %349 = arith.truncf %343 : vector<2x8x128xf32> to vector<2x8x128xbf16>
    "tpu.trace_start"() <{level = 10 : i32, message = "bsm,bmh->bsh"}> : () -> ()
    %cst_170 = arith.constant dense<0.000000e+00> : vector<2x8x32xf32>
    %350 = tpu.matmul %349, %348, %cst_170 {dimension_numbers = #tpu.dot_dimension_numbers<[2], [1], [1], [2], [0, 0, 0, 1, 1, 2], [0], [0]>} : vector<2x8x128xbf16>, vector<2x128x32xbf16>, vector<2x8x32xf32> -> vector<2x8x32xf32>
    "tpu.trace_stop"() : () -> ()
    %c1_171 = arith.constant 1 : index
    %c0_172 = arith.constant 0 : index
    %c0_173 = arith.constant 0 : index
    %c0_174 = arith.constant 0 : index
    %351 = vector.load %arg18[%c1_171, %c0_172, %c0_173, %c0_174] : memref<2x1x1x32xf32, #tpu.memory_space<vmem>>, vector<1x1x1x32xf32>
    %352 = vector.shape_cast %351 : vector<1x1x1x32xf32> to vector<1x1x32xf32>
    %353 = vector.broadcast %352 : vector<1x1x32xf32> to vector<2x8x32xf32>
    %354 = arith.addf %350, %353 : vector<2x8x32xf32>
    %355 = arith.addf %354, %324 : vector<2x8x32xf32>
    %c1_175 = arith.constant 1 : index
    %c0_176 = arith.constant 0 : index
    %c0_177 = arith.constant 0 : index
    %c0_178 = arith.constant 0 : index
    %356 = vector.load %arg19[%c1_175, %c0_176, %c0_177, %c0_178] : memref<2x1x1x32xf32, #tpu.memory_space<vmem>>, vector<1x1x1x32xf32>
    %357 = vector.shape_cast %356 : vector<1x1x1x32xf32> to vector<1x1x32xf32>
    %c1_179 = arith.constant 1 : index
    %c0_180 = arith.constant 0 : index
    %c0_181 = arith.constant 0 : index
    %c0_182 = arith.constant 0 : index
    %358 = vector.load %arg20[%c1_179, %c0_180, %c0_181, %c0_182] : memref<2x1x1x32xf32, #tpu.memory_space<vmem>>, vector<1x1x1x32xf32>
    %359 = vector.shape_cast %358 : vector<1x1x1x32xf32> to vector<1x1x32xf32>
    %cst_183 = arith.constant dense<0.000000e+00> : vector<2x8xf32>
    %360 = vector.multi_reduction <add>, %355, %cst_183 [2] : vector<2x8x32xf32> to vector<2x8xf32>
    %361 = vector.shape_cast %360 : vector<2x8xf32> to vector<2x8x1xf32>
    %cst_184 = arith.constant 3.200000e+01 : f32
    %362 = vector.broadcast %cst_184 : f32 to vector<2x8x1xf32>
    %363 = arith.divf %361, %362 : vector<2x8x1xf32>
    %364 = vector.broadcast %363 : vector<2x8x1xf32> to vector<2x8x32xf32>
    %365 = arith.subf %355, %364 : vector<2x8x32xf32>
    %366 = arith.mulf %365, %365 : vector<2x8x32xf32>
    %cst_185 = arith.constant dense<0.000000e+00> : vector<2x8xf32>
    %367 = vector.multi_reduction <add>, %366, %cst_185 [2] : vector<2x8x32xf32> to vector<2x8xf32>
    %368 = vector.shape_cast %367 : vector<2x8xf32> to vector<2x8x1xf32>
    %cst_186 = arith.constant 3.200000e+01 : f32
    %369 = vector.broadcast %cst_186 : f32 to vector<2x8x1xf32>
    %370 = arith.divf %368, %369 : vector<2x8x1xf32>
    %cst_187 = arith.constant 9.99999996E-13 : f32
    %371 = vector.broadcast %cst_187 : f32 to vector<2x8x1xf32>
    %372 = arith.addf %370, %371 : vector<2x8x1xf32>
    %373 = math.rsqrt %372 : vector<2x8x1xf32>
    %374 = vector.broadcast %373 : vector<2x8x1xf32> to vector<2x8x32xf32>
    %375 = arith.mulf %365, %374 : vector<2x8x32xf32>
    %376 = vector.broadcast %357 : vector<1x1x32xf32> to vector<2x8x32xf32>
    %377 = arith.mulf %375, %376 : vector<2x8x32xf32>
    %378 = vector.broadcast %359 : vector<1x1x32xf32> to vector<2x8x32xf32>
    %379 = arith.addf %377, %378 : vector<2x8x32xf32>
    %c0_188 = arith.constant 0 : index
    %c0_189 = arith.constant 0 : index
    %380 = vector.load %arg21[%c0_188, %c0_189] : memref<32x128xbf16, #tpu.memory_space<vmem>>, vector<32x128xbf16>
    %381 = vector.shape_cast %380 : vector<32x128xbf16> to vector<1x32x128xbf16>
    %382 = vector.shape_cast %381 : vector<1x32x128xbf16> to vector<1x32x128xbf16>
    %383 = vector.broadcast %382 : vector<1x32x128xbf16> to vector<2x32x128xbf16>
    %384 = arith.truncf %379 : vector<2x8x32xf32> to vector<2x8x32xbf16>
    "tpu.trace_start"() <{level = 10 : i32, message = "bsh,bhp->bsp"}> : () -> ()
    %cst_190 = arith.constant dense<0.000000e+00> : vector<2x8x128xf32>
    %385 = tpu.matmul %384, %383, %cst_190 {dimension_numbers = #tpu.dot_dimension_numbers<[2], [1], [1], [2], [0, 0, 0, 1, 1, 2], [0], [0]>} : vector<2x8x32xbf16>, vector<2x32x128xbf16>, vector<2x8x128xf32> -> vector<2x8x128xf32>
    "tpu.trace_stop"() : () -> ()
    %c0_191 = arith.constant 0 : index
    %c0_192 = arith.constant 0 : index
    %c0_193 = arith.constant 0 : index
    %386 = vector.load %arg22[%c0_191, %c0_192, %c0_193] : memref<1x1x128xf32, #tpu.memory_space<vmem>>, vector<1x1x128xf32>
    %387 = vector.broadcast %386 : vector<1x1x128xf32> to vector<2x8x128xf32>
    %388 = arith.addf %385, %387 : vector<2x8x128xf32>
    %389 = tpu.iota {dimensions = array<i32: 2>} : vector<2x8x128xi32>
    %c2_i32 = arith.constant 2 : i32
    %390 = vector.broadcast %c2_i32 : i32 to vector<2x8x128xi32>
    %391 = arith.cmpi eq, %389, %390 : vector<2x8x128xi32>
    %cst_194 = arith.constant 5.000000e+00 : f32
    %392 = vector.broadcast %cst_194 : f32 to vector<2x8x128xf32>
    %393 = arith.mulf %392, %388 : vector<2x8x128xf32>
    %cst_195 = arith.constant 5.000000e+00 : f32
    %394 = vector.broadcast %cst_195 : f32 to vector<2x8x128xf32>
    %395 = arith.addf %393, %394 : vector<2x8x128xf32>
    %396 = arith.select %391, %395, %388 : vector<2x8x128xi1>, vector<2x8x128xf32>
    %c0_196 = arith.constant 0 : index
    %c0_197 = arith.constant 0 : index
    %c0_198 = arith.constant 0 : index
    %397 = vector.load %arg23[%c0_196, %c0_197, %c0_198] : memref<2x8x128xf32, #tpu.memory_space<vmem>>, vector<2x8x128xf32>
    tpu.vector_store %arg23[%c0_196, %c0_197, %c0_198], %396 {strides = array<i32>} : memref<2x8x128xf32, #tpu.memory_space<vmem>>, vector<2x8x128xf32>,
    return
  }
  func.func @transform_0(%arg0: i32) -> (i32, i32, i32) {
    %c0_i32 = arith.constant 0 : i32
    %c0_i32_0 = arith.constant 0 : i32
    %c0_i32_1 = arith.constant 0 : i32
    %c0_i32_2 = arith.constant 0 : i32
    return %c0_i32, %c0_i32_0, %c0_i32_1 : i32, i32, i32
  }
  func.func @transform_1(%arg0: i32) -> (i32, i32, i32) {
    %c0_i32 = arith.constant 0 : i32
    %c0_i32_0 = arith.constant 0 : i32
    %c0_i32_1 = arith.constant 0 : i32
    %c0_i32_2 = arith.constant 0 : i32
    return %c0_i32, %c0_i32_0, %c0_i32_1 : i32, i32, i32
  }
  func.func @transform_2(%arg0: i32) -> (i32, i32, i32) {
    %c0_i32 = arith.constant 0 : i32
    %c0_i32_0 = arith.constant 0 : i32
    %c0_i32_1 = arith.constant 0 : i32
    %c0_i32_2 = arith.constant 0 : i32
    return %c0_i32, %c0_i32_0, %c0_i32_1 : i32, i32, i32
  }
  func.func @transform_3(%arg0: i32) -> (i32, i32, i32) {
    %c0_i32 = arith.constant 0 : i32
    %c0_i32_0 = arith.constant 0 : i32
    %c0_i32_1 = arith.constant 0 : i32
    %c0_i32_2 = arith.constant 0 : i32
    return %c0_i32, %c0_i32_0, %c0_i32_1 : i32, i32, i32
  }
  func.func @transform_4(%arg0: i32) -> (i32, i32, i32, i32) {
    %c0_i32 = arith.constant 0 : i32
    %c0_i32_0 = arith.constant 0 : i32
    %c0_i32_1 = arith.constant 0 : i32
    %c0_i32_2 = arith.constant 0 : i32
    %c0_i32_3 = arith.constant 0 : i32
    return %c0_i32, %c0_i32_0, %c0_i32_1, %c0_i32_2 : i32, i32, i32, i32
  }
  func.func @transform_5(%arg0: i32) -> (i32, i32, i32, i32) {
    %c0_i32 = arith.constant 0 : i32
    %c0_i32_0 = arith.constant 0 : i32
    %c0_i32_1 = arith.constant 0 : i32
    %c0_i32_2 = arith.constant 0 : i32
    %c0_i32_3 = arith.constant 0 : i32
    return %c0_i32, %c0_i32_0, %c0_i32_1, %c0_i32_2 : i32, i32, i32, i32
  }
  func.func @transform_6(%arg0: i32) -> (i32, i32, i32, i32) {
    %c0_i32 = arith.constant 0 : i32
    %c0_i32_0 = arith.constant 0 : i32
    %c0_i32_1 = arith.constant 0 : i32
    %c0_i32_2 = arith.constant 0 : i32
    %c0_i32_3 = arith.constant 0 : i32
    return %c0_i32, %c0_i32_0, %c0_i32_1, %c0_i32_2 : i32, i32, i32, i32
  }
  func.func @transform_7(%arg0: i32) -> (i32, i32, i32, i32) {
    %c0_i32 = arith.constant 0 : i32
    %c0_i32_0 = arith.constant 0 : i32
    %c0_i32_1 = arith.constant 0 : i32
    %c0_i32_2 = arith.constant 0 : i32
    %c0_i32_3 = arith.constant 0 : i32
    return %c0_i32, %c0_i32_0, %c0_i32_1, %c0_i32_2 : i32, i32, i32, i32
  }
  func.func @transform_8(%arg0: i32) -> (i32, i32, i32, i32) {
    %c0_i32 = arith.constant 0 : i32
    %c0_i32_0 = arith.constant 0 : i32
    %c0_i32_1 = arith.constant 0 : i32
    %c0_i32_2 = arith.constant 0 : i32
    %c0_i32_3 = arith.constant 0 : i32
    return %c0_i32, %c0_i32_0, %c0_i32_1, %c0_i32_2 : i32, i32, i32, i32
  }
  func.func @transform_9(%arg0: i32) -> (i32, i32, i32, i32) {
    %c0_i32 = arith.constant 0 : i32
    %c0_i32_0 = arith.constant 0 : i32
    %c0_i32_1 = arith.constant 0 : i32
    %c0_i32_2 = arith.constant 0 : i32
    %c0_i32_3 = arith.constant 0 : i32
    return %c0_i32, %c0_i32_0, %c0_i32_1, %c0_i32_2 : i32, i32, i32, i32
  }
  func.func @transform_10(%arg0: i32) -> (i32, i32, i32, i32) {
    %c0_i32 = arith.constant 0 : i32
    %c0_i32_0 = arith.constant 0 : i32
    %c0_i32_1 = arith.constant 0 : i32
    %c0_i32_2 = arith.constant 0 : i32
    %c0_i32_3 = arith.constant 0 : i32
    return %c0_i32, %c0_i32_0, %c0_i32_1, %c0_i32_2 : i32, i32, i32, i32
  }
  func.func @transform_11(%arg0: i32) -> (i32, i32, i32, i32) {
    %c0_i32 = arith.constant 0 : i32
    %c0_i32_0 = arith.constant 0 : i32
    %c0_i32_1 = arith.constant 0 : i32
    %c0_i32_2 = arith.constant 0 : i32
    %c0_i32_3 = arith.constant 0 : i32
    return %c0_i32, %c0_i32_0, %c0_i32_1, %c0_i32_2 : i32, i32, i32, i32
  }
  func.func @transform_12(%arg0: i32) -> (i32, i32, i32, i32) {
    %c0_i32 = arith.constant 0 : i32
    %c0_i32_0 = arith.constant 0 : i32
    %c0_i32_1 = arith.constant 0 : i32
    %c0_i32_2 = arith.constant 0 : i32
    %c0_i32_3 = arith.constant 0 : i32
    return %c0_i32, %c0_i32_0, %c0_i32_1, %c0_i32_2 : i32, i32, i32, i32
  }
  func.func @transform_13(%arg0: i32) -> (i32, i32, i32, i32) {
    %c0_i32 = arith.constant 0 : i32
    %c0_i32_0 = arith.constant 0 : i32
    %c0_i32_1 = arith.constant 0 : i32
    %c0_i32_2 = arith.constant 0 : i32
    %c0_i32_3 = arith.constant 0 : i32
    return %c0_i32, %c0_i32_0, %c0_i32_1, %c0_i32_2 : i32, i32, i32, i32
  }
  func.func @transform_14(%arg0: i32) -> (i32, i32, i32) {
    %c0_i32 = arith.constant 0 : i32
    %c0_i32_0 = arith.constant 0 : i32
    %c0_i32_1 = arith.constant 0 : i32
    %c0_i32_2 = arith.constant 0 : i32
    return %c0_i32, %c0_i32_0, %c0_i32_1 : i32, i32, i32
  }
  func.func @transform_15(%arg0: i32) -> (i32, i32, i32, i32) {
    %c0_i32 = arith.constant 0 : i32
    %c0_i32_0 = arith.constant 0 : i32
    %c0_i32_1 = arith.constant 0 : i32
    %c0_i32_2 = arith.constant 0 : i32
    %c0_i32_3 = arith.constant 0 : i32
    return %c0_i32, %c0_i32_0, %c0_i32_1, %c0_i32_2 : i32, i32, i32, i32
  }
  func.func @transform_16(%arg0: i32) -> (i32, i32, i32) {
    %c0_i32 = arith.constant 0 : i32
    %c0_i32_0 = arith.constant 0 : i32
    %c0_i32_1 = arith.constant 0 : i32
    %c0_i32_2 = arith.constant 0 : i32
    return %c0_i32, %c0_i32_0, %c0_i32_1 : i32, i32, i32
  }
  func.func @transform_17(%arg0: i32) -> (i32, i32, i32, i32) {
    %c0_i32 = arith.constant 0 : i32
    %c0_i32_0 = arith.constant 0 : i32
    %c0_i32_1 = arith.constant 0 : i32
    %c0_i32_2 = arith.constant 0 : i32
    %c0_i32_3 = arith.constant 0 : i32
    return %c0_i32, %c0_i32_0, %c0_i32_1, %c0_i32_2 : i32, i32, i32, i32
  }
  func.func @transform_18(%arg0: i32) -> (i32, i32, i32, i32) {
    %c0_i32 = arith.constant 0 : i32
    %c0_i32_0 = arith.constant 0 : i32
    %c0_i32_1 = arith.constant 0 : i32
    %c0_i32_2 = arith.constant 0 : i32
    %c0_i32_3 = arith.constant 0 : i32
    return %c0_i32, %c0_i32_0, %c0_i32_1, %c0_i32_2 : i32, i32, i32, i32
  }
  func.func @transform_19(%arg0: i32) -> (i32, i32, i32, i32) {
    %c0_i32 = arith.constant 0 : i32
    %c0_i32_0 = arith.constant 0 : i32
    %c0_i32_1 = arith.constant 0 : i32
    %c0_i32_2 = arith.constant 0 : i32
    %c0_i32_3 = arith.constant 0 : i32
    return %c0_i32, %c0_i32_0, %c0_i32_1, %c0_i32_2 : i32, i32, i32, i32
  }
  func.func @transform_20(%arg0: i32) -> (i32, i32) {
    %c0_i32 = arith.constant 0 : i32
    %c0_i32_0 = arith.constant 0 : i32
    %c0_i32_1 = arith.constant 0 : i32
    return %c0_i32, %c0_i32_0 : i32, i32
  }
  func.func @transform_21(%arg0: i32) -> (i32, i32, i32) {
    %c0_i32 = arith.constant 0 : i32
    %c0_i32_0 = arith.constant 0 : i32
    %c0_i32_1 = arith.constant 0 : i32
    %c0_i32_2 = arith.constant 0 : i32
    return %c0_i32, %c0_i32_0, %c0_i32_1 : i32, i32, i32
  }
  func.func @transform_22(%arg0: i32) -> (i32, i32, i32) {
    %c0_i32 = arith.constant 0 : i32
    %c0_i32_0 = arith.constant 0 : i32
    %c0_i32_1 = arith.constant 0 : i32
    %c0_i32_2 = arith.constant 0 : i32
    return %c0_i32, %c0_i32_0, %c0_i32_1 : i32, i32, i32
  }
}

</mosaic_0001>

<bundles_post_ra>
// kernel: bert_imdb_forward.1
= control target key start
LH: loop header
LB: loop body
LE: loop exit
PB: predicated region body
PF: predicated region fallthrough
CT: control target
= control target key end

     0   :  { %vm76_vm0 = vcmask 261120   ;;  %v7574_v15 = vmov 0.0   ;;  %vm7575_vm1 = vmmov 0   ;;  %vm1386_vm2 = vcmask 64512   ;;  %s8902_s0 = inlined_call_operand.vmem [shape: f32[2,8,32], index: 0, kind: input, shape index: {}]   ;;  %s8903_s4 = inlined_call_operand.vmem [shape: bf16[2,4,32,8], index: 4, kind: input, shape index: {}]   ;;  %s8904_s5 = inlined_call_operand.vmem [shape: bf16[2,4,32,8], index: 5, kind: input, shape index: {}]   ;;  %s8905_s6 = inlined_call_operand.vmem [shape: bf16[2,4,32,8], index: 6, kind: input, shape index: {}]   ;;  %s8906_s2 = inlined_call_operand.vmem [shape: f32[1,1,32], index: 2, kind: input, shape index: {}]   ;;  %s8907_s3 = inlined_call_operand.vmem [shape: f32[1,1,32], index: 3, kind: input, shape index: {}]   ;;  %s8908_s8 = inlined_call_operand.vmem [shape: f32[2,4,1,8], index: 8, kind: input, shape index: {}]   ;;  %s8909_s7 = inlined_call_operand.vmem [shape: f32[2,4,1,8], index: 7, kind: input, shape index: {}]   ;;  %s8910_s9 = inlined_call_operand.vmem [shape: f32[2,4,1,8], index: 9, kind: input, shape index: {}]   ;;  %s8911_s1 = inlined_call_operand.vmem [shape: f32[2,1,8], index: 1, kind: input, shape index: {}]   ;;  %s8912_s10 = inlined_call_operand.vmem [shape: bf16[2,4,8,32], index: 10, kind: input, shape index: {}]   ;;  %s8913_s11 = inlined_call_operand.vmem [shape: f32[2,1,1,32], index: 11, kind: input, shape index: {}]   ;;  %s8914_s14 = inlined_call_operand.vmem [shape: bf16[2,32,128], index: 14, kind: input, shape index: {}]   ;;  %s8915_s16 = inlined_call_operand.vmem [shape: bf16[2,128,32], index: 16, kind: input, shape index: {}]   ;;  %s8916_s12 = inlined_call_operand.vmem [shape: f32[2,1,1,32], index: 12, kind: input, shape index: {}]   ;;  %s8917_s13 = inlined_call_operand.vmem [shape: f32[2,1,1,32], index: 13, kind: input, shape index: {}]   ;;  %s8918_s15 = inlined_call_operand.vmem [shape: f32[2,1,1,128], index: 15, kind: input, shape index: {}]   ;;  %s8919_s17 = inlined_call_operand.vmem [shape: f32[2,1,1,32], index: 17, kind: input, shape index: {}]   ;;  %s8920_s18 = inlined_call_operand.vmem [shape: f32[2,1,1,32], index: 18, kind: input, shape index: {}]   ;;  %s8921_s19 = inlined_call_operand.vmem [shape: f32[2,1,1,32], index: 19, kind: input, shape index: {}]   ;;  %s8922_s20 = inlined_call_operand.vmem [shape: bf16[32,128], index: 20, kind: input, shape index: {}]   ;;  %s8923_s21 = inlined_call_operand.vmem [shape: f32[1,1,128], index: 21, kind: input, shape index: {}]   ;;  %s8924_s22 = inlined_call_operand.vmem [shape: f32[2,8,128], index: 22, kind: output, shape index: {}]  }
   0x1   :  { %8930 = sst [smem:[#allocation2_spill]] %s8902_s0  ;;  %6610 = vmatprep.subr.bf16.mxu0 %v7574_v15  ;;  %6618 = vmatprep.subr.bf16.mxu1 %v7574_v15  ;;  %vm1890_vm3 = vcmask 1043456  }
   0x2   :  { %8931 = sst [smem:[#allocation3_spill]] %s8903_s4  ;;  %s8937_s29 = sld [smem:[#allocation2_spill]]  ;;  %6614 = vmatprep.mubr.msk.bf16.mxu0 %vm7575_vm1, %v7574_v15  ;;  %6622 = vmatprep.mubr.msk.bf16.mxu1 %vm7575_vm1, %v7574_v15 }
   0x3   :  { %8932 = sst [smem:[#allocation4_spill]] %s8904_s5  ;;  %s8938_s23 = sld [smem:[#allocation3_spill]] }
   0x4   :  { %8933 = sst [smem:[#allocation5_spill]] %s8905_s6 }
   0x5   :  { %8934 = sst [smem:[#allocation6_spill]] %s8906_s2  ;;  %s8942_s0 = sld [smem:[#allocation5_spill]] }
   0x6   :  { %8935 = sst [smem:[#allocation7_spill]] %s8907_s3  ;;  %s8939_s28 = sld [smem:[#allocation6_spill]] }
   0x7   :  { %8936 = sst [smem:[#allocation8_spill]] %s8908_s8  ;;  %s8940_s2 = sld [smem:[#allocation7_spill]] }
   0x8   :  { %v72_v0 = vld [vmem:[%s8937_s29] sm:$0xff]  ;;  %v73_v1 = vld [vmem:[%s8937_s29 + $0x8] sm:$0xff]  ;;  %s8943_s25 = sld [smem:[#allocation8_spill]] }
   0x9   :  { %v77_v2 = vsel %vm76_vm0, %v72_v0, 0.0  ;;  %v80_v3 = vsel %vm76_vm0, %v73_v1, 0.0  ;;  %v7412_v14 = vld [vmem:[%s8938_s23] sm:$0xff]   ;;  %v7413_v16 = vld [vmem:[%s8938_s23 + $0x10] sm:$0xff]   ;;  %v7414_v17 = vld [vmem:[%s8938_s23 + $0x8] sm:$0xff]  }
   0xa   :  { %78 = vadd.xlane.f32.xlu0 %v77_v2  ;;  %6611 = vmatpush3.bf16.msra.mxu0 %v7412_v14  ;;  %v7415_v18 = vld [vmem:[%s8938_s23 + $0x18] sm:$0xff]   ;;  %v7416_v31 = vld [vmem:[%s8938_s23 + $0x20] sm:$0xff]   ;;  %v7417_v32 = vld [vmem:[%s8938_s23 + $0x30] sm:$0xff]  }
   0xb   :  { %6619 = vmatpush3.bf16.msra.mxu1 %v7413_v16  ;;  %6612 = vmatprep.subr.bf16.mxu0 %v7574_v15  ;;  %v7418_v35 = vld [vmem:[%s8938_s23 + $0x28] sm:$0xff]   ;;  %v7419_v36 = vld [vmem:[%s8938_s23 + $0x38] sm:$0xff]   ;;  %v7428_v49 = vld [vmem:[%s8942_s0] sm:$0xff]  }
   0xc   :  { %6620 = vmatprep.subr.bf16.mxu1 %v7574_v15  ;;  %v6012_v26 = vld [vmem:[%s8939_s28] ss:$0 sm:$0xff]  ;;  %s8941_s28 = sld [smem:[#allocation4_spill]]  ;;  %v7429_v50 = vld [vmem:[%s8942_s0 + $0x10] sm:$0xff]   ;;  %v7430_v51 = vld [vmem:[%s8942_s0 + $0x8] sm:$0xff]  }
   0xd   :  { %v6013_v28 = vld [vmem:[%s8940_s2] ss:$0 sm:$0xff]  ;;  %v7431_v52 = vld [vmem:[%s8942_s0 + $0x18] sm:$0xff]   ;;  %v7433_v54 = vld [vmem:[%s8942_s0 + $0x30] sm:$0xff]  }
   0xe   :  { %81 = vadd.xlane.f32.xlu0 %v80_v3  ;;  %6613 = vmatpush3.bf16.msra.mxu0 %v7414_v17  ;;  %v7432_v53 = vld [vmem:[%s8942_s0 + $0x20] sm:$0xff]   ;;  %v7434_v55 = vld [vmem:[%s8942_s0 + $0x28] sm:$0xff]   ;;  %v7435_v56 = vld [vmem:[%s8942_s0 + $0x38] sm:$0xff]  }
   0xf   :  { %6621 = vmatpush3.bf16.msra.mxu1 %v7415_v18  ;;  %6626 = vmatprep.subr.bf16.mxu0 %v7574_v15 }
  0x10   :  { %6634 = vmatprep.subr.bf16.mxu1 %v7574_v15 }
  0x12   :  { %v7420_v41 = vld [vmem:[%s8941_s28] sm:$0xff]   ;;  %v7421_v42 = vld [vmem:[%s8941_s28 + $0x10] sm:$0xff]   ;;  %v7422_v43 = vld [vmem:[%s8941_s28 + $0x8] sm:$0xff]  }
  0x13   :  { %v7423_v44 = vld [vmem:[%s8941_s28 + $0x18] sm:$0xff]   ;;  %v7424_v45 = vld [vmem:[%s8941_s28 + $0x20] sm:$0xff]   ;;  %v7425_v46 = vld [vmem:[%s8941_s28 + $0x30] sm:$0xff]  }
  0x14   :  { %v7426_v47 = vld [vmem:[%s8941_s28 + $0x28] sm:$0xff]   ;;  %v7427_v48 = vld [vmem:[%s8941_s28 + $0x38] sm:$0xff]  }
  0x97   :  { %v79_v4 = vpop.xlane.xlu0 %78 }
  0x98   :  { %v84_v5 = vmul.f32 0.03125, %v79_v4 }
  0x9a   :  { %v86_v6 = vsub.f32 %v72_v0, %v84_v5 }
  0x9b   :  { %v82_v7 = vpop.xlane.xlu0 %81 }
  0x9c   :  { %v85_v8 = vmul.f32 0.03125, %v82_v7  ;;  %v88_v9 = vmul.f32 %v86_v6, %v86_v6 }
  0x9e   :  { %v87_v10 = vsub.f32 %v73_v1, %v85_v8  ;;  %v90_v11 = vsel %vm76_vm0, %v88_v9, 0.0 }
  0x9f   :  { %91 = vadd.xlane.f32.xlu1 %v90_v11 }
  0xa0   :  { %v89_v12 = vmul.f32 %v87_v10, %v87_v10 }
  0xa2   :  { %v93_v13 = vsel %vm76_vm0, %v89_v12, 0.0 }
  0xa3   :  { %94 = vadd.xlane.f32.xlu1 %v93_v13 }
 0x12c   :  { %v92_v19 = vpop.xlane.xlu1 %91 }
 0x12d   :  { %v96_v20 = vmul.f32 0.03125, %v92_v19 }
 0x12f   :  { %v98_v21 = vadd.f32 1e-12, %v96_v20 }
 0x130   :  { %v95_v22 = vpop.xlane.xlu1 %94 }
 0x131   :  { %7482 = vrsqrt.f32 %v98_v21  ;;  %v97_v23 = vmul.f32 0.03125, %v95_v22 }
 0x133   :  { %v99_v24 = vadd.f32 1e-12, %v97_v23 }
 0x135   :  { %7484 = vrsqrt.f32 %v99_v24 }
 0x13b   :  { %v7483_v25 = vpop.eup %7482 }
 0x13c   :  { %v102_v27 = vmul.f32 %v7483_v25, %v86_v6 }
 0x13e   :  { %v110_v29 = vmul.f32 %v6012_v26, %v102_v27  ;;  %v6035_v27 = vld [vmem:[%s8943_s25 + $0x1] ss:$0 sm:$0xff] }
 0x13f   :  { %v7485_v34 = vpop.eup %7484 }
 0x140   :  { %v7729_v30 = vadd.f32 %v6013_v28, %v110_v29  ;;  %v103_v37 = vmul.f32 %v7485_v34, %v87_v10 }
 0x142   :  { %v7739_v33 = vpack.c.bf16 %v7729_v30, %v7729_v30  ;;  %v111_v38 = vmul.f32 %v6012_v26, %v103_v37  ;;  %v6034_v26 = vld [vmem:[%s8943_s25] ss:$0 sm:$0xff] }
 0x144   :  { %6615 = vmatmul.mubr.msk.bf16.vlgmr.msra.gmra.mrb[0].mxu0 %vm76_vm0, %v7739_v33  ;;  %6623 = vmatmul.mubr.msk.bf16.vlgmr.msra.gmra.mrb[0].mxu1 %vm76_vm0, %v7739_v33  ;;  %v7763_v39 = vadd.f32 %v6013_v28, %v111_v38 }
 0x145   :  { %6627 = vmatpush3.bf16.msra.mxu0 %v7416_v31  ;;  %6635 = vmatpush3.bf16.msra.mxu1 %v7417_v32 }
 0x146   :  { %6628 = vmatprep.subr.bf16.mxu0 %v7574_v15  ;;  %6636 = vmatprep.subr.bf16.mxu1 %v7574_v15  ;;  %v7773_v40 = vpack.c.bf16 %v7763_v39, %v7763_v39 }
 0x147   :  { %6630 = vmatprep.mubr.msk.bf16.mxu0 %vm7575_vm1, %v7574_v15  ;;  %6638 = vmatprep.mubr.msk.bf16.mxu1 %vm7575_vm1, %v7574_v15 }
 0x149   :  { %6629 = vmatpush3.bf16.msra.mxu0 %v7418_v35  ;;  %6637 = vmatpush3.bf16.msra.mxu1 %v7419_v36 }
 0x14a   :  { %6642 = vmatprep.subr.bf16.mxu0 %v7574_v15  ;;  %6650 = vmatprep.subr.bf16.mxu1 %v7574_v15 }
 0x14c   :  { %6631 = vmatmul.mubr.msk.bf16.vlgmr.msra.gmra.mrb[4].mxu0 %vm76_vm0, %v7739_v33  ;;  %6639 = vmatmul.mubr.msk.bf16.vlgmr.msra.gmra.mrb[4].mxu1 %vm76_vm0, %v7739_v33 }
 0x14d   :  { %6643 = vmatpush3.bf16.msra.mxu0 %v7412_v14  ;;  %6651 = vmatpush3.bf16.msra.mxu1 %v7413_v16 }
 0x14e   :  { %6644 = vmatprep.subr.bf16.mxu0 %v7574_v15  ;;  %6652 = vmatprep.subr.bf16.mxu1 %v7574_v15 }
 0x14f   :  { %6646 = vmatprep.mubr.msk.bf16.mxu0 %vm7575_vm1, %v7574_v15  ;;  %6654 = vmatprep.mubr.msk.bf16.mxu1 %vm7575_vm1, %v7574_v15 }
 0x151   :  { %6645 = vmatpush3.bf16.msra.mxu0 %v7414_v17  ;;  %6653 = vmatpush3.bf16.msra.mxu1 %v7415_v18 }
 0x152   :  { %6658 = vmatprep.subr.bf16.mxu0 %v7574_v15  ;;  %6666 = vmatprep.subr.bf16.mxu1 %v7574_v15 }
 0x154   :  { %6647 = vmatmul.mubr.msk.bf16.vlgmr.msra.gmra.mrb[8].mxu0 %vm76_vm0, %v7773_v40  ;;  %6655 = vmatmul.mubr.msk.bf16.vlgmr.msra.gmra.mrb[8].mxu1 %vm76_vm0, %v7773_v40 }
 0x155   :  { %6659 = vmatpush3.bf16.msra.mxu0 %v7416_v31  ;;  %6667 = vmatpush3.bf16.msra.mxu1 %v7417_v32 }
 0x156   :  { %6660 = vmatprep.subr.bf16.mxu0 %v7574_v15  ;;  %6668 = vmatprep.subr.bf16.mxu1 %v7574_v15 }
 0x157   :  { %6662 = vmatprep.mubr.msk.bf16.mxu0 %vm7575_vm1, %v7574_v15  ;;  %6670 = vmatprep.mubr.msk.bf16.mxu1 %vm7575_vm1, %v7574_v15 }
 0x159   :  { %6661 = vmatpush3.bf16.msra.mxu0 %v7418_v35  ;;  %6669 = vmatpush3.bf16.msra.mxu1 %v7419_v36 }
 0x15a   :  { %6674 = vmatprep.subr.bf16.mxu0 %v7574_v15  ;;  %6682 = vmatprep.subr.bf16.mxu1 %v7574_v15 }
 0x15c   :  { %6663 = vmatmul.mubr.msk.bf16.vlgmr.msra.gmra.mrb[12].mxu0 %vm76_vm0, %v7773_v40  ;;  %6671 = vmatmul.mubr.msk.bf16.vlgmr.msra.gmra.mrb[12].mxu1 %vm76_vm0, %v7773_v40 }
 0x15d   :  { %6675 = vmatpush3.bf16.msra.mxu0 %v7420_v41  ;;  %6683 = vmatpush3.bf16.msra.mxu1 %v7421_v42 }
 0x15e   :  { %6676 = vmatprep.subr.bf16.mxu0 %v7574_v15  ;;  %6684 = vmatprep.subr.bf16.mxu1 %v7574_v15 }
 0x15f   :  { %6678 = vmatprep.mubr.msk.bf16.mxu0 %vm7575_vm1, %v7574_v15  ;;  %6686 = vmatprep.mubr.msk.bf16.mxu1 %vm7575_vm1, %v7574_v15 }
 0x161   :  { %6677 = vmatpush3.bf16.msra.mxu0 %v7422_v43  ;;  %6685 = vmatpush3.bf16.msra.mxu1 %v7423_v44 }
 0x162   :  { %6690 = vmatprep.subr.bf16.mxu0 %v7574_v15  ;;  %6698 = vmatprep.subr.bf16.mxu1 %v7574_v15 }
 0x164   :  { %6679 = vmatmul.mubr.msk.bf16.vlgmr.msra.gmra.mrb[16].mxu0 %vm76_vm0, %v7739_v33  ;;  %6687 = vmatmul.mubr.msk.bf16.vlgmr.msra.gmra.mrb[16].mxu1 %vm76_vm0, %v7739_v33 }
 0x165   :  { %6691 = vmatpush3.bf16.msra.mxu0 %v7424_v45  ;;  %6699 = vmatpush3.bf16.msra.mxu1 %v7425_v46 }
 0x166   :  { %6692 = vmatprep.subr.bf16.mxu0 %v7574_v15  ;;  %6700 = vmatprep.subr.bf16.mxu1 %v7574_v15 }
 0x167   :  { %6694 = vmatprep.mubr.msk.bf16.mxu0 %vm7575_vm1, %v7574_v15  ;;  %6702 = vmatprep.mubr.msk.bf16.mxu1 %vm7575_vm1, %v7574_v15 }
 0x169   :  { %6693 = vmatpush3.bf16.msra.mxu0 %v7426_v47  ;;  %6701 = vmatpush3.bf16.msra.mxu1 %v7427_v48 }
 0x16a   :  { %6706 = vmatprep.subr.bf16.mxu0 %v7574_v15  ;;  %6714 = vmatprep.subr.bf16.mxu1 %v7574_v15 }
 0x16c   :  { %6695 = vmatmul.mubr.msk.bf16.vlgmr.msra.gmra.mrb[20].mxu0 %vm76_vm0, %v7739_v33  ;;  %6703 = vmatmul.mubr.msk.bf16.vlgmr.msra.gmra.mrb[20].mxu1 %vm76_vm0, %v7739_v33 }
 0x16d   :  { %6707 = vmatpush3.bf16.msra.mxu0 %v7420_v41  ;;  %6715 = vmatpush3.bf16.msra.mxu1 %v7421_v42  ;;  %v6014_v42 = vld [vmem:[%s8909_s7] ss:$0 sm:$0xff] }
 0x16e   :  { %6708 = vmatprep.subr.bf16.mxu0 %v7574_v15  ;;  %6716 = vmatprep.subr.bf16.mxu1 %v7574_v15 }
 0x16f   :  { %6710 = vmatprep.mubr.msk.bf16.mxu0 %vm7575_vm1, %v7574_v15  ;;  %6718 = vmatprep.mubr.msk.bf16.mxu1 %vm7575_vm1, %v7574_v15 }
 0x171   :  { %6709 = vmatpush3.bf16.msra.mxu0 %v7422_v43  ;;  %6717 = vmatpush3.bf16.msra.mxu1 %v7423_v44  ;;  %v6015_v43 = vld [vmem:[%s8909_s7 + $0x1] ss:$0 sm:$0xff] }
 0x172   :  { %6722 = vmatprep.subr.bf16.mxu0 %v7574_v15  ;;  %6730 = vmatprep.subr.bf16.mxu1 %v7574_v15 }
 0x174   :  { %6711 = vmatmul.mubr.msk.bf16.vlgmr.msra.gmra.mrb[24].mxu0 %vm76_vm0, %v7773_v40  ;;  %6719 = vmatmul.mubr.msk.bf16.vlgmr.msra.gmra.mrb[24].mxu1 %vm76_vm0, %v7773_v40 }
 0x175   :  { %6723 = vmatpush3.bf16.msra.mxu0 %v7424_v45  ;;  %6731 = vmatpush3.bf16.msra.mxu1 %v7425_v46  ;;  %v6036_v46 = vld [vmem:[%s8943_s25 + $0x2] ss:$0 sm:$0xff] }
 0x176   :  { %6724 = vmatprep.subr.bf16.mxu0 %v7574_v15  ;;  %6732 = vmatprep.subr.bf16.mxu1 %v7574_v15 }
 0x177   :  { %6726 = vmatprep.mubr.msk.bf16.mxu0 %vm7575_vm1, %v7574_v15  ;;  %6734 = vmatprep.mubr.msk.bf16.mxu1 %vm7575_vm1, %v7574_v15 }
 0x179   :  { %6725 = vmatpush3.bf16.msra.mxu0 %v7426_v47  ;;  %6733 = vmatpush3.bf16.msra.mxu1 %v7427_v48  ;;  %v6037_v47 = vld [vmem:[%s8943_s25 + $0x3] ss:$0 sm:$0xff] }
 0x17a   :  { %6738 = vmatprep.subr.bf16.mxu0 %v7574_v15  ;;  %6746 = vmatprep.subr.bf16.mxu1 %v7574_v15 }
 0x17c   :  { %6727 = vmatmul.mubr.msk.bf16.vlgmr.msra.gmra.mrb[28].mxu0 %vm76_vm0, %v7773_v40  ;;  %6735 = vmatmul.mubr.msk.bf16.vlgmr.msra.gmra.mrb[28].mxu1 %vm76_vm0, %v7773_v40 }
 0x17d   :  { %6739 = vmatpush3.bf16.msra.mxu0 %v7428_v49  ;;  %6747 = vmatpush3.bf16.msra.mxu1 %v7429_v50 }
 0x17e   :  { %6740 = vmatprep.subr.bf16.mxu0 %v7574_v15  ;;  %6748 = vmatprep.subr.bf16.mxu1 %v7574_v15 }
 0x17f   :  { %6742 = vmatprep.mubr.msk.bf16.mxu0 %vm7575_vm1, %v7574_v15  ;;  %6750 = vmatprep.mubr.msk.bf16.mxu1 %vm7575_vm1, %v7574_v15 }
 0x181   :  { %6741 = vmatpush3.bf16.msra.mxu0 %v7430_v51  ;;  %6749 = vmatpush3.bf16.msra.mxu1 %v7431_v52 }
 0x182   :  { %6754 = vmatprep.subr.bf16.mxu0 %v7574_v15  ;;  %6762 = vmatprep.subr.bf16.mxu1 %v7574_v15 }
 0x184   :  { %6743 = vmatmul.mubr.msk.bf16.vlgmr.msra.gmra.mrb[32].mxu0 %vm76_vm0, %v7739_v33  ;;  %6751 = vmatmul.mubr.msk.bf16.vlgmr.msra.gmra.mrb[32].mxu1 %vm76_vm0, %v7739_v33 }
 0x185   :  { %6755 = vmatpush3.bf16.msra.mxu0 %v7432_v53  ;;  %6763 = vmatpush3.bf16.msra.mxu1 %v7433_v54 }
 0x186   :  { %6756 = vmatprep.subr.bf16.mxu0 %v7574_v15  ;;  %6764 = vmatprep.subr.bf16.mxu1 %v7574_v15 }
 0x187   :  { %6758 = vmatprep.mubr.msk.bf16.mxu0 %vm7575_vm1, %v7574_v15  ;;  %6766 = vmatprep.mubr.msk.bf16.mxu1 %vm7575_vm1, %v7574_v15 }
 0x189   :  { %6757 = vmatpush3.bf16.msra.mxu0 %v7434_v55  ;;  %6765 = vmatpush3.bf16.msra.mxu1 %v7435_v56 }
 0x18a   :  { %6770 = vmatprep.subr.bf16.mxu0 %v7574_v15  ;;  %6778 = vmatprep.subr.bf16.mxu1 %v7574_v15 }
 0x18c   :  { %6759 = vmatmul.mubr.msk.bf16.vlgmr.msra.gmra.mrb[36].mxu0 %vm76_vm0, %v7739_v33  ;;  %6767 = vmatmul.mubr.msk.bf16.vlgmr.msra.gmra.mrb[36].mxu1 %vm76_vm0, %v7739_v33 }
 0x18d   :  { %6771 = vmatpush3.bf16.msra.mxu0 %v7428_v49  ;;  %6779 = vmatpush3.bf16.msra.mxu1 %v7429_v50 }
 0x18e   :  { %6772 = vmatprep.subr.bf16.mxu0 %v7574_v15  ;;  %6780 = vmatprep.subr.bf16.mxu1 %v7574_v15 }
 0x18f   :  { %6774 = vmatprep.mubr.msk.bf16.mxu0 %vm7575_vm1, %v7574_v15  ;;  %6782 = vmatprep.mubr.msk.bf16.mxu1 %vm7575_vm1, %v7574_v15 }
 0x191   :  { %6773 = vmatpush3.bf16.msra.mxu0 %v7430_v51  ;;  %6781 = vmatpush3.bf16.msra.mxu1 %v7431_v52 }
 0x192   :  { %6786 = vmatprep.subr.bf16.mxu0 %v7574_v15  ;;  %6794 = vmatprep.subr.bf16.mxu1 %v7574_v15 }
 0x194   :  { %6775 = vmatmul.mubr.msk.bf16.vlgmr.msra.gmra.mrb[40].mxu0 %vm76_vm0, %v7773_v40  ;;  %6783 = vmatmul.mubr.msk.bf16.vlgmr.msra.gmra.mrb[40].mxu1 %vm76_vm0, %v7773_v40 }
 0x195   :  { %6787 = vmatpush3.bf16.msra.mxu0 %v7432_v53  ;;  %6795 = vmatpush3.bf16.msra.mxu1 %v7433_v54 }
 0x196   :  { %6788 = vmatprep.subr.bf16.mxu0 %v7574_v15  ;;  %6796 = vmatprep.subr.bf16.mxu1 %v7574_v15 }
 0x197   :  { %6790 = vmatprep.mubr.msk.bf16.mxu0 %vm7575_vm1, %v7574_v15  ;;  %6798 = vmatprep.mubr.msk.bf16.mxu1 %vm7575_vm1, %v7574_v15 }
 0x199   :  { %6789 = vmatpush3.bf16.msra.mxu0 %v7434_v55  ;;  %6797 = vmatpush3.bf16.msra.mxu1 %v7435_v56 }
 0x19a   :  { %6802 = vmatprep.subr.bf16.mxu0 %v7574_v15  ;;  %6808 = vmatprep.subr.bf16.mxu1 %v7574_v15 }
 0x19c   :  { %6791 = vmatmul.mubr.msk.bf16.vlgmr.msra.gmra.mrb[44].mxu0 %vm76_vm0, %v7773_v40  ;;  %6799 = vmatmul.mubr.msk.bf16.vlgmr.msra.gmra.mrb[44].mxu1 %vm76_vm0, %v7773_v40 }
 0x19d   :  { %6804 = vmatprep.mubr.msk.bf16.mxu0 %vm7575_vm1, %v7574_v15  ;;  %6810 = vmatprep.mubr.msk.bf16.mxu1 %vm7575_vm1, %v7574_v15 }
 0x217   :  { %v221_v57 = vpop.f32.mrb[0].mxu0  ;;  %v273_v58 = vpop.f32.mrb[0].mxu1 }
 0x218   :  { %v6616_v59 = vpop.f32.mrb[1].mxu0  ;;  %v6624_v60 = vpop.f32.mrb[1].mxu1  ;;  %v222_v48 = vadd.f32 %v6014_v42, %v221_v57  ;;  %v274_v49 = vadd.f32 %v6015_v43, %v273_v58  ;;  %v7978_v57 = vld [vmem:[%s8909_s7 + $0x2] ss:$0 sm:$0xff]  ;;  %v7983_v58 = vld [vmem:[%s8909_s7 + $0x3] ss:$0 sm:$0xff] }
 0x219   :  { %v224_v61 = vpop.f32.mrb[2].mxu0  ;;  %v276_v62 = vpop.f32.mrb[2].mxu1 }
 0x21a   :  { %v6617_v63 = vpop.f32.mrb[3].mxu0  ;;  %v6625_v0 = vpop.f32.mrb[3].mxu1  ;;  %v1370_v60 = vpack.c.bf16 %v222_v48, %v222_v48  ;;  %v1371_v61 = vpack.c.bf16 %v274_v49, %v274_v49 }
 0x21f   :  { %v7941_v1 = vpop.f32.mrb[4].mxu0  ;;  %v7943_v2 = vpop.f32.mrb[4].mxu1 }
 0x220   :  { %v6632_v3 = vpop.f32.mrb[5].mxu0  ;;  %v6640_v4 = vpop.f32.mrb[5].mxu1 }
 0x221   :  { %v328_v5 = vpop.f32.mrb[6].mxu0  ;;  %v380_v6 = vpop.f32.mrb[6].mxu1 }
 0x222   :  { %v6633_v7 = vpop.f32.mrb[7].mxu0  ;;  %v6641_v8 = vpop.f32.mrb[7].mxu1  ;;  %v326_v6 = vadd.f32 %v7978_v57, %v7941_v1 }
 0x223   :  { %v378_v7 = vadd.f32 %v7983_v58, %v7943_v2 }
 0x225   :  { %v1373_v2 = vpack.c.bf16 %v378_v7, %v378_v7 }
 0x227   :  { %v7945_v9 = vpop.f32.mrb[8].mxu0  ;;  %v7947_v10 = vpop.f32.mrb[8].mxu1 }
 0x228   :  { %v6648_v11 = vpop.f32.mrb[9].mxu0  ;;  %v6656_v12 = vpop.f32.mrb[9].mxu1 }
 0x229   :  { %v423_v13 = vpop.f32.mrb[10].mxu0  ;;  %v463_v14 = vpop.f32.mrb[10].mxu1 }
 0x22a   :  { %v6649_v16 = vpop.f32.mrb[11].mxu0  ;;  %v6657_v17 = vpop.f32.mrb[11].mxu1 }
 0x22f   :  { %v7949_v18 = vpop.f32.mrb[12].mxu0  ;;  %v7951_v19 = vpop.f32.mrb[12].mxu1 }
 0x230   :  { %v6664_v20 = vpop.f32.mrb[13].mxu0  ;;  %v6672_v21 = vpop.f32.mrb[13].mxu1  ;;  %v541_v48 = vadd.f32 %v7983_v58, %v7951_v19 }
 0x231   :  { %v503_v22 = vpop.f32.mrb[14].mxu0  ;;  %v543_v23 = vpop.f32.mrb[14].mxu1  ;;  %v1372_v20 = vpack.c.bf16 %v326_v6, %v326_v6 }
 0x232   :  { %v6665_v24 = vpop.f32.mrb[15].mxu0  ;;  %v6673_v25 = vpop.f32.mrb[15].mxu1 }
 0x237   :  { %v636_v28 = vpop.f32.mrb[16].mxu0  ;;  %v688_v29 = vpop.f32.mrb[16].mxu1 }
 0x238   :  { %v637_v31 = vadd.f32 %v6034_v26, %v636_v28  ;;  %v689_v32 = vadd.f32 %v6035_v27, %v688_v29  ;;  %v6680_v33 = vpop.f32.mrb[17].mxu0  ;;  %v6688_v34 = vpop.f32.mrb[17].mxu1 }
 0x239   :  { %v639_v35 = vpop.f32.mrb[18].mxu0  ;;  %v691_v36 = vpop.f32.mrb[18].mxu1 }
 0x23a   :  { %v1378_v37 = vpack.c.bf16 %v637_v31, %v637_v31  ;;  %v1379_v38 = vpack.c.bf16 %v689_v32, %v689_v32  ;;  %v6681_v40 = vpop.f32.mrb[19].mxu0  ;;  %v6689_v41 = vpop.f32.mrb[19].mxu1 }
 0x23c   :  { %v1391_v44 = vsel %vm1386_vm2, %v1378_v37, 0  ;;  %v1437_v45 = vsel %vm1386_vm2, %v1379_v38, 0 }
 0x23d   :  { %6803 = vmatpush3.bf16.xpose.msra.mxu0 %v1391_v44  ;;  %6809 = vmatpush3.bf16.xpose.msra.mxu1 %v1437_v45  ;;  %v6054_v45 = vld [vmem:[%s8910_s9] ss:$0 sm:$0xff] }
 0x23e   :  { %6814 = vmatprep.subr.bf16.mxu0 %v7574_v15  ;;  %6820 = vmatprep.subr.bf16.mxu1 %v7574_v15 }
 0x23f   :  { %v740_v50 = vpop.f32.mrb[20].mxu0  ;;  %v792_v51 = vpop.f32.mrb[20].mxu1 }
 0x240   :  { %v741_v52 = vadd.f32 %v6036_v46, %v740_v50  ;;  %v793_v53 = vadd.f32 %v6037_v47, %v792_v51  ;;  %v6696_v54 = vpop.f32.mrb[21].mxu0  ;;  %v6704_v55 = vpop.f32.mrb[21].mxu1 }
 0x241   :  { %v743_v56 = vpop.f32.mrb[22].mxu0  ;;  %v795_v59 = vpop.f32.mrb[22].mxu1 }
 0x242   :  { %v1380_v62 = vpack.c.bf16 %v741_v52, %v741_v52  ;;  %v1381_v63 = vpack.c.bf16 %v793_v53, %v793_v53  ;;  %v6697_v0 = vpop.f32.mrb[23].mxu0  ;;  %v6705_v3 = vpop.f32.mrb[23].mxu1  ;;  %v1377_v56 = vpack.c.bf16 %v541_v48, %v541_v48 }
 0x244   :  { %v1483_v4 = vsel %vm1386_vm2, %v1380_v62, 0  ;;  %v1529_v5 = vsel %vm1386_vm2, %v1381_v63, 0  ;;  %6805 = vmatmul.mubr.msk.bf16.vlgmr.msra.gmra.mrb[48].mxu0 %vm1386_vm2, %v1370_v60  ;;  %6811 = vmatmul.mubr.msk.bf16.vlgmr.msra.gmra.mrb[48].mxu1 %vm1386_vm2, %v1371_v61 }
 0x245   :  { %6815 = vmatpush3.bf16.xpose.msra.mxu0 %v1483_v4  ;;  %6821 = vmatpush3.bf16.xpose.msra.mxu1 %v1529_v5 }
 0x246   :  { %6816 = vmatprep.mubr.msk.bf16.mxu0 %vm7575_vm1, %v7574_v15  ;;  %6822 = vmatprep.mubr.msk.bf16.mxu1 %vm7575_vm1, %v7574_v15 }
 0x247   :  { %v832_v8 = vpop.f32.mrb[24].mxu0  ;;  %v872_v11 = vpop.f32.mrb[24].mxu1  ;;  %6826 = vmatprep.subr.bf16.mxu0 %v7574_v15  ;;  %6832 = vmatprep.subr.bf16.mxu1 %v7574_v15 }
 0x248   :  { %v833_v12 = vadd.f32 %v6034_v26, %v832_v8  ;;  %v873_v13 = vadd.f32 %v6035_v27, %v872_v11  ;;  %v6712_v14 = vpop.f32.mrb[25].mxu0  ;;  %v6720_v16 = vpop.f32.mrb[25].mxu1  ;;  %v421_v26 = vadd.f32 %v6014_v42, %v7945_v9  ;;  %v461_v27 = vadd.f32 %v6015_v43, %v7947_v10 }
 0x249   :  { %v835_v1 = vpop.f32.mrb[26].mxu0  ;;  %v875_v17 = vpop.f32.mrb[26].mxu1 }
 0x24a   :  { %v1382_v21 = vpack.c.bf16 %v833_v12, %v833_v12  ;;  %v1383_v22 = vpack.c.bf16 %v873_v13, %v873_v13  ;;  %v6713_v23 = vpop.f32.mrb[27].mxu0  ;;  %v6721_v24 = vpop.f32.mrb[27].mxu1  ;;  %v1374_v37 = vpack.c.bf16 %v421_v26, %v421_v26  ;;  %v1375_v10 = vpack.c.bf16 %v461_v27, %v461_v27 }
 0x24c   :  { %v1575_v25 = vsel %vm1386_vm2, %v1382_v21, 0  ;;  %v1621_v28 = vsel %vm1386_vm2, %v1383_v22, 0  ;;  %6817 = vmatmul.mubr.msk.bf16.vlgmr.msra.gmra.mrb[52].mxu0 %vm1386_vm2, %v1372_v20  ;;  %6823 = vmatmul.mubr.msk.bf16.vlgmr.msra.gmra.mrb[52].mxu1 %vm1386_vm2, %v1373_v2 }
 0x24d   :  { %6827 = vmatpush3.bf16.xpose.msra.mxu0 %v1575_v25  ;;  %6833 = vmatpush3.bf16.xpose.msra.mxu1 %v1621_v28 }
 0x24e   :  { %6828 = vmatprep.mubr.msk.bf16.mxu0 %vm7575_vm1, %v7574_v15  ;;  %6834 = vmatprep.mubr.msk.bf16.mxu1 %vm7575_vm1, %v7574_v15 }
 0x24f   :  { %v912_v29 = vpop.f32.mrb[28].mxu0  ;;  %v952_v31 = vpop.f32.mrb[28].mxu1  ;;  %6838 = vmatprep.subr.bf16.mxu0 %v7574_v15  ;;  %6844 = vmatprep.subr.bf16.mxu1 %v7574_v15 }
 0x250   :  { %v913_v32 = vadd.f32 %v6036_v46, %v912_v29  ;;  %v953_v33 = vadd.f32 %v6037_v47, %v952_v31  ;;  %v6728_v34 = vpop.f32.mrb[29].mxu0  ;;  %v6736_v35 = vpop.f32.mrb[29].mxu1  ;;  %v6055_v46 = vld [vmem:[%s8910_s9 + $0x1] ss:$0 sm:$0xff]  ;;  %v501_v47 = vadd.f32 %v7978_v57, %v7949_v18  ;;  %v1765_v31 = vlaneseq }
 0x251   :  { %v915_v36 = vpop.f32.mrb[30].mxu0  ;;  %v955_v9 = vpop.f32.mrb[30].mxu1 }
 0x252   :  { %v1384_v38 = vpack.c.bf16 %v913_v32, %v913_v32  ;;  %v1385_v40 = vpack.c.bf16 %v953_v33, %v953_v33  ;;  %v6729_v41 = vpop.f32.mrb[31].mxu0  ;;  %v6737_v42 = vpop.f32.mrb[31].mxu1  ;;  %v1376_v19 = vpack.c.bf16 %v501_v47, %v501_v47  ;;  %v120_v32 = vld [vmem:[%s8911_s1] sm:$0x1]  ;;  %v1766_v34 = vshrl.u32 %v1765_v31, 7 }
 0x253   :  { %v122_v33 = vsub.f32 1.0, %v120_v32 }
 0x254   :  { %v1667_v43 = vsel %vm1386_vm2, %v1384_v38, 0  ;;  %v1713_v44 = vsel %vm1386_vm2, %v1385_v40, 0  ;;  %6829 = vmatmul.mubr.msk.bf16.vlgmr.msra.gmra.mrb[56].mxu0 %vm1386_vm2, %v1374_v37  ;;  %6835 = vmatmul.mubr.msk.bf16.vlgmr.msra.gmra.mrb[56].mxu1 %vm1386_vm2, %v1375_v10  ;;  %v1767_v36 = vsub.s32 0, %v1766_v34 }
 0x255   :  { %6839 = vmatpush3.bf16.xpose.msra.mxu0 %v1667_v43  ;;  %6845 = vmatpush3.bf16.xpose.msra.mxu1 %v1713_v44  ;;  %v124_v35 = vmul.f32 -10000.0, %v122_v33 }
 0x256   :  { %6840 = vmatprep.mubr.msk.bf16.mxu0 %vm7575_vm1, %v7574_v15  ;;  %6846 = vmatprep.mubr.msk.bf16.mxu1 %vm7575_vm1, %v7574_v15 }
 0x257   :  { %v1048_v49 = vpop.f32.mrb[32].mxu0  ;;  %v1100_v50 = vpop.f32.mrb[32].mxu1  ;;  %6850 = vmatprep.subr.bf16.mxu0 %v7574_v15  ;;  %6856 = vmatprep.subr.bf16.mxu1 %v7574_v15  ;;  %v8057_v9 = vrot.slane %v124_v35, %v1767_v36 }
 0x258   :  { %v1049_v51 = vadd.f32 %v6054_v45, %v1048_v49  ;;  %v1101_v52 = vadd.f32 %v6055_v46, %v1100_v50  ;;  %v6744_v53 = vpop.f32.mrb[33].mxu0  ;;  %v6752_v54 = vpop.f32.mrb[33].mxu1  ;;  %v121_v49 = vld [vmem:[%s8911_s1 + $0x1] sm:$0x1] }
 0x259   :  { %v1051_v18 = vpop.f32.mrb[34].mxu0  ;;  %v1103_v55 = vpop.f32.mrb[34].mxu1 }
 0x25a   :  { %v1879_v59 = vpack.c.bf16 %v1049_v51, %v1049_v51  ;;  %v1880_v60 = vpack.c.bf16 %v1101_v52, %v1101_v52  ;;  %v6745_v61 = vpop.f32.mrb[35].mxu0  ;;  %v6753_v62 = vpop.f32.mrb[35].mxu1  ;;  %v123_v52 = vsub.f32 1.0, %v121_v49 }
 0x25c   :  { %v1892_v63 = vsel %vm1890_vm3, %v1879_v59, 0  ;;  %v1938_v0 = vsel %vm1890_vm3, %v1880_v60, 0  ;;  %6841 = vmatmul.mubr.msk.bf16.vlgmr.msra.gmra.mrb[60].mxu0 %vm1386_vm2, %v1376_v19  ;;  %6847 = vmatmul.mubr.msk.bf16.vlgmr.msra.gmra.mrb[60].mxu1 %vm1386_vm2, %v1377_v56 }
 0x25d   :  { %6851 = vmatpush3.bf16.msra.mxu0 %v1892_v63  ;;  %6857 = vmatpush3.bf16.msra.mxu1 %v1938_v0 }
 0x25e   :  { %6852 = vmatprep.mubr.msk.bf16.mxu0 %vm7575_vm1, %v7574_v15  ;;  %6858 = vmatprep.mubr.msk.bf16.mxu1 %vm7575_vm1, %v7574_v15 }
 0x25f   :  { %v8039_v3 = vpop.f32.mrb[36].mxu0  ;;  %v8041_v57 = vpop.f32.mrb[36].mxu1  ;;  %6862 = vmatprep.subr.bf16.mxu0 %v7574_v15  ;;  %6868 = vmatprep.subr.bf16.mxu1 %v7574_v15 }
 0x260   :  { %v6760_v58 = vpop.f32.mrb[37].mxu0  ;;  %v6768_v4 = vpop.f32.mrb[37].mxu1 }
 0x261   :  { %v1155_v5 = vpop.f32.mrb[38].mxu0  ;;  %v1207_v6 = vpop.f32.mrb[38].mxu1  ;;  %v125_v58 = vmul.f32 -10000.0, %v123_v52 }
 0x262   :  { %v6761_v7 = vpop.f32.mrb[39].mxu0  ;;  %v6769_v8 = vpop.f32.mrb[39].mxu1 }
 0x263   :  { %v8070_v6 = vrot.slane %v125_v58, %v1767_v36 }
 0x267   :  { %v1244_v11 = vpop.f32.mrb[40].mxu0  ;;  %v1284_v12 = vpop.f32.mrb[40].mxu1 }
 0x268   :  { %v8045_v13 = vadd.f32 %v6054_v45, %v1244_v11  ;;  %v8047_v14 = vadd.f32 %v6055_v46, %v1284_v12  ;;  %v6776_v16 = vpop.f32.mrb[41].mxu0  ;;  %v6784_v1 = vpop.f32.mrb[41].mxu1 }
 0x269   :  { %v1247_v17 = vpop.f32.mrb[42].mxu0  ;;  %v1287_v20 = vpop.f32.mrb[42].mxu1 }
 0x26a   :  { %v6777_v2 = vpop.f32.mrb[43].mxu0  ;;  %v6785_v21 = vpop.f32.mrb[43].mxu1 }
 0x26f   :  { %v8049_v22 = vpop.f32.mrb[44].mxu0  ;;  %v8051_v23 = vpop.f32.mrb[44].mxu1 }
 0x270   :  { %v6792_v24 = vpop.f32.mrb[45].mxu0  ;;  %v6800_v25 = vpop.f32.mrb[45].mxu1 }
 0x271   :  { %v1327_v28 = vpop.f32.mrb[46].mxu0  ;;  %v1367_v26 = vpop.f32.mrb[46].mxu1 }
 0x272   :  { %v6793_v27 = vpop.f32.mrb[47].mxu0  ;;  %v6801_v29 = vpop.f32.mrb[47].mxu1 }
 0x317   :  { %v1427_v37 = vpop.f32.mrb[48].mxu0  ;;  %v1473_v10 = vpop.f32.mrb[48].mxu1 }
 0x318   :  { %v1755_v38 = vmul.f32 0.35355338, %v1427_v37  ;;  %v1756_v40 = vmul.f32 0.35355338, %v1473_v10  ;;  %v6806_v41 = vpop.f32.mrb[49].mxu0  ;;  %v6812_v42 = vpop.f32.mrb[49].mxu1 }
 0x319   :  { %v1430_v43 = vpop.f32.mrb[50].mxu0  ;;  %v1476_v44 = vpop.f32.mrb[50].mxu1 }
 0x31a   :  { %v6807_v45 = vpop.f32.mrb[51].mxu0  ;;  %v6813_v46 = vpop.f32.mrb[51].mxu1  ;;  %v1776_v47 = vadd.f32 %v8057_v9, %v1756_v40  ;;  %v1775_v48 = vadd.f32 %v8057_v9, %v1755_v38 }
 0x31c   :  { %v1786_v50 = vsel %vm1386_vm2, %v1776_v47, -inf  ;;  %v1783_v51 = vsel %vm1386_vm2, %v1775_v48, -inf }
 0x31d   :  { %1787 = vmax.xlane.f32.xlu1 %v1786_v50  ;;  %1784 = vmax.xlane.f32.xlu0 %v1783_v51 }
 0x31f   :  { %v1519_v53 = vpop.f32.mrb[52].mxu0  ;;  %v1565_v54 = vpop.f32.mrb[52].mxu1 }
 0x320   :  { %v1757_v18 = vmul.f32 0.35355338, %v1519_v53  ;;  %v1758_v55 = vmul.f32 0.35355338, %v1565_v54  ;;  %v6818_v19 = vpop.f32.mrb[53].mxu0  ;;  %v6824_v56 = vpop.f32.mrb[53].mxu1 }
 0x321   :  { %v1522_v59 = vpop.f32.mrb[54].mxu0  ;;  %v1568_v60 = vpop.f32.mrb[54].mxu1 }
 0x322   :  { %v6819_v61 = vpop.f32.mrb[55].mxu0  ;;  %v6825_v62 = vpop.f32.mrb[55].mxu1  ;;  %v1778_v63 = vadd.f32 %v8057_v9, %v1758_v55  ;;  %v1777_v0 = vadd.f32 %v8057_v9, %v1757_v18 }
 0x324   :  { %v1792_v4 = vsel %vm1386_vm2, %v1778_v63, -inf  ;;  %v1789_v5 = vsel %vm1386_vm2, %v1777_v0, -inf }
 0x325   :  { %1793 = vmax.xlane.f32.xlu1 %v1792_v4  ;;  %1790 = vmax.xlane.f32.xlu0 %v1789_v5 }
 0x327   :  { %v1611_v7 = vpop.f32.mrb[56].mxu0  ;;  %v1657_v8 = vpop.f32.mrb[56].mxu1 }
 0x328   :  { %v1759_v11 = vmul.f32 0.35355338, %v1611_v7  ;;  %v1760_v12 = vmul.f32 0.35355338, %v1657_v8  ;;  %v6830_v16 = vpop.f32.mrb[57].mxu0  ;;  %v6836_v1 = vpop.f32.mrb[57].mxu1 }
 0x329   :  { %v1614_v17 = vpop.f32.mrb[58].mxu0  ;;  %v1660_v20 = vpop.f32.mrb[58].mxu1 }
 0x32a   :  { %v6831_v2 = vpop.f32.mrb[59].mxu0  ;;  %v6837_v21 = vpop.f32.mrb[59].mxu1  ;;  %v1780_v24 = vadd.f32 %v8070_v6, %v1760_v12  ;;  %v1779_v25 = vadd.f32 %v8070_v6, %v1759_v11 }
 0x32c   :  { %v1798_v28 = vsel %vm1386_vm2, %v1780_v24, -inf  ;;  %v1795_v26 = vsel %vm1386_vm2, %v1779_v25, -inf }
 0x32d   :  { %1799 = vmax.xlane.f32.xlu1 %v1798_v28  ;;  %1796 = vmax.xlane.f32.xlu0 %v1795_v26 }
 0x32f   :  { %v1703_v27 = vpop.f32.mrb[60].mxu0  ;;  %v1749_v29 = vpop.f32.mrb[60].mxu1 }
 0x330   :  { %v1761_v32 = vmul.f32 0.35355338, %v1703_v27  ;;  %v1762_v33 = vmul.f32 0.35355338, %v1749_v29  ;;  %v6842_v34 = vpop.f32.mrb[61].mxu0  ;;  %v6848_v35 = vpop.f32.mrb[61].mxu1 }
 0x331   :  { %v1706_v36 = vpop.f32.mrb[62].mxu0  ;;  %v1752_v37 = vpop.f32.mrb[62].mxu1  ;;  %v6057_v34 = vld [vmem:[%s8910_s9 + $0x3] ss:$0 sm:$0xff]  ;;  %v6056_v35 = vld [vmem:[%s8910_s9 + $0x2] ss:$0 sm:$0xff] }
 0x332   :  { %v6843_v10 = vpop.f32.mrb[63].mxu0  ;;  %v6849_v38 = vpop.f32.mrb[63].mxu1  ;;  %v1782_v40 = vadd.f32 %v8070_v6, %v1762_v33  ;;  %v1781_v41 = vadd.f32 %v8070_v6, %v1761_v32  ;;  %v1205_v36 = vadd.f32 %v6057_v34, %v8041_v57 }
 0x333   :  { %v1153_v10 = vadd.f32 %v6056_v35, %v8039_v3 }
 0x334   :  { %v1804_v42 = vsel %vm1386_vm2, %v1782_v40, -inf  ;;  %v1801_v43 = vsel %vm1386_vm2, %v1781_v41, -inf }
 0x335   :  { %1805 = vmax.xlane.f32.xlu1 %v1804_v42  ;;  %1802 = vmax.xlane.f32.xlu0 %v1801_v43  ;;  %v1882_v42 = vpack.c.bf16 %v1205_v36, %v1205_v36 }
 0x3aa   :  { %v1788_v44 = vpop.xlane.xlu1 %1787  ;;  %v1785_v45 = vpop.xlane.xlu0 %1784 }
 0x3ab   :  { %v1808_v46 = vsub.f32 %v1776_v47, %v1788_v44  ;;  %v1807_v49 = vsub.f32 %v1775_v48, %v1785_v45  ;;  %v1881_v44 = vpack.c.bf16 %v1153_v10, %v1153_v10 }
 0x3ad   :  { %v1817_v50 = vmul.f32 1.442695, %v1808_v46  ;;  %v1815_v51 = vmul.f32 1.442695, %v1807_v49  ;;  %v1984_v57 = vsel %vm1890_vm3, %v1881_v44, 0 }
 0x3af   :  { %7486 = vpow2.f32 %v1817_v50  ;;  %v2030_v50 = vsel %vm1890_vm3, %v1882_v42, 0 }
 0x3b0   :  { %7488 = vpow2.f32 %v1815_v51 }
 0x3b2   :  { %v1794_v52 = vpop.xlane.xlu1 %1793  ;;  %v1791_v53 = vpop.xlane.xlu0 %1790 }
 0x3b3   :  { %v1810_v54 = vsub.f32 %v1778_v63, %v1794_v52  ;;  %v1809_v18 = vsub.f32 %v1777_v0, %v1791_v53 }
 0x3b5   :  { %v1821_v55 = vmul.f32 1.442695, %v1810_v54  ;;  %v1819_v19 = vmul.f32 1.442695, %v1809_v18  ;;  %v1884_v54 = vpack.c.bf16 %v8047_v14, %v8047_v14  ;;  %v1325_v14 = vadd.f32 %v6056_v35, %v8049_v22 }
 0x3b7   :  { %7490 = vpow2.f32 %v1821_v55  ;;  %v1883_v55 = vpack.c.bf16 %v8045_v13, %v8045_v13 }
 0x3b8   :  { %7492 = vpow2.f32 %v1819_v19 }
 0x3b9   :  { %v7487_v56 = vpop.eup %7486 }
 0x3ba   :  { %v7489_v59 = vpop.eup %7488  ;;  %v1800_v60 = vpop.xlane.xlu1 %1799  ;;  %v1834_v62 = vsel %vm1386_vm2, %v7487_v56, 0.0 }
 0x3bb   :  { %v1797_v61 = vpop.xlane.xlu0 %1796  ;;  %v1812_v47 = vsub.f32 %v1780_v24, %v1800_v60  ;;  %1835 = vadd.xlane.f32.xlu1 %v1834_v62  ;;  %v1831_v58 = vsel %vm1386_vm2, %v7489_v59, 0.0  ;;  %v2122_v60 = vsel %vm1890_vm3, %v1884_v54, 0 }
 0x3bc   :  { %v1811_v48 = vsub.f32 %v1779_v25, %v1797_v61  ;;  %1832 = vadd.xlane.f32.xlu0 %v1831_v58  ;;  %v1365_v61 = vadd.f32 %v6057_v34, %v8051_v23 }
 0x3bd   :  { %v1825_v4 = vmul.f32 1.442695, %v1812_v47  ;;  %v2076_v47 = vsel %vm1890_vm3, %v1883_v55, 0 }
 0x3be   :  { %v1823_v5 = vmul.f32 1.442695, %v1811_v48  ;;  %v1886_v58 = vpack.c.bf16 %v1365_v61, %v1365_v61 }
 0x3bf   :  { %7494 = vpow2.f32 %v1825_v4  ;;  %v1885_v4 = vpack.c.bf16 %v1325_v14, %v1325_v14 }
 0x3c0   :  { %7496 = vpow2.f32 %v1823_v5 }
 0x3c1   :  { %v7491_v63 = vpop.eup %7490 }
 0x3c2   :  { %v8082_v0 = vpop.eup %7492  ;;  %v1806_v7 = vpop.xlane.xlu1 %1805  ;;  %v1840_v11 = vsel %vm1386_vm2, %v7491_v63, 0.0 }
 0x3c3   :  { %v1803_v8 = vpop.xlane.xlu0 %1802  ;;  %v1814_v12 = vsub.f32 %v1782_v40, %v1806_v7  ;;  %1841 = vadd.xlane.f32.xlu1 %v1840_v11  ;;  %v1837_v1 = vsel %vm1386_vm2, %v8082_v0, 0.0  ;;  %v2214_v7 = vsel %vm1890_vm3, %v1886_v58, 0 }
 0x3c4   :  { %v1813_v16 = vsub.f32 %v1781_v41, %v1803_v8  ;;  %1838 = vadd.xlane.f32.xlu0 %v1837_v1  ;;  %v2168_v8 = vsel %vm1890_vm3, %v1885_v4, 0 }
 0x3c5   :  { %v1829_v17 = vmul.f32 1.442695, %v1814_v12  ;;  %v2265_v12 = vld [vmem:[%s8912_s10 + $0x4] sm:$0xf] }
 0x3c6   :  { %v1827_v20 = vmul.f32 1.442695, %v1813_v16 }
 0x3c7   :  { %7498 = vpow2.f32 %v1829_v17  ;;  %v2264_v17 = vld [vmem:[%s8912_s10] sm:$0xf] }
 0x3c8   :  { %7500 = vpow2.f32 %v1827_v20 }
 0x3c9   :  { %v8087_v2 = vpop.eup %7494 }
 0x3ca   :  { %v8089_v21 = vpop.eup %7496  ;;  %v1846_v24 = vsel %vm1386_vm2, %v8087_v2, 0.0 }
 0x3cb   :  { %1847 = vadd.xlane.f32.xlu1 %v1846_v24  ;;  %v1843_v25 = vsel %vm1386_vm2, %v8089_v21, 0.0 }
 0x3cc   :  { %1844 = vadd.xlane.f32.xlu0 %v1843_v25  ;;  %v2272_v25 = vsel %vm1890_vm3, %v2264_v17, 0 }
 0x3d1   :  { %v8095_v28 = vpop.eup %7498 }
 0x3d2   :  { %v8097_v26 = vpop.eup %7500  ;;  %v1852_v27 = vsel %vm1386_vm2, %v8095_v28, 0.0 }
 0x3d3   :  { %1853 = vadd.xlane.f32.xlu1 %v1852_v27  ;;  %v1849_v29 = vsel %vm1386_vm2, %v8097_v26, 0.0 }
 0x3d4   :  { %1850 = vadd.xlane.f32.xlu0 %v1849_v29 }
 0x448   :  { %v1836_v32 = vpop.xlane.xlu1 %1835 }
 0x449   :  { %7502 = vrcp.f32 %v1836_v32  ;;  %v1833_v33 = vpop.xlane.xlu0 %1832 }
 0x44a   :  { %7504 = vrcp.f32 %v1833_v33 }
 0x450   :  { %v1842_v37 = vpop.xlane.xlu1 %1841 }
 0x451   :  { %7506 = vrcp.f32 %v1842_v37  ;;  %v1839_v38 = vpop.xlane.xlu0 %1838 }
 0x452   :  { %7508 = vrcp.f32 %v1839_v38 }
 0x453   :  { %v7503_v40 = vpop.eup %7502 }
 0x454   :  { %v7505_v41 = vpop.eup %7504  ;;  %v1864_v43 = vmul.f32 %v7503_v40, %v7487_v56 }
 0x455   :  { %v1863_v45 = vmul.f32 %v7505_v41, %v7489_v59 }
 0x456   :  { %v1872_v46 = vpack.c.bf16 %v1864_v43, %v1864_v43 }
 0x457   :  { %v1871_v49 = vpack.c.bf16 %v1863_v45, %v1863_v45 }
 0x458   :  { %6859 = vmatmul.mubr.msk.bf16.vlgmr.msra.gmra.mrb[64].mxu1 %vm1386_vm2, %v1872_v46  ;;  %v1848_v51 = vpop.xlane.xlu1 %1847 }
 0x459   :  { %6869 = vmatpush3.bf16.msra.mxu1 %v2030_v50  ;;  %7510 = vrcp.f32 %v1848_v51  ;;  %6853 = vmatmul.mubr.msk.bf16.vlgmr.msra.gmra.mrb[64].mxu0 %vm1386_vm2, %v1871_v49  ;;  %v1845_v3 = vpop.xlane.xlu0 %1844 }
 0x45a   :  { %6863 = vmatpush3.bf16.msra.mxu0 %v1984_v57  ;;  %7512 = vrcp.f32 %v1845_v3  ;;  %6864 = vmatprep.mubr.msk.bf16.mxu0 %vm7575_vm1, %v7574_v15 }
 0x45b   :  { %v7507_v52 = vpop.eup %7506  ;;  %6870 = vmatprep.mubr.msk.bf16.mxu1 %vm7575_vm1, %v7574_v15  ;;  %6874 = vmatprep.subr.bf16.mxu0 %v7574_v15 }
 0x45c   :  { %v7509_v53 = vpop.eup %7508  ;;  %v1866_v18 = vmul.f32 %v7507_v52, %v7491_v63  ;;  %6880 = vmatprep.subr.bf16.mxu1 %v7574_v15 }
 0x45d   :  { %v1865_v19 = vmul.f32 %v7509_v53, %v8082_v0 }
 0x45e   :  { %v1874_v56 = vpack.c.bf16 %v1866_v18, %v1866_v18 }
 0x45f   :  { %v1873_v59 = vpack.c.bf16 %v1865_v19, %v1865_v19 }
 0x460   :  { %6871 = vmatmul.mubr.msk.bf16.vlgmr.msra.gmra.mrb[68].mxu1 %vm1386_vm2, %v1874_v56  ;;  %v1854_v62 = vpop.xlane.xlu1 %1853 }
 0x461   :  { %6881 = vmatpush3.bf16.msra.mxu1 %v2122_v60  ;;  %7514 = vrcp.f32 %v1854_v62  ;;  %6865 = vmatmul.mubr.msk.bf16.vlgmr.msra.gmra.mrb[68].mxu0 %vm1386_vm2, %v1873_v59  ;;  %v1851_v13 = vpop.xlane.xlu0 %1850 }
 0x462   :  { %6875 = vmatpush3.bf16.msra.mxu0 %v2076_v47  ;;  %7516 = vrcp.f32 %v1851_v13  ;;  %6876 = vmatprep.mubr.msk.bf16.mxu0 %vm7575_vm1, %v7574_v15 }
 0x463   :  { %v7511_v48 = vpop.eup %7510  ;;  %6882 = vmatprep.mubr.msk.bf16.mxu1 %vm7575_vm1, %v7574_v15  ;;  %6886 = vmatprep.subr.bf16.mxu0 %v7574_v15 }
 0x464   :  { %v7513_v23 = vpop.eup %7512  ;;  %v1868_v22 = vmul.f32 %v7511_v48, %v8087_v2  ;;  %6892 = vmatprep.subr.bf16.mxu1 %v7574_v15 }
 0x465   :  { %v1867_v5 = vmul.f32 %v7513_v23, %v8089_v21  ;;  %v2318_v21 = vsel %vm1890_vm3, %v2265_v12, 0 }
 0x466   :  { %v1876_v63 = vpack.c.bf16 %v1868_v22, %v1868_v22 }
 0x467   :  { %v1875_v0 = vpack.c.bf16 %v1867_v5, %v1867_v5 }
 0x468   :  { %6883 = vmatmul.mubr.msk.bf16.vlgmr.msra.gmra.mrb[72].mxu1 %vm1386_vm2, %v1876_v63 }
 0x469   :  { %6877 = vmatmul.mubr.msk.bf16.vlgmr.msra.gmra.mrb[72].mxu0 %vm1386_vm2, %v1875_v0  ;;  %6893 = vmatpush3.bf16.msra.mxu1 %v2214_v7 }
 0x46a   :  { %6887 = vmatpush3.bf16.msra.mxu0 %v2168_v8  ;;  %6888 = vmatprep.mubr.msk.bf16.mxu0 %vm7575_vm1, %v7574_v15 }
 0x46b   :  { %v7515_v11 = vpop.eup %7514  ;;  %6894 = vmatprep.mubr.msk.bf16.mxu1 %vm7575_vm1, %v7574_v15  ;;  %6898 = vmatprep.subr.bf16.mxu0 %v7574_v15 }
 0x46c   :  { %v7517_v16 = vpop.eup %7516  ;;  %v1870_v1 = vmul.f32 %v7515_v11, %v8095_v28  ;;  %6904 = vmatprep.subr.bf16.mxu1 %v7574_v15  ;;  %v2267_v28 = vld [vmem:[%s8912_s10 + $0xc] sm:$0xf] }
 0x46d   :  { %v1869_v20 = vmul.f32 %v7517_v16, %v8097_v26  ;;  %v2266_v26 = vld [vmem:[%s8912_s10 + $0x8] sm:$0xf]  ;;  %v2410_v34 = vsel %vm1890_vm3, %v2267_v28, 0 }
 0x46e   :  { %v1878_v2 = vpack.c.bf16 %v1870_v1, %v1870_v1  ;;  %v2364_v10 = vsel %vm1890_vm3, %v2266_v26, 0  ;;  %v6098_v26 = vld [vmem:[%s8913_s11] ss:$0 sm:$0xff] }
 0x46f   :  { %v1877_v24 = vpack.c.bf16 %v1869_v20, %v1869_v20 }
 0x470   :  { %6895 = vmatmul.mubr.msk.bf16.vlgmr.msra.gmra.mrb[76].mxu1 %vm1386_vm2, %v1878_v2 }
 0x471   :  { %6889 = vmatmul.mubr.msk.bf16.vlgmr.msra.gmra.mrb[76].mxu0 %vm1386_vm2, %v1877_v24  ;;  %6905 = vmatpush3.bf16.msra.mxu1 %v2318_v21 }
 0x472   :  { %6899 = vmatpush3.bf16.msra.mxu0 %v2272_v25  ;;  %6900 = vmatprep.mubr.msk.bf16.mxu0 %vm7575_vm1, %v7574_v15 }
 0x473   :  { %6906 = vmatprep.mubr.msk.bf16.mxu1 %vm7575_vm1, %v7574_v15  ;;  %6910 = vmatprep.subr.bf16.mxu0 %v7574_v15 }
 0x474   :  { %6916 = vmatprep.subr.bf16.mxu1 %v7574_v15 }
 0x52b   :  { %v1974_v27 = vpop.f32.mrb[64].mxu1 }
 0x52c   :  { %v1928_v29 = vpop.f32.mrb[64].mxu0  ;;  %v2257_v32 = vpack.c.bf16 %v1974_v27, %v1974_v27  ;;  %v6860_v33 = vpop.f32.mrb[65].mxu1 }
 0x52d   :  { %v2256_v35 = vpack.c.bf16 %v1928_v29, %v1928_v29  ;;  %v6854_v36 = vpop.f32.mrb[65].mxu0  ;;  %v1977_v37 = vpop.f32.mrb[66].mxu1 }
 0x52e   :  { %v1931_v38 = vpop.f32.mrb[66].mxu0  ;;  %v6861_v40 = vpop.f32.mrb[67].mxu1  ;;  %6907 = vmatmul.mubr.msk.bf16.vlgmr.msra.gmra.mrb[80].mxu1 %vm1386_vm2, %v2257_v32 }
 0x52f   :  { %v6855_v41 = vpop.f32.mrb[67].mxu0  ;;  %6901 = vmatmul.mubr.msk.bf16.vlgmr.msra.gmra.mrb[80].mxu0 %vm1386_vm2, %v2256_v35  ;;  %6917 = vmatpush3.bf16.msra.mxu1 %v2410_v34 }
 0x530   :  { %6911 = vmatpush3.bf16.msra.mxu0 %v2364_v10  ;;  %6912 = vmatprep.mubr.msk.bf16.mxu0 %vm7575_vm1, %v7574_v15 }
 0x531   :  { %6918 = vmatprep.mubr.msk.bf16.mxu1 %vm7575_vm1, %v7574_v15  ;;  %6922 = vmatprep.subr.bf16.mxu0 %v7574_v15 }
 0x532   :  { %6928 = vmatprep.subr.bf16.mxu1 %v7574_v15 }
 0x533   :  { %v2066_v42 = vpop.f32.mrb[68].mxu1 }
 0x534   :  { %v2020_v43 = vpop.f32.mrb[68].mxu0  ;;  %v2259_v44 = vpack.c.bf16 %v2066_v42, %v2066_v42  ;;  %v6872_v45 = vpop.f32.mrb[69].mxu1 }
 0x535   :  { %v2258_v46 = vpack.c.bf16 %v2020_v43, %v2020_v43  ;;  %v6866_v49 = vpop.f32.mrb[69].mxu0  ;;  %v2069_v50 = vpop.f32.mrb[70].mxu1 }
 0x536   :  { %v2023_v51 = vpop.f32.mrb[70].mxu0  ;;  %v6873_v57 = vpop.f32.mrb[71].mxu1  ;;  %6919 = vmatmul.mubr.msk.bf16.vlgmr.msra.gmra.mrb[84].mxu1 %vm1386_vm2, %v2259_v44 }
 0x537   :  { %v6867_v3 = vpop.f32.mrb[71].mxu0  ;;  %6913 = vmatmul.mubr.msk.bf16.vlgmr.msra.gmra.mrb[84].mxu0 %vm1386_vm2, %v2258_v46  ;;  %6929 = vmatpush3.bf16.msra.mxu1 %v2318_v21 }
 0x538   :  { %6923 = vmatpush3.bf16.msra.mxu0 %v2272_v25  ;;  %6924 = vmatprep.mubr.msk.bf16.mxu0 %vm7575_vm1, %v7574_v15 }
 0x539   :  { %6930 = vmatprep.mubr.msk.bf16.mxu1 %vm7575_vm1, %v7574_v15  ;;  %6934 = vmatprep.subr.bf16.mxu0 %v7574_v15 }
 0x53a   :  { %6940 = vmatprep.subr.bf16.mxu1 %v7574_v15 }
 0x53b   :  { %v2158_v52 = vpop.f32.mrb[72].mxu1 }
 0x53c   :  { %v2112_v53 = vpop.f32.mrb[72].mxu0  ;;  %v2261_v54 = vpack.c.bf16 %v2158_v52, %v2158_v52  ;;  %v6884_v18 = vpop.f32.mrb[73].mxu1 }
 0x53d   :  { %v2260_v55 = vpack.c.bf16 %v2112_v53, %v2112_v53  ;;  %v6878_v19 = vpop.f32.mrb[73].mxu0  ;;  %v2161_v56 = vpop.f32.mrb[74].mxu1 }
 0x53e   :  { %v2115_v59 = vpop.f32.mrb[74].mxu0  ;;  %v6885_v60 = vpop.f32.mrb[75].mxu1  ;;  %6931 = vmatmul.mubr.msk.bf16.vlgmr.msra.gmra.mrb[88].mxu1 %vm1386_vm2, %v2261_v54 }
 0x53f   :  { %v6879_v61 = vpop.f32.mrb[75].mxu0  ;;  %6925 = vmatmul.mubr.msk.bf16.vlgmr.msra.gmra.mrb[88].mxu0 %vm1386_vm2, %v2260_v55  ;;  %6941 = vmatpush3.bf16.msra.mxu1 %v2410_v34 }
 0x540   :  { %6935 = vmatpush3.bf16.msra.mxu0 %v2364_v10  ;;  %6936 = vmatprep.mubr.msk.bf16.mxu0 %vm7575_vm1, %v7574_v15 }
 0x541   :  { %6942 = vmatprep.mubr.msk.bf16.mxu1 %vm7575_vm1, %v7574_v15  ;;  %6946 = vmatprep.subr.bf16.mxu0 %v7574_v15 }
 0x542   :  { %6954 = vmatprep.subr.bf16.mxu1 %v7574_v15 }
 0x543   :  { %v2250_v62 = vpop.f32.mrb[76].mxu1 }
 0x544   :  { %v2204_v47 = vpop.f32.mrb[76].mxu0  ;;  %v2263_v14 = vpack.c.bf16 %v2250_v62, %v2250_v62  ;;  %v6896_v13 = vpop.f32.mrb[77].mxu1 }
 0x545   :  { %v2262_v48 = vpack.c.bf16 %v2204_v47, %v2204_v47  ;;  %v6890_v23 = vpop.f32.mrb[77].mxu0  ;;  %v2253_v58 = vpop.f32.mrb[78].mxu1 }
 0x546   :  { %v2207_v22 = vpop.f32.mrb[78].mxu0  ;;  %v6897_v4 = vpop.f32.mrb[79].mxu1  ;;  %6943 = vmatmul.mubr.msk.bf16.vlgmr.msra.gmra.mrb[92].mxu1 %vm1386_vm2, %v2263_v14  ;;  %v7437_v58 = vld [vmem:[%s8914_s14 + $0x8] sm:$0xff]  }
 0x547   :  { %v6891_v5 = vpop.f32.mrb[79].mxu0  ;;  %6937 = vmatmul.mubr.msk.bf16.vlgmr.msra.gmra.mrb[92].mxu0 %vm1386_vm2, %v2262_v48  ;;  %6958 = vmatprep.mubr.msk.bf16.mxu1 %vm7575_vm1, %v7574_v15 }
 0x548   :  { %6950 = vmatprep.mubr.msk.bf16.mxu0 %vm7575_vm1, %v7574_v15 }
 0x601   :  { %v2354_v63 = vpop.f32.mrb[80].mxu1 }
 0x602   :  { %v2308_v0 = vpop.f32.mrb[80].mxu0  ;;  %v6908_v7 = vpop.f32.mrb[81].mxu1 }
 0x603   :  { %v2624_v8 = vadd.f32 %v2354_v63, %v2308_v0  ;;  %v6902_v11 = vpop.f32.mrb[81].mxu0  ;;  %v2357_v12 = vpop.f32.mrb[82].mxu1  ;;  %v6099_v0 = vld [vmem:[%s8916_s12] ss:$0 sm:$0xff] }
 0x604   :  { %v2311_v16 = vpop.f32.mrb[82].mxu0  ;;  %v6909_v1 = vpop.f32.mrb[83].mxu1  ;;  %v6100_v12 = vld [vmem:[%s8917_s13] ss:$0 sm:$0xff] }
 0x605   :  { %v6903_v17 = vpop.f32.mrb[83].mxu0 }
 0x609   :  { %v2446_v20 = vpop.f32.mrb[84].mxu1 }
 0x60a   :  { %v2400_v2 = vpop.f32.mrb[84].mxu0  ;;  %v6920_v21 = vpop.f32.mrb[85].mxu1 }
 0x60b   :  { %v2626_v24 = vadd.f32 %v2624_v8, %v2400_v2  ;;  %v6914_v25 = vpop.f32.mrb[85].mxu0  ;;  %v2449_v28 = vpop.f32.mrb[86].mxu1  ;;  %v7439_v21 = vld [vmem:[%s8915_s16 + $0x8] sm:$0xff]  }
 0x60c   :  { %v2403_v27 = vpop.f32.mrb[86].mxu0  ;;  %v6921_v29 = vpop.f32.mrb[87].mxu1 }
 0x60d   :  { %v2628_v32 = vadd.f32 %v2626_v24, %v2446_v20  ;;  %v6915_v33 = vpop.f32.mrb[87].mxu0  ;;  %v7438_v20 = vld [vmem:[%s8915_s16] sm:$0xff]   ;;  %v7440_v24 = vld [vmem:[%s8915_s16 + $0x10] sm:$0xff]  }
 0x60e   :  { %v7442_v33 = vld [vmem:[%s8915_s16 + $0x20] sm:$0xff]  }
 0x60f   :  { %v2637_v34 = vadd.f32 %v6098_v26, %v2628_v32  ;;  %v7441_v32 = vld [vmem:[%s8915_s16 + $0x18] sm:$0xff]  }
 0x611   :  { %v2532_v35 = vpop.f32.mrb[88].mxu1  ;;  %v2639_v36 = vadd.f32 %v2637_v34, %v7729_v30  ;;  %v7443_v34 = vld [vmem:[%s8915_s16 + $0x28] sm:$0xff]  }
 0x612   :  { %v2489_v37 = vpop.f32.mrb[88].mxu0  ;;  %v6932_v10 = vpop.f32.mrb[89].mxu1 }
 0x613   :  { %v2625_v38 = vadd.f32 %v2532_v35, %v2489_v37  ;;  %v6926_v40 = vpop.f32.mrb[89].mxu0  ;;  %v2535_v41 = vpop.f32.mrb[90].mxu1  ;;  %v2643_v42 = vsel %vm76_vm0, %v2639_v36, 0.0  ;;  %v7444_v35 = vld [vmem:[%s8915_s16 + $0x30] sm:$0xff]   ;;  %v6101_v37 = vld [vmem:[%s8918_s15] ss:$0 sm:$0xff] }
 0x614   :  { %2644 = vadd.xlane.f32.xlu0 %v2643_v42  ;;  %v2492_v43 = vpop.f32.mrb[90].mxu0  ;;  %v6933_v44 = vpop.f32.mrb[91].mxu1 }
 0x615   :  { %v6927_v45 = vpop.f32.mrb[91].mxu0 }
 0x619   :  { %v2618_v46 = vpop.f32.mrb[92].mxu1 }
 0x61a   :  { %v2575_v49 = vpop.f32.mrb[92].mxu0  ;;  %v6944_v50 = vpop.f32.mrb[93].mxu1 }
 0x61b   :  { %v2627_v51 = vadd.f32 %v2625_v38, %v2575_v49  ;;  %v6938_v57 = vpop.f32.mrb[93].mxu0  ;;  %v2621_v3 = vpop.f32.mrb[94].mxu1 }
 0x61c   :  { %v2578_v52 = vpop.f32.mrb[94].mxu0  ;;  %v6945_v53 = vpop.f32.mrb[95].mxu1 }
 0x61d   :  { %v2629_v30 = vadd.f32 %v2627_v51, %v2618_v46  ;;  %v6939_v54 = vpop.f32.mrb[95].mxu0 }
 0x61f   :  { %v2638_v18 = vadd.f32 %v6098_v26, %v2629_v30 }
 0x621   :  { %v2640_v55 = vadd.f32 %v2638_v18, %v7763_v39  ;;  %v7436_v39 = vld [vmem:[%s8914_s14] sm:$0xff]  }
 0x622   :  { %6947 = vmatpush3.bf16.msra.mxu0 %v7436_v39  ;;  %6955 = vmatpush3.bf16.msra.mxu1 %v7436_v39 }
 0x623   :  { %v2646_v19 = vsel %vm76_vm0, %v2640_v55, 0.0  ;;  %6948 = vmatprep.subr.bf16.mxu0 %v7574_v15  ;;  %6956 = vmatprep.subr.bf16.mxu1 %v7574_v15 }
 0x624   :  { %2647 = vadd.xlane.f32.xlu1 %v2646_v19 }
 0x626   :  { %6949 = vmatpush3.bf16.msra.mxu0 %v7437_v58  ;;  %6957 = vmatpush3.bf16.msra.mxu1 %v7437_v58 }
 0x627   :  { %6962 = vmatprep.subr.bf16.mxu0 %v7574_v15  ;;  %6982 = vmatprep.subr.bf16.mxu1 %v7574_v15 }
 0x6a1   :  { %v2645_v56 = vpop.xlane.xlu0 %2644 }
 0x6a2   :  { %v2649_v59 = vmul.f32 0.03125, %v2645_v56 }
 0x6a4   :  { %v2651_v60 = vsub.f32 %v2639_v36, %v2649_v59  ;;  %v7445_v36 = vld [vmem:[%s8915_s16 + $0x38] sm:$0xff]   ;;  %v6106_v59 = vld [vmem:[%s8919_s17] ss:$0 sm:$0xff] }
 0x6a6   :  { %v2653_v61 = vmul.f32 %v2651_v60, %v2651_v60 }
 0x6a8   :  { %v2655_v62 = vsel %vm76_vm0, %v2653_v61, 0.0 }
 0x6a9   :  { %2656 = vadd.xlane.f32.xlu0 %v2655_v62 }
 0x6b1   :  { %v2648_v47 = vpop.xlane.xlu1 %2647 }
 0x6b2   :  { %v2650_v14 = vmul.f32 0.03125, %v2648_v47 }
 0x6b4   :  { %v2652_v13 = vsub.f32 %v2640_v55, %v2650_v14 }
 0x6b6   :  { %v2654_v48 = vmul.f32 %v2652_v13, %v2652_v13 }
 0x6b8   :  { %v2658_v23 = vsel %vm76_vm0, %v2654_v48, 0.0 }
 0x6b9   :  { %2659 = vadd.xlane.f32.xlu1 %v2658_v23 }
 0x736   :  { %v2657_v22 = vpop.xlane.xlu0 %2656 }
 0x737   :  { %v2661_v4 = vmul.f32 0.03125, %v2657_v22 }
 0x739   :  { %v2663_v5 = vadd.f32 1e-12, %v2661_v4 }
 0x73b   :  { %7518 = vrsqrt.f32 %v2663_v5 }
 0x745   :  { %v7519_v63 = vpop.eup %7518 }
 0x746   :  { %v2667_v7 = vmul.f32 %v7519_v63, %v2651_v60  ;;  %v2660_v8 = vpop.xlane.xlu1 %2659 }
 0x747   :  { %v2662_v11 = vmul.f32 0.03125, %v2660_v8 }
 0x748   :  { %v2675_v16 = vmul.f32 %v6099_v0, %v2667_v7 }
 0x749   :  { %v2664_v1 = vadd.f32 1e-12, %v2662_v11 }
 0x74a   :  { %v8231_v17 = vadd.f32 %v6100_v12, %v2675_v16 }
 0x74b   :  { %7520 = vrsqrt.f32 %v2664_v1 }
 0x74c   :  { %v2689_v2 = vpack.c.bf16 %v8231_v17, %v8231_v17 }
 0x74e   :  { %6951 = vmatmul.mubr.msk.bf16.vlgmr.msra.gmra.mrb[96].mxu0 %vm76_vm0, %v2689_v2 }
 0x74f   :  { %6963 = vmatpush3.bf16.msra.mxu0 %v7438_v20  ;;  %6978 = vmatprep.mubr.msk.bf16.mxu0 %vm7575_vm1, %v7574_v15 }
 0x750   :  { %6964 = vmatprep.subr.bf16.mxu0 %v7574_v15 }
 0x753   :  { %6965 = vmatpush3.bf16.msra.mxu0 %v7439_v21 }
 0x754   :  { %6966 = vmatprep.subr.bf16.mxu0 %v7574_v15 }
 0x755   :  { %v7521_v25 = vpop.eup %7520 }
 0x756   :  { %v2668_v28 = vmul.f32 %v7521_v25, %v2652_v13  ;;  %v7448_v25 = vld [vmem:[%s8938_s23 + $0x48] sm:$0xff]  }
 0x757   :  { %6967 = vmatpush3.bf16.msra.mxu0 %v7440_v24 }
 0x758   :  { %v2676_v26 = vmul.f32 %v6099_v0, %v2668_v28  ;;  %6968 = vmatprep.subr.bf16.mxu0 %v7574_v15  ;;  %v7449_v28 = vld [vmem:[%s8938_s23 + $0x58] sm:$0xff]  }
 0x75a   :  { %v8250_v27 = vadd.f32 %v6100_v12, %v2676_v26 }
 0x75b   :  { %6969 = vmatpush3.bf16.msra.mxu0 %v7441_v32 }
 0x75c   :  { %v2690_v29 = vpack.c.bf16 %v8250_v27, %v8250_v27  ;;  %6970 = vmatprep.subr.bf16.mxu0 %v7574_v15 }
 0x75e   :  { %6959 = vmatmul.mubr.msk.bf16.vlgmr.msra.gmra.mrb[96].mxu1 %vm76_vm0, %v2690_v29 }
 0x75f   :  { %6983 = vmatpush3.bf16.msra.mxu1 %v7438_v20  ;;  %6998 = vmatprep.mubr.msk.bf16.mxu1 %vm7575_vm1, %v7574_v15 }
 0x760   :  { %6984 = vmatprep.subr.bf16.mxu1 %v7574_v15  ;;  %6971 = vmatpush3.bf16.msra.mxu0 %v7442_v33 }
 0x761   :  { %6972 = vmatprep.subr.bf16.mxu0 %v7574_v15 }
 0x763   :  { %6985 = vmatpush3.bf16.msra.mxu1 %v7439_v21  ;;  %v7446_v21 = vld [vmem:[%s8938_s23 + $0x40] sm:$0xff]  }
 0x764   :  { %6986 = vmatprep.subr.bf16.mxu1 %v7574_v15  ;;  %6973 = vmatpush3.bf16.msra.mxu0 %v7443_v34 }
 0x765   :  { %6974 = vmatprep.subr.bf16.mxu0 %v7574_v15 }
 0x767   :  { %6987 = vmatpush3.bf16.msra.mxu1 %v7440_v24  ;;  %v7447_v24 = vld [vmem:[%s8938_s23 + $0x50] sm:$0xff]  }
 0x768   :  { %6988 = vmatprep.subr.bf16.mxu1 %v7574_v15  ;;  %6975 = vmatpush3.bf16.msra.mxu0 %v7444_v35 }
 0x769   :  { %6976 = vmatprep.subr.bf16.mxu0 %v7574_v15 }
 0x76b   :  { %6989 = vmatpush3.bf16.msra.mxu1 %v7441_v32 }
 0x76c   :  { %6990 = vmatprep.subr.bf16.mxu1 %v7574_v15  ;;  %6977 = vmatpush3.bf16.msra.mxu0 %v7445_v36 }
 0x76d   :  { %7002 = vmatprep.subr.bf16.mxu0 %v7574_v15 }
 0x76f   :  { %6991 = vmatpush3.bf16.msra.mxu1 %v7442_v33  ;;  %v6115_v33 = vld [vmem:[%s8920_s18] ss:$0 sm:$0xff] }
 0x770   :  { %6992 = vmatprep.subr.bf16.mxu1 %v7574_v15 }
 0x773   :  { %6993 = vmatpush3.bf16.msra.mxu1 %v7443_v34 }
 0x774   :  { %6994 = vmatprep.subr.bf16.mxu1 %v7574_v15 }
 0x777   :  { %6995 = vmatpush3.bf16.msra.mxu1 %v7444_v35 }
 0x778   :  { %6996 = vmatprep.subr.bf16.mxu1 %v7574_v15 }
 0x77b   :  { %6997 = vmatpush3.bf16.msra.mxu1 %v7445_v36  ;;  %v6116_v36 = vld [vmem:[%s8921_s19] ss:$0 sm:$0xff] }
 0x77c   :  { %7010 = vmatprep.subr.bf16.mxu1 %v7574_v15 }
 0x821   :  { %v2747_v10 = vpop.f32.mrb[96].mxu0 }
 0x822   :  { %v2748_v38 = vadd.f32 %v6101_v37, %v2747_v10  ;;  %v6952_v40 = vpop.f32.mrb[97].mxu0 }
 0x823   :  { %v2750_v41 = vpop.f32.mrb[98].mxu0 }
 0x824   :  { %v2798_v42 = vmul.f32 0.70710677, %v2748_v38  ;;  %v6953_v43 = vpop.f32.mrb[99].mxu0  ;;  %v2796_v45 = vmul.f32 0.5, %v2748_v38  ;;  %v7450_v41 = vld [vmem:[%s8938_s23 + $0x60] sm:$0xff]  }
 0x826   :  { %7522 = verf.f32 %v2798_v42  ;;  %v7451_v42 = vld [vmem:[%s8938_s23 + $0x70] sm:$0xff]  }
 0x830   :  { %v7523_v44 = vpop.eup %7522 }
 0x831   :  { %v2802_v46 = vadd.f32 1.0, %v7523_v44  ;;  %v2790_v49 = vpop.f32.mrb[96].mxu1  ;;  %v7452_v44 = vld [vmem:[%s8938_s23 + $0x68] sm:$0xff]  }
 0x832   :  { %v2791_v50 = vadd.f32 %v6101_v37, %v2790_v49  ;;  %v6960_v51 = vpop.f32.mrb[97].mxu1 }
 0x833   :  { %v2804_v57 = vmul.f32 %v2802_v46, %v2796_v45  ;;  %v2793_v3 = vpop.f32.mrb[98].mxu1  ;;  %v7453_v45 = vld [vmem:[%s8938_s23 + $0x78] sm:$0xff]  }
 0x834   :  { %v2799_v52 = vmul.f32 0.70710677, %v2791_v50  ;;  %v6961_v53 = vpop.f32.mrb[99].mxu1  ;;  %v2797_v18 = vmul.f32 0.5, %v2791_v50  ;;  %v7454_v3 = vld [vmem:[%s8941_s28 + $0x40] sm:$0xff]  }
 0x835   :  { %v2822_v30 = vpack.c.bf16 %v2804_v57, %v2804_v57  ;;  %v7456_v53 = vld [vmem:[%s8941_s28 + $0x48] sm:$0xff]  }
 0x836   :  { %7524 = verf.f32 %v2799_v52  ;;  %v7455_v52 = vld [vmem:[%s8941_s28 + $0x50] sm:$0xff]  }
 0x837   :  { %6979 = vmatmul.mubr.bf16.vlgmr.msra.gmra.mrb[100].mxu0 %v2822_v30  ;;  %v7457_v30 = vld [vmem:[%s8941_s28 + $0x58] sm:$0xff]  }
 0x838   :  { %7006 = vmatprep.mubr.msk.bf16.mxu0 %vm7575_vm1, %v7574_v15  ;;  %7003 = vmatpush3.bf16.msra.mxu0 %v7446_v21 }
 0x839   :  { %7004 = vmatprep.subr.bf16.mxu0 %v7574_v15 }
 0x83c   :  { %7005 = vmatpush3.bf16.msra.mxu0 %v7448_v25 }
 0x83d   :  { %7018 = vmatprep.subr.bf16.mxu0 %v7574_v15 }
 0x840   :  { %v7525_v54 = vpop.eup %7524 }
 0x841   :  { %v2803_v55 = vadd.f32 1.0, %v7525_v54  ;;  %v7458_v54 = vld [vmem:[%s8941_s28 + $0x60] sm:$0xff]  }
 0x843   :  { %v2805_v19 = vmul.f32 %v2803_v55, %v2797_v18  ;;  %v7459_v18 = vld [vmem:[%s8941_s28 + $0x70] sm:$0xff]   ;;  %v7460_v55 = vld [vmem:[%s8941_s28 + $0x68] sm:$0xff]  }
 0x845   :  { %v2823_v56 = vpack.c.bf16 %v2805_v19, %v2805_v19  ;;  %v7461_v19 = vld [vmem:[%s8941_s28 + $0x78] sm:$0xff]  }
 0x847   :  { %6999 = vmatmul.mubr.bf16.vlgmr.msra.gmra.mrb[100].mxu1 %v2823_v56  ;;  %v7462_v56 = vld [vmem:[%s8942_s0 + $0x40] sm:$0xff]  }
 0x848   :  { %7014 = vmatprep.mubr.msk.bf16.mxu1 %vm7575_vm1, %v7574_v15  ;;  %7011 = vmatpush3.bf16.msra.mxu1 %v7447_v24 }
 0x849   :  { %7012 = vmatprep.subr.bf16.mxu1 %v7574_v15 }
 0x84c   :  { %7013 = vmatpush3.bf16.msra.mxu1 %v7449_v28 }
 0x84d   :  { %7026 = vmatprep.subr.bf16.mxu1 %v7574_v15 }
 0x90a   :  { %v2913_v60 = vpop.f32.mrb[100].mxu0 }
 0x90b   :  { %v2914_v61 = vadd.f32 %v6106_v59, %v2913_v60  ;;  %v6980_v62 = vpop.f32.mrb[101].mxu0  ;;  %v7464_v60 = vld [vmem:[%s8942_s0 + $0x48] sm:$0xff]  }
 0x90c   :  { %v2916_v47 = vpop.f32.mrb[102].mxu0  ;;  %v7466_v62 = vld [vmem:[%s8942_s0 + $0x60] sm:$0xff]  }
 0x90d   :  { %v6981_v14 = vpop.f32.mrb[103].mxu0  ;;  %v2959_v13 = vadd.f32 %v2914_v61, %v8231_v17  ;;  %v7465_v61 = vld [vmem:[%s8942_s0 + $0x58] sm:$0xff]   ;;  %v7467_v47 = vld [vmem:[%s8942_s0 + $0x70] sm:$0xff]  }
 0x90e   :  { %v7468_v14 = vld [vmem:[%s8942_s0 + $0x68] sm:$0xff]  }
 0x90f   :  { %v2963_v48 = vsel %vm76_vm0, %v2959_v13, 0.0 }
 0x910   :  { %2964 = vadd.xlane.f32.xlu0 %v2963_v48 }
 0x91a   :  { %v2953_v23 = vpop.f32.mrb[100].mxu1 }
 0x91b   :  { %v2954_v39 = vadd.f32 %v6106_v59, %v2953_v23  ;;  %v7000_v58 = vpop.f32.mrb[101].mxu1  ;;  %v7463_v59 = vld [vmem:[%s8942_s0 + $0x50] sm:$0xff]  }
 0x91c   :  { %v2956_v22 = vpop.f32.mrb[102].mxu1 }
 0x91d   :  { %v7001_v4 = vpop.f32.mrb[103].mxu1  ;;  %v2960_v5 = vadd.f32 %v2954_v39, %v8250_v27 }
 0x91f   :  { %v2966_v63 = vsel %vm76_vm0, %v2960_v5, 0.0 }
 0x920   :  { %2967 = vadd.xlane.f32.xlu1 %v2966_v63 }
 0x99d   :  { %v2965_v0 = vpop.xlane.xlu0 %2964 }
 0x99e   :  { %v2969_v7 = vmul.f32 0.03125, %v2965_v0 }
 0x9a0   :  { %v2971_v8 = vsub.f32 %v2959_v13, %v2969_v7  ;;  %v7469_v13 = vld [vmem:[%s8942_s0 + $0x78] sm:$0xff]  }
 0x9a2   :  { %v2973_v11 = vmul.f32 %v2971_v8, %v2971_v8 }
 0x9a4   :  { %v2975_v12 = vsel %vm76_vm0, %v2973_v11, 0.0 }
 0x9a5   :  { %2976 = vadd.xlane.f32.xlu0 %v2975_v12 }
 0x9ad   :  { %v2968_v16 = vpop.xlane.xlu1 %2967 }
 0x9ae   :  { %v2970_v1 = vmul.f32 0.03125, %v2968_v16 }
 0x9b0   :  { %v2972_v17 = vsub.f32 %v2960_v5, %v2970_v1 }
 0x9b2   :  { %v2974_v20 = vmul.f32 %v2972_v17, %v2972_v17 }
 0x9b4   :  { %v2978_v2 = vsel %vm76_vm0, %v2974_v20, 0.0 }
 0x9b5   :  { %2979 = vadd.xlane.f32.xlu1 %v2978_v2 }
 0xa32   :  { %v2977_v26 = vpop.xlane.xlu0 %2976 }
 0xa33   :  { %v2981_v27 = vmul.f32 0.03125, %v2977_v26 }
 0xa35   :  { %v2983_v29 = vadd.f32 1e-12, %v2981_v27 }
 0xa37   :  { %7526 = vrsqrt.f32 %v2983_v29 }
 0xa41   :  { %v7527_v32 = vpop.eup %7526 }
 0xa42   :  { %v2987_v34 = vmul.f32 %v7527_v32, %v2971_v8  ;;  %v2980_v35 = vpop.xlane.xlu1 %2979 }
 0xa43   :  { %v2982_v37 = vmul.f32 0.03125, %v2980_v35 }
 0xa44   :  { %v2995_v10 = vmul.f32 %v6115_v33, %v2987_v34 }
 0xa45   :  { %v2984_v38 = vadd.f32 1e-12, %v2982_v37 }
 0xa46   :  { %v8323_v40 = vadd.f32 %v6116_v36, %v2995_v10 }
 0xa47   :  { %7528 = vrsqrt.f32 %v2984_v38  ;;  %v6177_v38 = vld [vmem:[%s8943_s25 + $0x4] ss:$0 sm:$0xff] }
 0xa48   :  { %v8333_v43 = vpack.c.bf16 %v8323_v40, %v8323_v40 }
 0xa4a   :  { %7007 = vmatmul.mubr.msk.bf16.vlgmr.msra.gmra.mrb[104].mxu0 %vm76_vm0, %v8333_v43  ;;  %7015 = vmatmul.mubr.msk.bf16.vlgmr.msra.gmra.mrb[104].mxu1 %vm76_vm0, %v8333_v43 }
 0xa4b   :  { %7019 = vmatpush3.bf16.msra.mxu0 %v7450_v41  ;;  %7027 = vmatpush3.bf16.msra.mxu1 %v7451_v42 }
 0xa4c   :  { %7020 = vmatprep.subr.bf16.mxu0 %v7574_v15  ;;  %7028 = vmatprep.subr.bf16.mxu1 %v7574_v15 }
 0xa4d   :  { %7022 = vmatprep.mubr.msk.bf16.mxu0 %vm7575_vm1, %v7574_v15  ;;  %7030 = vmatprep.mubr.msk.bf16.mxu1 %vm7575_vm1, %v7574_v15 }
 0xa4f   :  { %7021 = vmatpush3.bf16.msra.mxu0 %v7452_v44  ;;  %7029 = vmatpush3.bf16.msra.mxu1 %v7453_v45 }
 0xa50   :  { %7034 = vmatprep.subr.bf16.mxu0 %v7574_v15  ;;  %7042 = vmatprep.subr.bf16.mxu1 %v7574_v15 }
 0xa51   :  { %v7529_v46 = vpop.eup %7528 }
 0xa52   :  { %v2988_v49 = vmul.f32 %v7529_v46, %v2972_v17  ;;  %7023 = vmatmul.mubr.msk.bf16.vlgmr.msra.gmra.mrb[108].mxu0 %vm76_vm0, %v8333_v43  ;;  %7031 = vmatmul.mubr.msk.bf16.vlgmr.msra.gmra.mrb[108].mxu1 %vm76_vm0, %v8333_v43 }
 0xa53   :  { %7035 = vmatpush3.bf16.msra.mxu0 %v7446_v21  ;;  %7043 = vmatpush3.bf16.msra.mxu1 %v7447_v24 }
 0xa54   :  { %v2996_v50 = vmul.f32 %v6115_v33, %v2988_v49  ;;  %7036 = vmatprep.subr.bf16.mxu0 %v7574_v15  ;;  %7044 = vmatprep.subr.bf16.mxu1 %v7574_v15 }
 0xa55   :  { %7038 = vmatprep.mubr.msk.bf16.mxu0 %vm7575_vm1, %v7574_v15  ;;  %7046 = vmatprep.mubr.msk.bf16.mxu1 %vm7575_vm1, %v7574_v15 }
 0xa56   :  { %v8363_v51 = vadd.f32 %v6116_v36, %v2996_v50 }
 0xa57   :  { %7037 = vmatpush3.bf16.msra.mxu0 %v7448_v25  ;;  %7045 = vmatpush3.bf16.msra.mxu1 %v7449_v28 }
 0xa58   :  { %v8367_v57 = vpack.c.bf16 %v8363_v51, %v8363_v51  ;;  %7050 = vmatprep.subr.bf16.mxu0 %v7574_v15  ;;  %7058 = vmatprep.subr.bf16.mxu1 %v7574_v15 }
 0xa5a   :  { %7039 = vmatmul.mubr.msk.bf16.vlgmr.msra.gmra.mrb[112].mxu0 %vm76_vm0, %v8367_v57  ;;  %7047 = vmatmul.mubr.msk.bf16.vlgmr.msra.gmra.mrb[112].mxu1 %vm76_vm0, %v8367_v57 }
 0xa5b   :  { %7051 = vmatpush3.bf16.msra.mxu0 %v7450_v41  ;;  %7059 = vmatpush3.bf16.msra.mxu1 %v7451_v42  ;;  %v6178_v41 = vld [vmem:[%s8943_s25 + $0x5] ss:$0 sm:$0xff] }
 0xa5c   :  { %7052 = vmatprep.subr.bf16.mxu0 %v7574_v15  ;;  %7060 = vmatprep.subr.bf16.mxu1 %v7574_v15 }
 0xa5d   :  { %7054 = vmatprep.mubr.msk.bf16.mxu0 %vm7575_vm1, %v7574_v15  ;;  %7062 = vmatprep.mubr.msk.bf16.mxu1 %vm7575_vm1, %v7574_v15 }
 0xa5f   :  { %7053 = vmatpush3.bf16.msra.mxu0 %v7452_v44  ;;  %7061 = vmatpush3.bf16.msra.mxu1 %v7453_v45 }
 0xa60   :  { %7066 = vmatprep.subr.bf16.mxu0 %v7574_v15  ;;  %7074 = vmatprep.subr.bf16.mxu1 %v7574_v15 }
 0xa62   :  { %7055 = vmatmul.mubr.msk.bf16.vlgmr.msra.gmra.mrb[116].mxu0 %vm76_vm0, %v8367_v57  ;;  %7063 = vmatmul.mubr.msk.bf16.vlgmr.msra.gmra.mrb[116].mxu1 %vm76_vm0, %v8367_v57 }
 0xa63   :  { %7067 = vmatpush3.bf16.msra.mxu0 %v7454_v3  ;;  %7075 = vmatpush3.bf16.msra.mxu1 %v7455_v52 }
 0xa64   :  { %7068 = vmatprep.subr.bf16.mxu0 %v7574_v15  ;;  %7076 = vmatprep.subr.bf16.mxu1 %v7574_v15 }
 0xa65   :  { %7070 = vmatprep.mubr.msk.bf16.mxu0 %vm7575_vm1, %v7574_v15  ;;  %7078 = vmatprep.mubr.msk.bf16.mxu1 %vm7575_vm1, %v7574_v15 }
 0xa67   :  { %7069 = vmatpush3.bf16.msra.mxu0 %v7456_v53  ;;  %7077 = vmatpush3.bf16.msra.mxu1 %v7457_v30 }
 0xa68   :  { %7082 = vmatprep.subr.bf16.mxu0 %v7574_v15  ;;  %7090 = vmatprep.subr.bf16.mxu1 %v7574_v15 }
 0xa6a   :  { %7071 = vmatmul.mubr.msk.bf16.vlgmr.msra.gmra.mrb[120].mxu0 %vm76_vm0, %v8333_v43  ;;  %7079 = vmatmul.mubr.msk.bf16.vlgmr.msra.gmra.mrb[120].mxu1 %vm76_vm0, %v8333_v43 }
 0xa6b   :  { %7083 = vmatpush3.bf16.msra.mxu0 %v7458_v54  ;;  %7091 = vmatpush3.bf16.msra.mxu1 %v7459_v18 }
 0xa6c   :  { %7084 = vmatprep.subr.bf16.mxu0 %v7574_v15  ;;  %7092 = vmatprep.subr.bf16.mxu1 %v7574_v15 }
 0xa6d   :  { %7086 = vmatprep.mubr.msk.bf16.mxu0 %vm7575_vm1, %v7574_v15  ;;  %7094 = vmatprep.mubr.msk.bf16.mxu1 %vm7575_vm1, %v7574_v15 }
 0xa6f   :  { %7085 = vmatpush3.bf16.msra.mxu0 %v7460_v55  ;;  %7093 = vmatpush3.bf16.msra.mxu1 %v7461_v19 }
 0xa70   :  { %7098 = vmatprep.subr.bf16.mxu0 %v7574_v15  ;;  %7106 = vmatprep.subr.bf16.mxu1 %v7574_v15 }
 0xa72   :  { %7087 = vmatmul.mubr.msk.bf16.vlgmr.msra.gmra.mrb[124].mxu0 %vm76_vm0, %v8333_v43  ;;  %7095 = vmatmul.mubr.msk.bf16.vlgmr.msra.gmra.mrb[124].mxu1 %vm76_vm0, %v8333_v43 }
 0xa73   :  { %7099 = vmatpush3.bf16.msra.mxu0 %v7454_v3  ;;  %7107 = vmatpush3.bf16.msra.mxu1 %v7455_v52 }
 0xa74   :  { %7100 = vmatprep.subr.bf16.mxu0 %v7574_v15  ;;  %7108 = vmatprep.subr.bf16.mxu1 %v7574_v15 }
 0xa75   :  { %7102 = vmatprep.mubr.msk.bf16.mxu0 %vm7575_vm1, %v7574_v15  ;;  %7110 = vmatprep.mubr.msk.bf16.mxu1 %vm7575_vm1, %v7574_v15 }
 0xa77   :  { %7101 = vmatpush3.bf16.msra.mxu0 %v7456_v53  ;;  %7109 = vmatpush3.bf16.msra.mxu1 %v7457_v30 }
 0xa78   :  { %7114 = vmatprep.subr.bf16.mxu0 %v7574_v15  ;;  %7122 = vmatprep.subr.bf16.mxu1 %v7574_v15 }
 0xa7a   :  { %7103 = vmatmul.mubr.msk.bf16.vlgmr.msra.gmra.mrb[128].mxu0 %vm76_vm0, %v8367_v57  ;;  %7111 = vmatmul.mubr.msk.bf16.vlgmr.msra.gmra.mrb[128].mxu1 %vm76_vm0, %v8367_v57 }
 0xa7b   :  { %7115 = vmatpush3.bf16.msra.mxu0 %v7458_v54  ;;  %7123 = vmatpush3.bf16.msra.mxu1 %v7459_v18  ;;  %v6137_v54 = vld [vmem:[%s8909_s7 + $0x4] ss:$0 sm:$0xff]  ;;  %v6138_v18 = vld [vmem:[%s8909_s7 + $0x5] ss:$0 sm:$0xff] }
 0xa7c   :  { %7116 = vmatprep.subr.bf16.mxu0 %v7574_v15  ;;  %7124 = vmatprep.subr.bf16.mxu1 %v7574_v15 }
 0xa7d   :  { %7118 = vmatprep.mubr.msk.bf16.mxu0 %vm7575_vm1, %v7574_v15  ;;  %7126 = vmatprep.mubr.msk.bf16.mxu1 %vm7575_vm1, %v7574_v15 }
 0xa7f   :  { %7117 = vmatpush3.bf16.msra.mxu0 %v7460_v55  ;;  %7125 = vmatpush3.bf16.msra.mxu1 %v7461_v19 }
 0xa80   :  { %7130 = vmatprep.subr.bf16.mxu0 %v7574_v15  ;;  %7138 = vmatprep.subr.bf16.mxu1 %v7574_v15 }
 0xa82   :  { %7119 = vmatmul.mubr.msk.bf16.vlgmr.msra.gmra.mrb[132].mxu0 %vm76_vm0, %v8367_v57  ;;  %7127 = vmatmul.mubr.msk.bf16.vlgmr.msra.gmra.mrb[132].mxu1 %vm76_vm0, %v8367_v57 }
 0xa83   :  { %7131 = vmatpush3.bf16.msra.mxu0 %v7462_v56  ;;  %7139 = vmatpush3.bf16.msra.mxu1 %v7463_v59 }
 0xa84   :  { %7132 = vmatprep.subr.bf16.mxu0 %v7574_v15  ;;  %7140 = vmatprep.subr.bf16.mxu1 %v7574_v15 }
 0xa85   :  { %7134 = vmatprep.mubr.msk.bf16.mxu0 %vm7575_vm1, %v7574_v15  ;;  %7142 = vmatprep.mubr.msk.bf16.mxu1 %vm7575_vm1, %v7574_v15 }
 0xa87   :  { %7133 = vmatpush3.bf16.msra.mxu0 %v7464_v60  ;;  %7141 = vmatpush3.bf16.msra.mxu1 %v7465_v61 }
 0xa88   :  { %7146 = vmatprep.subr.bf16.mxu0 %v7574_v15  ;;  %7154 = vmatprep.subr.bf16.mxu1 %v7574_v15 }
 0xa8a   :  { %7135 = vmatmul.mubr.msk.bf16.vlgmr.msra.gmra.mrb[136].mxu0 %vm76_vm0, %v8333_v43  ;;  %7143 = vmatmul.mubr.msk.bf16.vlgmr.msra.gmra.mrb[136].mxu1 %vm76_vm0, %v8333_v43 }
 0xa8b   :  { %7147 = vmatpush3.bf16.msra.mxu0 %v7466_v62  ;;  %7155 = vmatpush3.bf16.msra.mxu1 %v7467_v47 }
 0xa8c   :  { %7148 = vmatprep.subr.bf16.mxu0 %v7574_v15  ;;  %7156 = vmatprep.subr.bf16.mxu1 %v7574_v15 }
 0xa8d   :  { %7150 = vmatprep.mubr.msk.bf16.mxu0 %vm7575_vm1, %v7574_v15  ;;  %7158 = vmatprep.mubr.msk.bf16.mxu1 %vm7575_vm1, %v7574_v15 }
 0xa8f   :  { %7149 = vmatpush3.bf16.msra.mxu0 %v7468_v14  ;;  %7157 = vmatpush3.bf16.msra.mxu1 %v7469_v13 }
 0xa90   :  { %7162 = vmatprep.subr.bf16.mxu0 %v7574_v15  ;;  %7170 = vmatprep.subr.bf16.mxu1 %v7574_v15 }
 0xa92   :  { %7151 = vmatmul.mubr.msk.bf16.vlgmr.msra.gmra.mrb[140].mxu0 %vm76_vm0, %v8333_v43  ;;  %7159 = vmatmul.mubr.msk.bf16.vlgmr.msra.gmra.mrb[140].mxu1 %vm76_vm0, %v8333_v43 }
 0xa93   :  { %7163 = vmatpush3.bf16.msra.mxu0 %v7462_v56  ;;  %7171 = vmatpush3.bf16.msra.mxu1 %v7463_v59  ;;  %v6179_v56 = vld [vmem:[%s8943_s25 + $0x6] ss:$0 sm:$0xff]  ;;  %v6180_v59 = vld [vmem:[%s8943_s25 + $0x7] ss:$0 sm:$0xff] }
 0xa94   :  { %7164 = vmatprep.subr.bf16.mxu0 %v7574_v15  ;;  %7172 = vmatprep.subr.bf16.mxu1 %v7574_v15 }
 0xa95   :  { %7166 = vmatprep.mubr.msk.bf16.mxu0 %vm7575_vm1, %v7574_v15  ;;  %7174 = vmatprep.mubr.msk.bf16.mxu1 %vm7575_vm1, %v7574_v15 }
 0xa97   :  { %7165 = vmatpush3.bf16.msra.mxu0 %v7464_v60  ;;  %7173 = vmatpush3.bf16.msra.mxu1 %v7465_v61 }
 0xa98   :  { %7178 = vmatprep.subr.bf16.mxu0 %v7574_v15  ;;  %7186 = vmatprep.subr.bf16.mxu1 %v7574_v15 }
 0xa9a   :  { %7167 = vmatmul.mubr.msk.bf16.vlgmr.msra.gmra.mrb[144].mxu0 %vm76_vm0, %v8367_v57  ;;  %7175 = vmatmul.mubr.msk.bf16.vlgmr.msra.gmra.mrb[144].mxu1 %vm76_vm0, %v8367_v57 }
 0xa9b   :  { %7179 = vmatpush3.bf16.msra.mxu0 %v7466_v62  ;;  %7187 = vmatpush3.bf16.msra.mxu1 %v7467_v47 }
 0xa9c   :  { %7180 = vmatprep.subr.bf16.mxu0 %v7574_v15  ;;  %7188 = vmatprep.subr.bf16.mxu1 %v7574_v15 }
 0xa9d   :  { %7182 = vmatprep.mubr.msk.bf16.mxu0 %vm7575_vm1, %v7574_v15  ;;  %7190 = vmatprep.mubr.msk.bf16.mxu1 %vm7575_vm1, %v7574_v15 }
 0xa9f   :  { %7181 = vmatpush3.bf16.msra.mxu0 %v7468_v14  ;;  %7189 = vmatpush3.bf16.msra.mxu1 %v7469_v13 }
 0xaa0   :  { %7194 = vmatprep.subr.bf16.mxu0 %v7574_v15  ;;  %7200 = vmatprep.subr.bf16.mxu1 %v7574_v15 }
 0xaa2   :  { %7183 = vmatmul.mubr.msk.bf16.vlgmr.msra.gmra.mrb[148].mxu0 %vm76_vm0, %v8367_v57  ;;  %7191 = vmatmul.mubr.msk.bf16.vlgmr.msra.gmra.mrb[148].mxu1 %vm76_vm0, %v8367_v57 }
 0xaa3   :  { %7196 = vmatprep.mubr.msk.bf16.mxu0 %vm7575_vm1, %v7574_v15  ;;  %7202 = vmatprep.mubr.msk.bf16.mxu1 %vm7575_vm1, %v7574_v15 }
 0xb1d   :  { %v3102_v48 = vpop.f32.mrb[104].mxu0  ;;  %v3154_v23 = vpop.f32.mrb[104].mxu1 }
 0xb1e   :  { %v7008_v39 = vpop.f32.mrb[105].mxu0  ;;  %v7016_v58 = vpop.f32.mrb[105].mxu1  ;;  %v3103_v60 = vadd.f32 %v6137_v54, %v3102_v48  ;;  %v3155_v61 = vadd.f32 %v6138_v18, %v3154_v23  ;;  %v6139_v48 = vld [vmem:[%s8909_s7 + $0x6] ss:$0 sm:$0xff]  ;;  %v6140_v23 = vld [vmem:[%s8909_s7 + $0x7] ss:$0 sm:$0xff] }
 0xb1f   :  { %v3105_v22 = vpop.f32.mrb[106].mxu0  ;;  %v3157_v4 = vpop.f32.mrb[106].mxu1 }
 0xb20   :  { %v7009_v5 = vpop.f32.mrb[107].mxu0  ;;  %v7017_v63 = vpop.f32.mrb[107].mxu1 }
 0xb21   :  { %v4255_v5 = vpack.c.bf16 %v3103_v60, %v3103_v60  ;;  %v4256_v63 = vpack.c.bf16 %v3155_v61, %v3155_v61 }
 0xb25   :  { %v8535_v0 = vpop.f32.mrb[108].mxu0  ;;  %v8537_v7 = vpop.f32.mrb[108].mxu1 }
 0xb26   :  { %v7024_v8 = vpop.f32.mrb[109].mxu0  ;;  %v7032_v11 = vpop.f32.mrb[109].mxu1 }
 0xb27   :  { %v3209_v12 = vpop.f32.mrb[110].mxu0  ;;  %v3261_v16 = vpop.f32.mrb[110].mxu1 }
 0xb28   :  { %v7025_v1 = vpop.f32.mrb[111].mxu0  ;;  %v7033_v17 = vpop.f32.mrb[111].mxu1 }
 0xb2d   :  { %v8539_v20 = vpop.f32.mrb[112].mxu0  ;;  %v8541_v2 = vpop.f32.mrb[112].mxu1 }
 0xb2e   :  { %v7040_v21 = vpop.f32.mrb[113].mxu0  ;;  %v7048_v24 = vpop.f32.mrb[113].mxu1 }
 0xb2f   :  { %v3304_v25 = vpop.f32.mrb[114].mxu0  ;;  %v3344_v28 = vpop.f32.mrb[114].mxu1  ;;  %v3207_v21 = vadd.f32 %v6139_v48, %v8535_v0  ;;  %v3259_v24 = vadd.f32 %v6140_v23, %v8537_v7 }
 0xb30   :  { %v7041_v26 = vpop.f32.mrb[115].mxu0  ;;  %v7049_v27 = vpop.f32.mrb[115].mxu1 }
 0xb31   :  { %v4258_v7 = vpack.c.bf16 %v3259_v24, %v3259_v24 }
 0xb35   :  { %v8543_v29 = vpop.f32.mrb[116].mxu0  ;;  %v8545_v32 = vpop.f32.mrb[116].mxu1 }
 0xb36   :  { %v7056_v33 = vpop.f32.mrb[117].mxu0  ;;  %v7064_v34 = vpop.f32.mrb[117].mxu1 }
 0xb37   :  { %v3384_v35 = vpop.f32.mrb[118].mxu0  ;;  %v3424_v36 = vpop.f32.mrb[118].mxu1 }
 0xb38   :  { %v7057_v37 = vpop.f32.mrb[119].mxu0  ;;  %v7065_v10 = vpop.f32.mrb[119].mxu1  ;;  %v4257_v36 = vpack.c.bf16 %v3207_v21, %v3207_v21 }
 0xb3d   :  { %v3519_v42 = vpop.f32.mrb[120].mxu0  ;;  %v3571_v43 = vpop.f32.mrb[120].mxu1 }
 0xb3e   :  { %v3520_v44 = vadd.f32 %v6177_v38, %v3519_v42  ;;  %v3572_v45 = vadd.f32 %v6178_v41, %v3571_v43  ;;  %v7072_v46 = vpop.f32.mrb[121].mxu0  ;;  %v7080_v49 = vpop.f32.mrb[121].mxu1 }
 0xb3f   :  { %v3522_v50 = vpop.f32.mrb[122].mxu0  ;;  %v3574_v57 = vpop.f32.mrb[122].mxu1 }
 0xb40   :  { %v4263_v3 = vpack.c.bf16 %v3520_v44, %v3520_v44  ;;  %v4264_v52 = vpack.c.bf16 %v3572_v45, %v3572_v45  ;;  %v7073_v53 = vpop.f32.mrb[123].mxu0  ;;  %v7081_v30 = vpop.f32.mrb[123].mxu1 }
 0xb42   :  { %v4275_v55 = vsel %vm1386_vm2, %v4263_v3, 0  ;;  %v4321_v19 = vsel %vm1386_vm2, %v4264_v52, 0 }
 0xb43   :  { %7195 = vmatpush3.bf16.xpose.msra.mxu0 %v4275_v55  ;;  %7201 = vmatpush3.bf16.xpose.msra.mxu1 %v4321_v19 }
 0xb44   :  { %7206 = vmatprep.subr.bf16.mxu0 %v7574_v15  ;;  %7212 = vmatprep.subr.bf16.mxu1 %v7574_v15 }
 0xb45   :  { %v3623_v62 = vpop.f32.mrb[124].mxu0  ;;  %v3675_v47 = vpop.f32.mrb[124].mxu1 }
 0xb46   :  { %v3624_v14 = vadd.f32 %v6179_v56, %v3623_v62  ;;  %v3676_v13 = vadd.f32 %v6180_v59, %v3675_v47  ;;  %v7088_v39 = vpop.f32.mrb[125].mxu0  ;;  %v7096_v58 = vpop.f32.mrb[125].mxu1  ;;  %v3382_v62 = vadd.f32 %v6139_v48, %v8543_v29  ;;  %v3422_v47 = vadd.f32 %v6140_v23, %v8545_v32 }
 0xb47   :  { %v3626_v22 = vpop.f32.mrb[126].mxu0  ;;  %v3678_v4 = vpop.f32.mrb[126].mxu1 }
 0xb48   :  { %v4265_v8 = vpack.c.bf16 %v3624_v14, %v3624_v14  ;;  %v4266_v11 = vpack.c.bf16 %v3676_v13, %v3676_v13  ;;  %v7089_v12 = vpop.f32.mrb[127].mxu0  ;;  %v7097_v16 = vpop.f32.mrb[127].mxu1  ;;  %v4262_v32 = vpack.c.bf16 %v3422_v47, %v3422_v47 }
 0xb4a   :  { %v4367_v1 = vsel %vm1386_vm2, %v4265_v8, 0  ;;  %v4413_v17 = vsel %vm1386_vm2, %v4266_v11, 0  ;;  %7197 = vmatmul.mubr.msk.bf16.vlgmr.msra.gmra.mrb[152].mxu0 %vm1386_vm2, %v4255_v5  ;;  %7203 = vmatmul.mubr.msk.bf16.vlgmr.msra.gmra.mrb[152].mxu1 %vm1386_vm2, %v4256_v63  ;;  %v4261_v63 = vpack.c.bf16 %v3382_v62, %v3382_v62 }
 0xb4b   :  { %7207 = vmatpush3.bf16.xpose.msra.mxu0 %v4367_v1  ;;  %7213 = vmatpush3.bf16.xpose.msra.mxu1 %v4413_v17 }
 0xb4c   :  { %7208 = vmatprep.mubr.msk.bf16.mxu0 %vm7575_vm1, %v7574_v15  ;;  %7214 = vmatprep.mubr.msk.bf16.mxu1 %vm7575_vm1, %v7574_v15 }
 0xb4d   :  { %v3715_v25 = vpop.f32.mrb[128].mxu0  ;;  %v3755_v28 = vpop.f32.mrb[128].mxu1  ;;  %7218 = vmatprep.subr.bf16.mxu0 %v7574_v15  ;;  %7224 = vmatprep.subr.bf16.mxu1 %v7574_v15 }
 0xb4e   :  { %v3716_v26 = vadd.f32 %v6177_v38, %v3715_v25  ;;  %v3756_v27 = vadd.f32 %v6178_v41, %v3755_v28  ;;  %v7104_v33 = vpop.f32.mrb[129].mxu0  ;;  %v7112_v34 = vpop.f32.mrb[129].mxu1  ;;  %v3302_v38 = vadd.f32 %v6137_v54, %v8539_v20  ;;  %v3342_v41 = vadd.f32 %v6138_v18, %v8541_v2 }
 0xb4f   :  { %v3718_v35 = vpop.f32.mrb[130].mxu0  ;;  %v3758_v0 = vpop.f32.mrb[130].mxu1 }
 0xb50   :  { %v4267_v37 = vpack.c.bf16 %v3716_v26, %v3716_v26  ;;  %v4268_v10 = vpack.c.bf16 %v3756_v27, %v3756_v27  ;;  %v7105_v42 = vpop.f32.mrb[131].mxu0  ;;  %v7113_v43 = vpop.f32.mrb[131].mxu1  ;;  %v4259_v30 = vpack.c.bf16 %v3302_v38, %v3302_v38  ;;  %v4260_v2 = vpack.c.bf16 %v3342_v41, %v3342_v41 }
 0xb52   :  { %v4459_v44 = vsel %vm1386_vm2, %v4267_v37, 0  ;;  %v4505_v45 = vsel %vm1386_vm2, %v4268_v10, 0  ;;  %7209 = vmatmul.mubr.msk.bf16.vlgmr.msra.gmra.mrb[156].mxu0 %vm1386_vm2, %v4257_v36  ;;  %7215 = vmatmul.mubr.msk.bf16.vlgmr.msra.gmra.mrb[156].mxu1 %vm1386_vm2, %v4258_v7 }
 0xb53   :  { %7219 = vmatpush3.bf16.xpose.msra.mxu0 %v4459_v44  ;;  %7225 = vmatpush3.bf16.xpose.msra.mxu1 %v4505_v45 }
 0xb54   :  { %7220 = vmatprep.mubr.msk.bf16.mxu0 %vm7575_vm1, %v7574_v15  ;;  %7226 = vmatprep.mubr.msk.bf16.mxu1 %vm7575_vm1, %v7574_v15 }
 0xb55   :  { %v3795_v46 = vpop.f32.mrb[132].mxu0  ;;  %v3835_v49 = vpop.f32.mrb[132].mxu1  ;;  %7230 = vmatprep.subr.bf16.mxu0 %v7574_v15  ;;  %7236 = vmatprep.subr.bf16.mxu1 %v7574_v15 }
 0xb56   :  { %v3796_v50 = vadd.f32 %v6179_v56, %v3795_v46  ;;  %v3836_v57 = vadd.f32 %v6180_v59, %v3835_v49  ;;  %v7120_v3 = vpop.f32.mrb[133].mxu0  ;;  %v7128_v52 = vpop.f32.mrb[133].mxu1  ;;  %v6217_v56 = vld [vmem:[%s8910_s9 + $0x4] ss:$0 sm:$0xff]  ;;  %v6218_v59 = vld [vmem:[%s8910_s9 + $0x5] ss:$0 sm:$0xff] }
 0xb57   :  { %v3798_v53 = vpop.f32.mrb[134].mxu0  ;;  %v3838_v20 = vpop.f32.mrb[134].mxu1 }
 0xb58   :  { %v4269_v54 = vpack.c.bf16 %v3796_v50, %v3796_v50  ;;  %v4270_v18 = vpack.c.bf16 %v3836_v57, %v3836_v57  ;;  %v7121_v55 = vpop.f32.mrb[135].mxu0  ;;  %v7129_v19 = vpop.f32.mrb[135].mxu1 }
 0xb5a   :  { %v4551_v60 = vsel %vm1386_vm2, %v4269_v54, 0  ;;  %v4597_v61 = vsel %vm1386_vm2, %v4270_v18, 0  ;;  %7221 = vmatmul.mubr.msk.bf16.vlgmr.msra.gmra.mrb[160].mxu0 %vm1386_vm2, %v4259_v30  ;;  %7227 = vmatmul.mubr.msk.bf16.vlgmr.msra.gmra.mrb[160].mxu1 %vm1386_vm2, %v4260_v2 }
 0xb5b   :  { %7231 = vmatpush3.bf16.xpose.msra.mxu0 %v4551_v60  ;;  %7237 = vmatpush3.bf16.xpose.msra.mxu1 %v4597_v61 }
 0xb5c   :  { %7232 = vmatprep.mubr.msk.bf16.mxu0 %vm7575_vm1, %v7574_v15  ;;  %7238 = vmatprep.mubr.msk.bf16.mxu1 %vm7575_vm1, %v7574_v15 }
 0xb5d   :  { %v3933_v14 = vpop.f32.mrb[136].mxu0  ;;  %v3985_v13 = vpop.f32.mrb[136].mxu1  ;;  %7242 = vmatprep.subr.bf16.mxu0 %v7574_v15  ;;  %7248 = vmatprep.subr.bf16.mxu1 %v7574_v15 }
 0xb5e   :  { %v3934_v39 = vadd.f32 %v6217_v56, %v3933_v14  ;;  %v3986_v58 = vadd.f32 %v6218_v59, %v3985_v13  ;;  %v7136_v22 = vpop.f32.mrb[137].mxu0  ;;  %v7144_v4 = vpop.f32.mrb[137].mxu1 }
 0xb5f   :  { %v3936_v5 = vpop.f32.mrb[138].mxu0  ;;  %v3988_v29 = vpop.f32.mrb[138].mxu1 }
 0xb60   :  { %v4751_v8 = vpack.c.bf16 %v3934_v39, %v3934_v39  ;;  %v4752_v11 = vpack.c.bf16 %v3986_v58, %v3986_v58  ;;  %v7137_v12 = vpop.f32.mrb[139].mxu0  ;;  %v7145_v16 = vpop.f32.mrb[139].mxu1 }
 0xb62   :  { %v4763_v48 = vsel %vm1890_vm3, %v4751_v8, 0  ;;  %v4809_v23 = vsel %vm1890_vm3, %v4752_v11, 0  ;;  %7233 = vmatmul.mubr.msk.bf16.vlgmr.msra.gmra.mrb[164].mxu0 %vm1386_vm2, %v4261_v63  ;;  %7239 = vmatmul.mubr.msk.bf16.vlgmr.msra.gmra.mrb[164].mxu1 %vm1386_vm2, %v4262_v32 }
 0xb63   :  { %7243 = vmatpush3.bf16.msra.mxu0 %v4763_v48  ;;  %7249 = vmatpush3.bf16.msra.mxu1 %v4809_v23 }
 0xb64   :  { %7244 = vmatprep.mubr.msk.bf16.mxu0 %vm7575_vm1, %v7574_v15  ;;  %7250 = vmatprep.mubr.msk.bf16.mxu1 %vm7575_vm1, %v7574_v15 }
 0xb65   :  { %v8625_v1 = vpop.f32.mrb[140].mxu0  ;;  %v8627_v17 = vpop.f32.mrb[140].mxu1  ;;  %7254 = vmatprep.subr.bf16.mxu0 %v7574_v15  ;;  %7260 = vmatprep.subr.bf16.mxu1 %v7574_v15 }
 0xb66   :  { %v7152_v21 = vpop.f32.mrb[141].mxu0  ;;  %v7160_v24 = vpop.f32.mrb[141].mxu1 }
 0xb67   :  { %v4040_v25 = vpop.f32.mrb[142].mxu0  ;;  %v4092_v28 = vpop.f32.mrb[142].mxu1 }
 0xb68   :  { %v7153_v26 = vpop.f32.mrb[143].mxu0  ;;  %v7161_v27 = vpop.f32.mrb[143].mxu1 }
 0xb6d   :  { %v4129_v33 = vpop.f32.mrb[144].mxu0  ;;  %v4169_v34 = vpop.f32.mrb[144].mxu1 }
 0xb6e   :  { %v8631_v35 = vadd.f32 %v6217_v56, %v4129_v33  ;;  %v8633_v0 = vadd.f32 %v6218_v59, %v4169_v34  ;;  %v7168_v36 = vpop.f32.mrb[145].mxu0  ;;  %v7176_v7 = vpop.f32.mrb[145].mxu1 }
 0xb6f   :  { %v4132_v37 = vpop.f32.mrb[146].mxu0  ;;  %v4172_v10 = vpop.f32.mrb[146].mxu1 }
 0xb70   :  { %v7169_v42 = vpop.f32.mrb[147].mxu0  ;;  %v7177_v43 = vpop.f32.mrb[147].mxu1 }
 0xb75   :  { %v8635_v44 = vpop.f32.mrb[148].mxu0  ;;  %v8637_v45 = vpop.f32.mrb[148].mxu1 }
 0xb76   :  { %v7184_v38 = vpop.f32.mrb[149].mxu0  ;;  %v7192_v41 = vpop.f32.mrb[149].mxu1 }
 0xb77   :  { %v4212_v46 = vpop.f32.mrb[150].mxu0  ;;  %v4252_v49 = vpop.f32.mrb[150].mxu1 }
 0xb78   :  { %v7185_v50 = vpop.f32.mrb[151].mxu0  ;;  %v7193_v57 = vpop.f32.mrb[151].mxu1 }
 0xc1d   :  { %v4311_v3 = vpop.f32.mrb[152].mxu0  ;;  %v4357_v52 = vpop.f32.mrb[152].mxu1 }
 0xc1e   :  { %v4639_v53 = vmul.f32 0.35355338, %v4311_v3  ;;  %v4640_v20 = vmul.f32 0.35355338, %v4357_v52  ;;  %v7198_v30 = vpop.f32.mrb[153].mxu0  ;;  %v7204_v2 = vpop.f32.mrb[153].mxu1 }
 0xc1f   :  { %v4314_v54 = vpop.f32.mrb[154].mxu0  ;;  %v4360_v18 = vpop.f32.mrb[154].mxu1 }
 0xc20   :  { %v7199_v55 = vpop.f32.mrb[155].mxu0  ;;  %v7205_v19 = vpop.f32.mrb[155].mxu1  ;;  %v4648_v60 = vadd.f32 %v4640_v20, %v8057_v9  ;;  %v4647_v61 = vadd.f32 %v4639_v53, %v8057_v9 }
 0xc22   :  { %v4658_v56 = vsel %vm1386_vm2, %v4648_v60, -inf  ;;  %v4655_v59 = vsel %vm1386_vm2, %v4647_v61, -inf }
 0xc23   :  { %4659 = vmax.xlane.f32.xlu1 %v4658_v56  ;;  %4656 = vmax.xlane.f32.xlu0 %v4655_v59 }
 0xc25   :  { %v4403_v62 = vpop.f32.mrb[156].mxu0  ;;  %v4449_v47 = vpop.f32.mrb[156].mxu1 }
 0xc26   :  { %v4641_v14 = vmul.f32 0.35355338, %v4403_v62  ;;  %v4642_v13 = vmul.f32 0.35355338, %v4449_v47  ;;  %v7210_v39 = vpop.f32.mrb[157].mxu0  ;;  %v7216_v58 = vpop.f32.mrb[157].mxu1 }
 0xc27   :  { %v4406_v22 = vpop.f32.mrb[158].mxu0  ;;  %v4452_v4 = vpop.f32.mrb[158].mxu1 }
 0xc28   :  { %v7211_v5 = vpop.f32.mrb[159].mxu0  ;;  %v7217_v29 = vpop.f32.mrb[159].mxu1  ;;  %v4650_v63 = vadd.f32 %v4642_v13, %v8057_v9  ;;  %v4649_v32 = vadd.f32 %v4641_v14, %v8057_v9 }
 0xc2a   :  { %v4664_v8 = vsel %vm1386_vm2, %v4650_v63, -inf  ;;  %v4661_v11 = vsel %vm1386_vm2, %v4649_v32, -inf }
 0xc2b   :  { %4665 = vmax.xlane.f32.xlu1 %v4664_v8  ;;  %4662 = vmax.xlane.f32.xlu0 %v4661_v11 }
 0xc2d   :  { %v4495_v12 = vpop.f32.mrb[160].mxu0  ;;  %v4541_v16 = vpop.f32.mrb[160].mxu1 }
 0xc2e   :  { %v4643_v48 = vmul.f32 0.35355338, %v4495_v12  ;;  %v4644_v23 = vmul.f32 0.35355338, %v4541_v16  ;;  %v7222_v21 = vpop.f32.mrb[161].mxu0  ;;  %v7228_v24 = vpop.f32.mrb[161].mxu1 }
 0xc2f   :  { %v4498_v25 = vpop.f32.mrb[162].mxu0  ;;  %v4544_v28 = vpop.f32.mrb[162].mxu1 }
 0xc30   :  { %v7223_v26 = vpop.f32.mrb[163].mxu0  ;;  %v7229_v27 = vpop.f32.mrb[163].mxu1  ;;  %v4652_v33 = vadd.f32 %v4644_v23, %v8070_v6  ;;  %v4651_v9 = vadd.f32 %v4643_v48, %v8070_v6 }
 0xc32   :  { %v4670_v34 = vsel %vm1386_vm2, %v4652_v33, -inf  ;;  %v4667_v36 = vsel %vm1386_vm2, %v4651_v9, -inf }
 0xc33   :  { %4671 = vmax.xlane.f32.xlu1 %v4670_v34  ;;  %4668 = vmax.xlane.f32.xlu0 %v4667_v36 }
 0xc35   :  { %v4587_v7 = vpop.f32.mrb[164].mxu0  ;;  %v4633_v37 = vpop.f32.mrb[164].mxu1 }
 0xc36   :  { %v4645_v10 = vmul.f32 0.35355338, %v4587_v7  ;;  %v4646_v42 = vmul.f32 0.35355338, %v4633_v37  ;;  %v7234_v43 = vpop.f32.mrb[165].mxu0  ;;  %v7240_v38 = vpop.f32.mrb[165].mxu1 }
 0xc37   :  { %v4590_v41 = vpop.f32.mrb[166].mxu0  ;;  %v4636_v46 = vpop.f32.mrb[166].mxu1 }
 0xc38   :  { %v7235_v49 = vpop.f32.mrb[167].mxu0  ;;  %v7241_v50 = vpop.f32.mrb[167].mxu1  ;;  %v4654_v57 = vadd.f32 %v4646_v42, %v8070_v6  ;;  %v4653_v3 = vadd.f32 %v4645_v10, %v8070_v6  ;;  %v6220_v10 = vld [vmem:[%s8910_s9 + $0x7] ss:$0 sm:$0xff]  ;;  %v6219_v42 = vld [vmem:[%s8910_s9 + $0x6] ss:$0 sm:$0xff] }
 0xc39   :  { %v4090_v43 = vadd.f32 %v6220_v10, %v8627_v17  ;;  %v4038_v41 = vadd.f32 %v6219_v42, %v8625_v1 }
 0xc3a   :  { %v4676_v52 = vsel %vm1386_vm2, %v4654_v57, -inf  ;;  %v4673_v53 = vsel %vm1386_vm2, %v4653_v3, -inf }
 0xc3b   :  { %4677 = vmax.xlane.f32.xlu1 %v4676_v52  ;;  %4674 = vmax.xlane.f32.xlu0 %v4673_v53  ;;  %v4753_v52 = vpack.c.bf16 %v4038_v41, %v4038_v41 }
 0xc3d   :  { %v4855_v17 = vsel %vm1890_vm3, %v4753_v52, 0 }
 0xcb0   :  { %v4660_v20 = vpop.xlane.xlu1 %4659  ;;  %v4657_v30 = vpop.xlane.xlu0 %4656 }
 0xcb1   :  { %v4680_v2 = vsub.f32 %v4648_v60, %v4660_v20  ;;  %v4679_v54 = vsub.f32 %v4647_v61, %v4657_v30 }
 0xcb3   :  { %v4689_v18 = vmul.f32 1.442695, %v4680_v2  ;;  %v4687_v55 = vmul.f32 1.442695, %v4679_v54 }
 0xcb5   :  { %7530 = vpow2.f32 %v4689_v18 }
 0xcb6   :  { %7532 = vpow2.f32 %v4687_v55 }
 0xcb8   :  { %v4666_v19 = vpop.xlane.xlu1 %4665  ;;  %v4663_v56 = vpop.xlane.xlu0 %4662 }
 0xcb9   :  { %v4682_v59 = vsub.f32 %v4650_v63, %v4666_v19  ;;  %v4681_v62 = vsub.f32 %v4649_v32, %v4663_v56  ;;  %v4756_v19 = vpack.c.bf16 %v8633_v0, %v8633_v0  ;;  %v4210_v0 = vadd.f32 %v6219_v42, %v8635_v44 }
 0xcbb   :  { %v4693_v47 = vmul.f32 1.442695, %v4682_v59  ;;  %v4691_v6 = vmul.f32 1.442695, %v4681_v62  ;;  %v4755_v59 = vpack.c.bf16 %v8631_v35, %v8631_v35 }
 0xcbd   :  { %7534 = vpow2.f32 %v4693_v47 }
 0xcbe   :  { %7536 = vpow2.f32 %v4691_v6 }
 0xcbf   :  { %v7531_v14 = vpop.eup %7530 }
 0xcc0   :  { %v7533_v13 = vpop.eup %7532  ;;  %v4672_v39 = vpop.xlane.xlu1 %4671  ;;  %v4706_v22 = vsel %vm1386_vm2, %v7531_v14, 0.0 }
 0xcc1   :  { %v4669_v58 = vpop.xlane.xlu0 %4668  ;;  %v4684_v60 = vsub.f32 %v4652_v33, %v4672_v39  ;;  %4707 = vadd.xlane.f32.xlu1 %v4706_v22  ;;  %v4703_v4 = vsel %vm1386_vm2, %v7533_v13, 0.0 }
 0xcc2   :  { %v4683_v61 = vsub.f32 %v4651_v9, %v4669_v58  ;;  %4704 = vadd.xlane.f32.xlu0 %v4703_v4  ;;  %v4947_v58 = vsel %vm1890_vm3, %v4755_v59, 0 }
 0xcc3   :  { %v4697_v5 = vmul.f32 1.442695, %v4684_v60 }
 0xcc4   :  { %v4695_v29 = vmul.f32 1.442695, %v4683_v61  ;;  %v4757_v61 = vpack.c.bf16 %v4210_v0, %v4210_v0 }
 0xcc5   :  { %7538 = vpow2.f32 %v4697_v5 }
 0xcc6   :  { %7540 = vpow2.f32 %v4695_v29 }
 0xcc7   :  { %v7535_v63 = vpop.eup %7534 }
 0xcc8   :  { %v8657_v32 = vpop.eup %7536  ;;  %v4678_v8 = vpop.xlane.xlu1 %4677  ;;  %v4712_v12 = vsel %vm1386_vm2, %v7535_v63, 0.0 }
 0xcc9   :  { %v4675_v11 = vpop.xlane.xlu0 %4674  ;;  %v4686_v16 = vsub.f32 %v4654_v57, %v4678_v8  ;;  %4713 = vadd.xlane.f32.xlu1 %v4712_v12  ;;  %v4709_v23 = vsel %vm1386_vm2, %v8657_v32, 0.0  ;;  %v4754_v57 = vpack.c.bf16 %v4090_v43, %v4090_v43 }
 0xcca   :  { %v4685_v48 = vsub.f32 %v4653_v3, %v4675_v11  ;;  %4710 = vadd.xlane.f32.xlu0 %v4709_v23  ;;  %v6254_v11 = vld [vmem:[%s8912_s10 + $0x14] sm:$0xf] }
 0xccb   :  { %v4701_v21 = vmul.f32 1.442695, %v4686_v16  ;;  %v4901_v2 = vsel %vm1890_vm3, %v4754_v57, 0 }
 0xccc   :  { %v4699_v24 = vmul.f32 1.442695, %v4685_v48  ;;  %v6253_v48 = vld [vmem:[%s8912_s10 + $0x10] sm:$0xf] }
 0xccd   :  { %7542 = vpow2.f32 %v4701_v21 }
 0xcce   :  { %7544 = vpow2.f32 %v4699_v24  ;;  %v5190_v24 = vsel %vm1890_vm3, %v6254_v11, 0 }
 0xccf   :  { %v8662_v25 = vpop.eup %7538 }
 0xcd0   :  { %v8664_v28 = vpop.eup %7540  ;;  %v4718_v26 = vsel %vm1386_vm2, %v8662_v25, 0.0 }
 0xcd1   :  { %4719 = vadd.xlane.f32.xlu1 %v4718_v26  ;;  %v4715_v27 = vsel %vm1386_vm2, %v8664_v28, 0.0  ;;  %v6256_v26 = vld [vmem:[%s8912_s10 + $0x1c] sm:$0xf] }
 0xcd2   :  { %4716 = vadd.xlane.f32.xlu0 %v4715_v27  ;;  %v6255_v27 = vld [vmem:[%s8912_s10 + $0x18] sm:$0xf] }
 0xcd3   :  { %v5236_v43 = vsel %vm1890_vm3, %v6255_v27, 0 }
 0xcd7   :  { %v8670_v33 = vpop.eup %7542 }
 0xcd8   :  { %v8672_v9 = vpop.eup %7544  ;;  %v4724_v34 = vsel %vm1386_vm2, %v8670_v33, 0.0 }
 0xcd9   :  { %4725 = vadd.xlane.f32.xlu1 %v4724_v34  ;;  %v4721_v36 = vsel %vm1386_vm2, %v8672_v9, 0.0 }
 0xcda   :  { %4722 = vadd.xlane.f32.xlu0 %v4721_v36 }
 0xd4e   :  { %v4708_v7 = vpop.xlane.xlu1 %4707 }
 0xd4f   :  { %7546 = vrcp.f32 %v4708_v7  ;;  %v4705_v37 = vpop.xlane.xlu0 %4704  ;;  %v5282_v7 = vsel %vm1890_vm3, %v6256_v26, 0 }
 0xd50   :  { %7548 = vrcp.f32 %v4705_v37 }
 0xd56   :  { %v4714_v38 = vpop.xlane.xlu1 %4713 }
 0xd57   :  { %7550 = vrcp.f32 %v4714_v38  ;;  %v4711_v46 = vpop.xlane.xlu0 %4710 }
 0xd58   :  { %7552 = vrcp.f32 %v4711_v46 }
 0xd59   :  { %v7547_v49 = vpop.eup %7546 }
 0xd5a   :  { %v7549_v50 = vpop.eup %7548  ;;  %v4736_v3 = vmul.f32 %v7547_v49, %v7531_v14  ;;  %v4993_v14 = vsel %vm1890_vm3, %v4756_v19, 0 }
 0xd5b   :  { %v4735_v53 = vmul.f32 %v7549_v50, %v7533_v13  ;;  %v4250_v13 = vadd.f32 %v6220_v10, %v8637_v45 }
 0xd5c   :  { %v4744_v20 = vpack.c.bf16 %v4736_v3, %v4736_v3 }
 0xd5d   :  { %v4743_v30 = vpack.c.bf16 %v4735_v53, %v4735_v53  ;;  %v4758_v60 = vpack.c.bf16 %v4250_v13, %v4250_v13 }
 0xd5e   :  { %7251 = vmatmul.mubr.msk.bf16.vlgmr.msra.gmra.mrb[168].mxu1 %vm1386_vm2, %v4744_v20  ;;  %v4720_v54 = vpop.xlane.xlu1 %4719 }
 0xd5f   :  { %7261 = vmatpush3.bf16.msra.mxu1 %v4901_v2  ;;  %7554 = vrcp.f32 %v4720_v54  ;;  %7245 = vmatmul.mubr.msk.bf16.vlgmr.msra.gmra.mrb[168].mxu0 %vm1386_vm2, %v4743_v30  ;;  %v4717_v1 = vpop.xlane.xlu0 %4716 }
 0xd60   :  { %7255 = vmatpush3.bf16.msra.mxu0 %v4855_v17  ;;  %7556 = vrcp.f32 %v4717_v1  ;;  %7256 = vmatprep.mubr.msk.bf16.mxu0 %vm7575_vm1, %v7574_v15 }
 0xd61   :  { %v7551_v18 = vpop.eup %7550  ;;  %7262 = vmatprep.mubr.msk.bf16.mxu1 %vm7575_vm1, %v7574_v15  ;;  %7266 = vmatprep.subr.bf16.mxu0 %v7574_v15 }
 0xd62   :  { %v7553_v55 = vpop.eup %7552  ;;  %v4738_v56 = vmul.f32 %v7551_v18, %v7535_v63  ;;  %7272 = vmatprep.subr.bf16.mxu1 %v7574_v15  ;;  %v5085_v63 = vsel %vm1890_vm3, %v4758_v60, 0 }
 0xd63   :  { %v4737_v62 = vmul.f32 %v7553_v55, %v8657_v32  ;;  %v5039_v32 = vsel %vm1890_vm3, %v4757_v61, 0 }
 0xd64   :  { %v4746_v47 = vpack.c.bf16 %v4738_v56, %v4738_v56 }
 0xd65   :  { %v4745_v6 = vpack.c.bf16 %v4737_v62, %v4737_v62 }
 0xd66   :  { %7263 = vmatmul.mubr.msk.bf16.vlgmr.msra.gmra.mrb[172].mxu1 %vm1386_vm2, %v4746_v47  ;;  %v4726_v39 = vpop.xlane.xlu1 %4725 }
 0xd67   :  { %7273 = vmatpush3.bf16.msra.mxu1 %v4993_v14  ;;  %7558 = vrcp.f32 %v4726_v39  ;;  %7257 = vmatmul.mubr.msk.bf16.vlgmr.msra.gmra.mrb[172].mxu0 %vm1386_vm2, %v4745_v6  ;;  %v4723_v35 = vpop.xlane.xlu0 %4722 }
 0xd68   :  { %7267 = vmatpush3.bf16.msra.mxu0 %v4947_v58  ;;  %7560 = vrcp.f32 %v4723_v35  ;;  %7268 = vmatprep.mubr.msk.bf16.mxu0 %vm7575_vm1, %v7574_v15 }
 0xd69   :  { %v7555_v22 = vpop.eup %7554  ;;  %7274 = vmatprep.mubr.msk.bf16.mxu1 %vm7575_vm1, %v7574_v15  ;;  %7278 = vmatprep.subr.bf16.mxu0 %v7574_v15 }
 0xd6a   :  { %v7557_v45 = vpop.eup %7556  ;;  %v4740_v44 = vmul.f32 %v7555_v22, %v8662_v25  ;;  %7284 = vmatprep.subr.bf16.mxu1 %v7574_v15 }
 0xd6b   :  { %v4739_v4 = vmul.f32 %v7557_v45, %v8664_v28  ;;  %v5144_v28 = vsel %vm1890_vm3, %v6253_v48, 0 }
 0xd6c   :  { %v4748_v5 = vpack.c.bf16 %v4740_v44, %v4740_v44 }
 0xd6d   :  { %v4747_v29 = vpack.c.bf16 %v4739_v4, %v4739_v4 }
 0xd6e   :  { %7275 = vmatmul.mubr.msk.bf16.vlgmr.msra.gmra.mrb[176].mxu1 %vm1386_vm2, %v4748_v5 }
 0xd6f   :  { %7269 = vmatmul.mubr.msk.bf16.vlgmr.msra.gmra.mrb[176].mxu0 %vm1386_vm2, %v4747_v29  ;;  %7285 = vmatpush3.bf16.msra.mxu1 %v5085_v63 }
 0xd70   :  { %7279 = vmatpush3.bf16.msra.mxu0 %v5039_v32  ;;  %7280 = vmatprep.mubr.msk.bf16.mxu0 %vm7575_vm1, %v7574_v15 }
 0xd71   :  { %v7559_v8 = vpop.eup %7558  ;;  %7286 = vmatprep.mubr.msk.bf16.mxu1 %vm7575_vm1, %v7574_v15  ;;  %7290 = vmatprep.subr.bf16.mxu0 %v7574_v15 }
 0xd72   :  { %v7561_v12 = vpop.eup %7560  ;;  %v4742_v16 = vmul.f32 %v7559_v8, %v8670_v33  ;;  %7296 = vmatprep.subr.bf16.mxu1 %v7574_v15 }
 0xd73   :  { %v4741_v23 = vmul.f32 %v7561_v12, %v8672_v9 }
 0xd74   :  { %v4750_v21 = vpack.c.bf16 %v4742_v16, %v4742_v16 }
 0xd75   :  { %v4749_v25 = vpack.c.bf16 %v4741_v23, %v4741_v23 }
 0xd76   :  { %7287 = vmatmul.mubr.msk.bf16.vlgmr.msra.gmra.mrb[180].mxu1 %vm1386_vm2, %v4750_v21 }
 0xd77   :  { %7281 = vmatmul.mubr.msk.bf16.vlgmr.msra.gmra.mrb[180].mxu0 %vm1386_vm2, %v4749_v25  ;;  %7297 = vmatpush3.bf16.msra.mxu1 %v5190_v24 }
 0xd78   :  { %7291 = vmatpush3.bf16.msra.mxu0 %v5144_v28  ;;  %7292 = vmatprep.mubr.msk.bf16.mxu0 %vm7575_vm1, %v7574_v15 }
 0xd79   :  { %7298 = vmatprep.mubr.msk.bf16.mxu1 %vm7575_vm1, %v7574_v15  ;;  %7302 = vmatprep.subr.bf16.mxu0 %v7574_v15 }
 0xd7a   :  { %7308 = vmatprep.subr.bf16.mxu1 %v7574_v15 }
 0xe31   :  { %v4845_v33 = vpop.f32.mrb[168].mxu1 }
 0xe32   :  { %v4799_v9 = vpop.f32.mrb[168].mxu0  ;;  %v5128_v34 = vpack.c.bf16 %v4845_v33, %v4845_v33  ;;  %v7252_v36 = vpop.f32.mrb[169].mxu1 }
 0xe33   :  { %v5127_v37 = vpack.c.bf16 %v4799_v9, %v4799_v9  ;;  %v7246_v10 = vpop.f32.mrb[169].mxu0  ;;  %v4848_v42 = vpop.f32.mrb[170].mxu1 }
 0xe34   :  { %v4802_v38 = vpop.f32.mrb[170].mxu0  ;;  %v7253_v41 = vpop.f32.mrb[171].mxu1  ;;  %7299 = vmatmul.mubr.msk.bf16.vlgmr.msra.gmra.mrb[184].mxu1 %vm1386_vm2, %v5128_v34 }
 0xe35   :  { %v7247_v46 = vpop.f32.mrb[171].mxu0  ;;  %7293 = vmatmul.mubr.msk.bf16.vlgmr.msra.gmra.mrb[184].mxu0 %vm1386_vm2, %v5127_v37  ;;  %7309 = vmatpush3.bf16.msra.mxu1 %v5282_v7 }
 0xe36   :  { %7303 = vmatpush3.bf16.msra.mxu0 %v5236_v43  ;;  %7304 = vmatprep.mubr.msk.bf16.mxu0 %vm7575_vm1, %v7574_v15 }
 0xe37   :  { %7310 = vmatprep.mubr.msk.bf16.mxu1 %vm7575_vm1, %v7574_v15  ;;  %7314 = vmatprep.subr.bf16.mxu0 %v7574_v15 }
 0xe38   :  { %7320 = vmatprep.subr.bf16.mxu1 %v7574_v15 }
 0xe39   :  { %v4937_v49 = vpop.f32.mrb[172].mxu1 }
 0xe3a   :  { %v4891_v50 = vpop.f32.mrb[172].mxu0  ;;  %v5130_v57 = vpack.c.bf16 %v4937_v49, %v4937_v49  ;;  %v7264_v3 = vpop.f32.mrb[173].mxu1 }
 0xe3b   :  { %v5129_v52 = vpack.c.bf16 %v4891_v50, %v4891_v50  ;;  %v7258_v53 = vpop.f32.mrb[173].mxu0  ;;  %v4940_v20 = vpop.f32.mrb[174].mxu1 }
 0xe3c   :  { %v4894_v30 = vpop.f32.mrb[174].mxu0  ;;  %v7265_v2 = vpop.f32.mrb[175].mxu1  ;;  %7311 = vmatmul.mubr.msk.bf16.vlgmr.msra.gmra.mrb[188].mxu1 %vm1386_vm2, %v5130_v57 }
 0xe3d   :  { %v7259_v54 = vpop.f32.mrb[175].mxu0  ;;  %7305 = vmatmul.mubr.msk.bf16.vlgmr.msra.gmra.mrb[188].mxu0 %vm1386_vm2, %v5129_v52  ;;  %7321 = vmatpush3.bf16.msra.mxu1 %v5190_v24 }
 0xe3e   :  { %7315 = vmatpush3.bf16.msra.mxu0 %v5144_v28  ;;  %7316 = vmatprep.mubr.msk.bf16.mxu0 %vm7575_vm1, %v7574_v15  ;;  %v6266_v28 = vld [vmem:[%s8913_s11 + $0x1] ss:$0 sm:$0xff] }
 0xe3f   :  { %7322 = vmatprep.mubr.msk.bf16.mxu1 %vm7575_vm1, %v7574_v15  ;;  %7326 = vmatprep.subr.bf16.mxu0 %v7574_v15 }
 0xe40   :  { %7332 = vmatprep.subr.bf16.mxu1 %v7574_v15 }
 0xe41   :  { %v5029_v17 = vpop.f32.mrb[176].mxu1 }
 0xe42   :  { %v4983_v1 = vpop.f32.mrb[176].mxu0  ;;  %v5132_v18 = vpack.c.bf16 %v5029_v17, %v5029_v17  ;;  %v7276_v55 = vpop.f32.mrb[177].mxu1 }
 0xe43   :  { %v5131_v19 = vpack.c.bf16 %v4983_v1, %v4983_v1  ;;  %v7270_v56 = vpop.f32.mrb[177].mxu0  ;;  %v5032_v59 = vpop.f32.mrb[178].mxu1 }
 0xe44   :  { %v4986_v62 = vpop.f32.mrb[178].mxu0  ;;  %v7277_v47 = vpop.f32.mrb[179].mxu1  ;;  %7323 = vmatmul.mubr.msk.bf16.vlgmr.msra.gmra.mrb[192].mxu1 %vm1386_vm2, %v5132_v18 }
 0xe45   :  { %v7271_v6 = vpop.f32.mrb[179].mxu0  ;;  %7317 = vmatmul.mubr.msk.bf16.vlgmr.msra.gmra.mrb[192].mxu0 %vm1386_vm2, %v5131_v19  ;;  %7333 = vmatpush3.bf16.msra.mxu1 %v5282_v7 }
 0xe46   :  { %7327 = vmatpush3.bf16.msra.mxu0 %v5236_v43  ;;  %7328 = vmatprep.mubr.msk.bf16.mxu0 %vm7575_vm1, %v7574_v15 }
 0xe47   :  { %7334 = vmatprep.mubr.msk.bf16.mxu1 %vm7575_vm1, %v7574_v15  ;;  %7338 = vmatprep.subr.bf16.mxu0 %v7574_v15 }
 0xe48   :  { %7346 = vmatprep.subr.bf16.mxu1 %v7574_v15 }
 0xe49   :  { %v5121_v14 = vpop.f32.mrb[180].mxu1 }
 0xe4a   :  { %v5075_v13 = vpop.f32.mrb[180].mxu0  ;;  %v5134_v39 = vpack.c.bf16 %v5121_v14, %v5121_v14  ;;  %v7288_v58 = vpop.f32.mrb[181].mxu1 }
 0xe4b   :  { %v5133_v0 = vpack.c.bf16 %v5075_v13, %v5075_v13  ;;  %v7282_v35 = vpop.f32.mrb[181].mxu0  ;;  %v5124_v22 = vpop.f32.mrb[182].mxu1 }
 0xe4c   :  { %v5078_v45 = vpop.f32.mrb[182].mxu0  ;;  %v7289_v60 = vpop.f32.mrb[183].mxu1  ;;  %7335 = vmatmul.mubr.msk.bf16.vlgmr.msra.gmra.mrb[196].mxu1 %vm1386_vm2, %v5134_v39 }
 0xe4d   :  { %v7283_v44 = vpop.f32.mrb[183].mxu0  ;;  %7329 = vmatmul.mubr.msk.bf16.vlgmr.msra.gmra.mrb[196].mxu0 %vm1386_vm2, %v5133_v0  ;;  %7350 = vmatprep.mubr.msk.bf16.mxu1 %vm7575_vm1, %v7574_v15  ;;  %v7471_v0 = vld [vmem:[%s8914_s14 + $0x18] sm:$0xff]  }
 0xe4e   :  { %7342 = vmatprep.mubr.msk.bf16.mxu0 %vm7575_vm1, %v7574_v15  ;;  %v6269_v44 = vld [vmem:[%s8916_s12 + $0x1] ss:$0 sm:$0xff] }
 0xf07   :  { %v5226_v61 = vpop.f32.mrb[184].mxu1 }
 0xf08   :  { %v5180_v4 = vpop.f32.mrb[184].mxu0  ;;  %v7300_v5 = vpop.f32.mrb[185].mxu1 }
 0xf09   :  { %v5496_v29 = vadd.f32 %v5226_v61, %v5180_v4  ;;  %v7294_v63 = vpop.f32.mrb[185].mxu0  ;;  %v5229_v32 = vpop.f32.mrb[186].mxu1 }
 0xf0a   :  { %v5183_v8 = vpop.f32.mrb[186].mxu0  ;;  %v7301_v11 = vpop.f32.mrb[187].mxu1 }
 0xf0b   :  { %v7295_v12 = vpop.f32.mrb[187].mxu0  ;;  %v7472_v11 = vld [vmem:[%s8915_s16 + $0x40] sm:$0xff]  }
 0xf0f   :  { %v5318_v16 = vpop.f32.mrb[188].mxu1 }
 0xf10   :  { %v5272_v48 = vpop.f32.mrb[188].mxu0  ;;  %v7312_v23 = vpop.f32.mrb[189].mxu1 }
 0xf11   :  { %v5498_v21 = vadd.f32 %v5496_v29, %v5272_v48  ;;  %v7306_v24 = vpop.f32.mrb[189].mxu0  ;;  %v5321_v25 = vpop.f32.mrb[190].mxu1  ;;  %v6270_v29 = vld [vmem:[%s8917_s13 + $0x1] ss:$0 sm:$0xff]  ;;  %v7474_v48 = vld [vmem:[%s8915_s16 + $0x50] sm:$0xff]  }
 0xf12   :  { %v5275_v26 = vpop.f32.mrb[190].mxu0  ;;  %v7313_v27 = vpop.f32.mrb[191].mxu1 }
 0xf13   :  { %v5500_v33 = vadd.f32 %v5498_v21, %v5318_v16  ;;  %v7307_v9 = vpop.f32.mrb[191].mxu0  ;;  %v7473_v16 = vld [vmem:[%s8915_s16 + $0x48] sm:$0xff]   ;;  %v7475_v26 = vld [vmem:[%s8915_s16 + $0x58] sm:$0xff]   ;;  %v7476_v27 = vld [vmem:[%s8915_s16 + $0x60] sm:$0xff]  }
 0xf14   :  { %v7478_v9 = vld [vmem:[%s8915_s16 + $0x70] sm:$0xff]  }
 0xf15   :  { %v5510_v34 = vadd.f32 %v6266_v28, %v5500_v33  ;;  %v7477_v33 = vld [vmem:[%s8915_s16 + $0x68] sm:$0xff]  }
 0xf17   :  { %v5404_v36 = vpop.f32.mrb[192].mxu1  ;;  %v5512_v7 = vadd.f32 %v5510_v34, %v8323_v40  ;;  %v7479_v34 = vld [vmem:[%s8915_s16 + $0x78] sm:$0xff]  }
 0xf18   :  { %v5361_v37 = vpop.f32.mrb[192].mxu0  ;;  %v7324_v10 = vpop.f32.mrb[193].mxu1 }
 0xf19   :  { %v5497_v42 = vadd.f32 %v5404_v36, %v5361_v37  ;;  %v7318_v43 = vpop.f32.mrb[193].mxu0  ;;  %v5407_v38 = vpop.f32.mrb[194].mxu1  ;;  %v5518_v41 = vsel %vm76_vm0, %v5512_v7, 0.0  ;;  %v6276_v36 = vld [vmem:[%s8918_s15 + $0x1] ss:$0 sm:$0xff] }
 0xf1a   :  { %5519 = vadd.xlane.f32.xlu0 %v5518_v41  ;;  %v5364_v46 = vpop.f32.mrb[194].mxu0  ;;  %v7325_v49 = vpop.f32.mrb[195].mxu1 }
 0xf1b   :  { %v7319_v50 = vpop.f32.mrb[195].mxu0 }
 0xf1f   :  { %v5490_v57 = vpop.f32.mrb[196].mxu1 }
 0xf20   :  { %v5447_v3 = vpop.f32.mrb[196].mxu0  ;;  %v7336_v52 = vpop.f32.mrb[197].mxu1 }
 0xf21   :  { %v5499_v53 = vadd.f32 %v5497_v42, %v5447_v3  ;;  %v7330_v20 = vpop.f32.mrb[197].mxu0  ;;  %v5493_v30 = vpop.f32.mrb[198].mxu1 }
 0xf22   :  { %v5450_v2 = vpop.f32.mrb[198].mxu0  ;;  %v7337_v54 = vpop.f32.mrb[199].mxu1 }
 0xf23   :  { %v5501_v40 = vadd.f32 %v5499_v53, %v5490_v57  ;;  %v7331_v17 = vpop.f32.mrb[199].mxu0 }
 0xf25   :  { %v5511_v1 = vadd.f32 %v6266_v28, %v5501_v40 }
 0xf27   :  { %v5513_v18 = vadd.f32 %v5511_v1, %v8363_v51  ;;  %v7470_v51 = vld [vmem:[%s8914_s14 + $0x10] sm:$0xff]  }
 0xf28   :  { %7339 = vmatpush3.bf16.msra.mxu0 %v7470_v51  ;;  %7347 = vmatpush3.bf16.msra.mxu1 %v7470_v51 }
 0xf29   :  { %v5521_v55 = vsel %vm76_vm0, %v5513_v18, 0.0  ;;  %7340 = vmatprep.subr.bf16.mxu0 %v7574_v15  ;;  %7348 = vmatprep.subr.bf16.mxu1 %v7574_v15 }
 0xf2a   :  { %5522 = vadd.xlane.f32.xlu1 %v5521_v55  ;;  %v6298_v55 = vld [vmem:[%s8919_s17 + $0x1] ss:$0 sm:$0xff] }
 0xf2c   :  { %7341 = vmatpush3.bf16.msra.mxu0 %v7471_v0  ;;  %7349 = vmatpush3.bf16.msra.mxu1 %v7471_v0 }
 0xf2d   :  { %7354 = vmatprep.subr.bf16.mxu0 %v7574_v15  ;;  %7374 = vmatprep.subr.bf16.mxu1 %v7574_v15 }
 0xfa7   :  { %v5520_v19 = vpop.xlane.xlu0 %5519 }
 0xfa8   :  { %v5524_v56 = vmul.f32 0.03125, %v5520_v19 }
 0xfaa   :  { %v5526_v59 = vsub.f32 %v5512_v7, %v5524_v56 }
 0xfac   :  { %v5528_v62 = vmul.f32 %v5526_v59, %v5526_v59 }
 0xfae   :  { %v5530_v47 = vsel %vm76_vm0, %v5528_v62, 0.0 }
 0xfaf   :  { %5531 = vadd.xlane.f32.xlu0 %v5530_v47 }
 0xfb7   :  { %v5523_v6 = vpop.xlane.xlu1 %5522 }
 0xfb8   :  { %v5525_v14 = vmul.f32 0.03125, %v5523_v6 }
 0xfba   :  { %v5527_v13 = vsub.f32 %v5513_v18, %v5525_v14 }
 0xfbc   :  { %v5529_v39 = vmul.f32 %v5527_v13, %v5527_v13 }
 0xfbe   :  { %v5533_v58 = vsel %vm76_vm0, %v5529_v39, 0.0 }
 0xfbf   :  { %5534 = vadd.xlane.f32.xlu1 %v5533_v58 }
0x103c   :  { %v5532_v35 = vpop.xlane.xlu0 %5531 }
0x103d   :  { %v5536_v22 = vmul.f32 0.03125, %v5532_v35 }
0x103f   :  { %v5538_v45 = vadd.f32 1e-12, %v5536_v22 }
0x1041   :  { %7562 = vrsqrt.f32 %v5538_v45 }
0x104b   :  { %v7563_v60 = vpop.eup %7562 }
0x104c   :  { %v5542_v61 = vmul.f32 %v7563_v60, %v5526_v59  ;;  %v5535_v4 = vpop.xlane.xlu1 %5534 }
0x104d   :  { %v5537_v5 = vmul.f32 0.03125, %v5535_v4 }
0x104e   :  { %v5550_v63 = vmul.f32 %v6269_v44, %v5542_v61 }
0x104f   :  { %v5539_v32 = vadd.f32 1e-12, %v5537_v5 }
0x1050   :  { %v8806_v8 = vadd.f32 %v6270_v29, %v5550_v63 }
0x1051   :  { %7564 = vrsqrt.f32 %v5539_v32 }
0x1052   :  { %v5565_v12 = vpack.c.bf16 %v8806_v8, %v8806_v8 }
0x1054   :  { %7343 = vmatmul.mubr.msk.bf16.vlgmr.msra.gmra.mrb[200].mxu0 %vm76_vm0, %v5565_v12  ;;  %v7481_v12 = vld [vmem:[%s8922_s20 + $0x8] sm:$0xff]  }
0x1055   :  { %7355 = vmatpush3.bf16.msra.mxu0 %v7472_v11  ;;  %7370 = vmatprep.mubr.msk.bf16.mxu0 %vm7575_vm1, %v7574_v15 }
0x1056   :  { %7356 = vmatprep.subr.bf16.mxu0 %v7574_v15 }
0x1059   :  { %7357 = vmatpush3.bf16.msra.mxu0 %v7473_v16 }
0x105a   :  { %7358 = vmatprep.subr.bf16.mxu0 %v7574_v15 }
0x105b   :  { %v7565_v23 = vpop.eup %7564 }
0x105c   :  { %v5543_v21 = vmul.f32 %v7565_v23, %v5527_v13 }
0x105d   :  { %7359 = vmatpush3.bf16.msra.mxu0 %v7474_v48 }
0x105e   :  { %v5551_v24 = vmul.f32 %v6269_v44, %v5543_v21  ;;  %7360 = vmatprep.subr.bf16.mxu0 %v7574_v15 }
0x1060   :  { %v8825_v25 = vadd.f32 %v6270_v29, %v5551_v24  ;;  %v6309_v24 = vld [vmem:[%s8920_s18 + $0x1] ss:$0 sm:$0xff] }
0x1061   :  { %7361 = vmatpush3.bf16.msra.mxu0 %v7475_v26 }
0x1062   :  { %v5566_v28 = vpack.c.bf16 %v8825_v25, %v8825_v25  ;;  %7362 = vmatprep.subr.bf16.mxu0 %v7574_v15 }
0x1064   :  { %7351 = vmatmul.mubr.msk.bf16.vlgmr.msra.gmra.mrb[200].mxu1 %vm76_vm0, %v5566_v28 }
0x1065   :  { %7375 = vmatpush3.bf16.msra.mxu1 %v7472_v11  ;;  %7390 = vmatprep.mubr.msk.bf16.mxu1 %vm7575_vm1, %v7574_v15  ;;  %v7480_v11 = vld [vmem:[%s8922_s20] sm:$0xff]  }
0x1066   :  { %7376 = vmatprep.subr.bf16.mxu1 %v7574_v15  ;;  %7363 = vmatpush3.bf16.msra.mxu0 %v7476_v27 }
0x1067   :  { %7364 = vmatprep.subr.bf16.mxu0 %v7574_v15 }
0x1069   :  { %7377 = vmatpush3.bf16.msra.mxu1 %v7473_v16 }
0x106a   :  { %7378 = vmatprep.subr.bf16.mxu1 %v7574_v15  ;;  %7365 = vmatpush3.bf16.msra.mxu0 %v7477_v33 }
0x106b   :  { %7366 = vmatprep.subr.bf16.mxu0 %v7574_v15 }
0x106d   :  { %7379 = vmatpush3.bf16.msra.mxu1 %v7474_v48 }
0x106e   :  { %7380 = vmatprep.subr.bf16.mxu1 %v7574_v15  ;;  %7367 = vmatpush3.bf16.msra.mxu0 %v7478_v9 }
0x106f   :  { %7368 = vmatprep.subr.bf16.mxu0 %v7574_v15 }
0x1071   :  { %7381 = vmatpush3.bf16.msra.mxu1 %v7475_v26 }
0x1072   :  { %7382 = vmatprep.subr.bf16.mxu1 %v7574_v15  ;;  %7369 = vmatpush3.bf16.msra.mxu0 %v7479_v34 }
0x1073   :  { %7394 = vmatprep.subr.bf16.mxu0 %v7574_v15 }
0x1075   :  { %7383 = vmatpush3.bf16.msra.mxu1 %v7476_v27 }
0x1076   :  { %7384 = vmatprep.subr.bf16.mxu1 %v7574_v15 }
0x1079   :  { %7385 = vmatpush3.bf16.msra.mxu1 %v7477_v33 }
0x107a   :  { %7386 = vmatprep.subr.bf16.mxu1 %v7574_v15 }
0x107d   :  { %7387 = vmatpush3.bf16.msra.mxu1 %v7478_v9 }
0x107e   :  { %7388 = vmatprep.subr.bf16.mxu1 %v7574_v15 }
0x1081   :  { %7389 = vmatpush3.bf16.msra.mxu1 %v7479_v34 }
0x1082   :  { %7402 = vmatprep.subr.bf16.mxu1 %v7574_v15 }
0x1127   :  { %v5624_v7 = vpop.f32.mrb[200].mxu0 }
0x1128   :  { %v5625_v37 = vadd.f32 %v6276_v36, %v5624_v7  ;;  %v7344_v10 = vpop.f32.mrb[201].mxu0 }
0x1129   :  { %v5627_v42 = vpop.f32.mrb[202].mxu0 }
0x112a   :  { %v5675_v43 = vmul.f32 0.70710677, %v5625_v37  ;;  %v7345_v38 = vpop.f32.mrb[203].mxu0  ;;  %v5673_v46 = vmul.f32 0.5, %v5625_v37 }
0x112c   :  { %7566 = verf.f32 %v5675_v43  ;;  %v6311_v43 = vld [vmem:[%s8923_s21] ss:$0 sm:$0xff] }
0x1136   :  { %v7567_v41 = vpop.eup %7566 }
0x1137   :  { %v5679_v49 = vadd.f32 1.0, %v7567_v41  ;;  %v5667_v50 = vpop.f32.mrb[200].mxu1  ;;  %v5998_v41 = vand.u32 127, %v1765_v31 }
0x1138   :  { %v5668_v57 = vadd.f32 %v6276_v36, %v5667_v50  ;;  %v7352_v3 = vpop.f32.mrb[201].mxu1 }
0x1139   :  { %v5681_v52 = vmul.f32 %v5679_v49, %v5673_v46  ;;  %v5670_v53 = vpop.f32.mrb[202].mxu1  ;;  %vm5999_vm4 = vcmp.eq.s32.totalorder %v5998_v41, 2 }
0x113a   :  { %v5676_v20 = vmul.f32 0.70710677, %v5668_v57  ;;  %v7353_v30 = vpop.f32.mrb[203].mxu1  ;;  %v5674_v40 = vmul.f32 0.5, %v5668_v57 }
0x113b   :  { %v5700_v2 = vpack.c.bf16 %v5681_v52, %v5681_v52 }
0x113c   :  { %7568 = verf.f32 %v5676_v20 }
0x113d   :  { %7371 = vmatmul.mubr.bf16.vlgmr.msra.gmra.mrb[204].mxu0 %v5700_v2 }
0x113e   :  { %7398 = vmatprep.mubr.msk.bf16.mxu0 %vm7575_vm1, %v7574_v15  ;;  %7395 = vmatpush3.bf16.msra.mxu0 %v7480_v11 }
0x113f   :  { %7396 = vmatprep.subr.bf16.mxu0 %v7574_v15 }
0x1142   :  { %7397 = vmatpush3.bf16.msra.mxu0 %v7481_v12 }
0x1146   :  { %v7569_v54 = vpop.eup %7568 }
0x1147   :  { %v5680_v17 = vadd.f32 1.0, %v7569_v54 }
0x1149   :  { %v5682_v1 = vmul.f32 %v5680_v17, %v5674_v40 }
0x114b   :  { %v5701_v18 = vpack.c.bf16 %v5682_v1, %v5682_v1 }
0x114d   :  { %7391 = vmatmul.mubr.bf16.vlgmr.msra.gmra.mrb[204].mxu1 %v5701_v18 }
0x114e   :  { %7406 = vmatprep.mubr.msk.bf16.mxu1 %vm7575_vm1, %v7574_v15  ;;  %7403 = vmatpush3.bf16.msra.mxu1 %v7480_v11 }
0x114f   :  { %7404 = vmatprep.subr.bf16.mxu1 %v7574_v15  ;;  %v6310_v15 = vld [vmem:[%s8921_s19 + $0x1] ss:$0 sm:$0xff] }
0x1152   :  { %7405 = vmatpush3.bf16.msra.mxu1 %v7481_v12 }
0x1210   :  { %v5792_v19 = vpop.f32.mrb[204].mxu0 }
0x1211   :  { %v5793_v56 = vadd.f32 %v6298_v55, %v5792_v19  ;;  %v7372_v59 = vpop.f32.mrb[205].mxu0 }
0x1212   :  { %v5795_v62 = vpop.f32.mrb[206].mxu0 }
0x1213   :  { %v7373_v47 = vpop.f32.mrb[207].mxu0  ;;  %v5838_v6 = vadd.f32 %v5793_v56, %v8806_v8 }
0x1215   :  { %v5844_v14 = vsel %vm76_vm0, %v5838_v6, 0.0 }
0x1216   :  { %5845 = vadd.xlane.f32.xlu0 %v5844_v14 }
0x1220   :  { %v5832_v13 = vpop.f32.mrb[204].mxu1 }
0x1221   :  { %v5833_v39 = vadd.f32 %v6298_v55, %v5832_v13  ;;  %v7392_v58 = vpop.f32.mrb[205].mxu1 }
0x1222   :  { %v5835_v51 = vpop.f32.mrb[206].mxu1 }
0x1223   :  { %v7393_v0 = vpop.f32.mrb[207].mxu1  ;;  %v5839_v35 = vadd.f32 %v5833_v39, %v8825_v25 }
0x1225   :  { %v5847_v22 = vsel %vm76_vm0, %v5839_v35, 0.0 }
0x1226   :  { %5848 = vadd.xlane.f32.xlu1 %v5847_v22 }
0x12a3   :  { %v5846_v45 = vpop.xlane.xlu0 %5845 }
0x12a4   :  { %v5850_v60 = vmul.f32 0.03125, %v5846_v45 }
0x12a6   :  { %v5852_v44 = vsub.f32 %v5838_v6, %v5850_v60 }
0x12a8   :  { %v5854_v61 = vmul.f32 %v5852_v44, %v5852_v44 }
0x12aa   :  { %v5856_v4 = vsel %vm76_vm0, %v5854_v61, 0.0 }
0x12ab   :  { %5857 = vadd.xlane.f32.xlu0 %v5856_v4 }
0x12b3   :  { %v5849_v5 = vpop.xlane.xlu1 %5848 }
0x12b4   :  { %v5851_v29 = vmul.f32 0.03125, %v5849_v5 }
0x12b6   :  { %v5853_v63 = vsub.f32 %v5839_v35, %v5851_v29 }
0x12b8   :  { %v5855_v32 = vmul.f32 %v5853_v63, %v5853_v63 }
0x12ba   :  { %v5859_v8 = vsel %vm76_vm0, %v5855_v32, 0.0 }
0x12bb   :  { %5860 = vadd.xlane.f32.xlu1 %v5859_v8 }
0x1338   :  { %v5858_v16 = vpop.xlane.xlu0 %5857 }
0x1339   :  { %v5862_v48 = vmul.f32 0.03125, %v5858_v16 }
0x133b   :  { %v5864_v23 = vadd.f32 1e-12, %v5862_v48 }
0x133d   :  { %7570 = vrsqrt.f32 %v5864_v23 }
0x1347   :  { %v7571_v21 = vpop.eup %7570 }
0x1348   :  { %v5868_v25 = vmul.f32 %v7571_v21, %v5852_v44  ;;  %v5861_v28 = vpop.xlane.xlu1 %5860 }
0x1349   :  { %v5863_v26 = vmul.f32 0.03125, %v5861_v28 }
0x134a   :  { %v5876_v27 = vmul.f32 %v6309_v24, %v5868_v25 }
0x134b   :  { %v5865_v33 = vadd.f32 1e-12, %v5863_v26 }
0x134c   :  { %v5884_v9 = vadd.f32 %v6310_v15, %v5876_v27 }
0x134d   :  { %7572 = vrsqrt.f32 %v5865_v33 }
0x134e   :  { %v5890_v34 = vpack.c.bf16 %v5884_v9, %v5884_v9 }
0x1350   :  { %7399 = vmatmul.mubr.msk.bf16.vlgmr.msra.gmra.mrb[208].mxu0 %vm76_vm0, %v5890_v34 }
0x1357   :  { %v7573_v36 = vpop.eup %7572 }
0x1358   :  { %v5869_v7 = vmul.f32 %v7573_v36, %v5853_v63 }
0x135a   :  { %v5877_v37 = vmul.f32 %v6309_v24, %v5869_v7 }
0x135c   :  { %v5885_v10 = vadd.f32 %v6310_v15, %v5877_v37 }
0x135e   :  { %v5891_v42 = vpack.c.bf16 %v5885_v10, %v5885_v10 }
0x1360   :  { %7407 = vmatmul.mubr.msk.bf16.vlgmr.msra.gmra.mrb[208].mxu1 %vm76_vm0, %v5891_v42 }
0x1423   :  { %v5948_v38 = vpop.f32.mrb[208].mxu0 }
0x1424   :  { %v5949_v46 = vadd.f32 %v6311_v43, %v5948_v38  ;;  %v7400_v49 = vpop.f32.mrb[209].mxu0 }
0x1425   :  { %v5951_v50 = vpop.f32.mrb[210].mxu0 }
0x1426   :  { %v6000_v57 = vmul.f32 5.0, %v5949_v46  ;;  %v7401_v3 = vpop.f32.mrb[211].mxu0 }
0x1428   :  { %v6002_v52 = vadd.f32 5.0, %v6000_v57 }
0x142a   :  { %v6004_v53 = vsel %vm5999_vm4, %v6002_v52, %v5949_v46 }
0x142b   :  { %6006 = vst [vmem:[%s8924_s22] sm:$0xff] %v6004_v53 }
0x1433   :  { %v5991_v20 = vpop.f32.mrb[208].mxu1 }
0x1434   :  { %v5992_v30 = vadd.f32 %v6311_v43, %v5991_v20  ;;  %v7408_v2 = vpop.f32.mrb[209].mxu1 }
0x1435   :  { %v5994_v54 = vpop.f32.mrb[210].mxu1 }
0x1436   :  { %v6001_v40 = vmul.f32 5.0, %v5992_v30  ;;  %v7409_v17 = vpop.f32.mrb[211].mxu1 }
0x1438   :  { %v6003_v1 = vadd.f32 5.0, %v6001_v40 }
0x143a   :  { %v6005_v31 = vsel %vm5999_vm4, %v6003_v1, %v5992_v30 }
0x143b   :  { %6007 = vst [vmem:[%s8924_s22 + $0x8] sm:$0xff] %v6005_v31 }

</bundles_post_ra>
